<compile_context>
chip_gen: v7x
topology: tpu7x:2x2x1
jax: 0.10.0
libtpu: 0.0.40
codegen_flags: <defaults>
</compile_context>

<pallas_src>
import functools

import numpy as np

import jax
import jax.numpy as jnp
from jax.experimental import pallas as pl
from jax.experimental.pallas import tpu as pltpu

LANE = 128      # lane-alignment target for K and N
TM_MAX = 512    # max rows per grid step (512 x 128 f32 = 256 KiB -> trivially in VMEM)


# ----------------------------------------------------------------------------
# cfg parsing (same semantics as parse_cfg, but from an in-script string)
# ----------------------------------------------------------------------------
CFG_STRING = """
[net]
height=16
width=16
channels=3

[convolutional]
batch_normalize=1
filters=8
size=3
stride=1
pad=1
activation=leaky

[convolutional]
batch_normalize=1
filters=16
size=3
stride=2
pad=1
activation=leaky

[convolutional]
batch_normalize=1
filters=8
size=1
stride=1
pad=1
activation=leaky

[convolutional]
batch_normalize=1
filters=16
size=3
stride=1
pad=1
activation=leaky

[shortcut]
from=-3
activation=linear

[convolutional]
size=1
stride=1
pad=1
filters=27
activation=linear

[yolo]
mask=0,1,2
anchors=10,13,16,30,33,23,30,61,62,45,59,119
classes=4
num=6

[route]
layers=-3

[convolutional]
batch_normalize=1
filters=8
size=1
stride=1
pad=1
activation=leaky

[upsample]
stride=2

[route]
layers=-1,-10

[convolutional]
size=1
stride=1
pad=1
filters=27
activation=linear

[yolo]
mask=3,4,5
anchors=10,13,16,30,33,23,30,61,62,45,59,119
classes=4
num=6
"""


def parse_cfg_string(s):
    lines = [x.strip() for x in s.split("\n")]
    lines = [x for x in lines if len(x) > 0 and x[0] != "#"]
    block = {}
    blocks = []
    for line in lines:
        if line.startswith("[") and line.endswith("]"):
            if len(block) != 0:
                blocks.append(block)
                block = {}
            block["type"] = line[1:-1].strip()
        else:
            key, value = line.split("=")
            block[key.strip()] = value.strip()
    blocks.append(block)
    return blocks


def _round_up(x, m):
    return ((x + m - 1) // m) * m


# ----------------------------------------------------------------------------
# Pallas kernels
# ----------------------------------------------------------------------------
def conv_kernel(p_ref, w_ref, shift_ref, o_ref, *, leaky):
    """(im2col-patches @ weights-with-BN-scale-folded) + shift, optional LeakyReLU."""
    y = jnp.dot(p_ref[...], w_ref[...], preferred_element_type=jnp.float32)
    y = y + shift_ref[...]
    if leaky:
        y = jnp.where(y > 0, y, 0.1 * y)
    o_ref[...] = y


def conv_yolo_kernel(p_ref, w_ref, shift_ref, sel_ref, anch_ref, o_ref, *,
                     leaky, g, log2g, det_stride, tm):
    """Conv matmul fused with the YOLO predict_transform epilogue.

    Rows of the matmul output are spatial positions (b, gy, gx); columns are
    (anchor, attr).  sel_ref: 0 -> x col, 1 -> y col, 2 -> w/h col, 3 -> plain
    sigmoid (objectness / classes / padded).  anch_ref holds the raw anchor
    size on w/h columns and 1.0 elsewhere.
    """
    y = jnp.dot(p_ref[...], w_ref[...], preferred_element_type=jnp.float32)
    y = y + shift_ref[...]
    if leaky:
        y = jnp.where(y > 0, y, 0.1 * y)

    # per-row grid offsets from the global row index (g is a power of two).
    rows = pl.program_id(0) * tm + jax.lax.broadcasted_iota(jnp.int32, y.shape, 0)
    cell = rows & (g * g - 1)
    gy = (cell >> log2g).astype(jnp.float32)
    gx = (cell & (g - 1)).astype(jnp.float32)

    sel = sel_ref[...]          # (1, Np) int32, broadcasts over rows
    anch = anch_ref[...]        # (1, Np) f32
    is_x = sel == 0
    is_y = sel == 1
    is_wh = sel == 2

    sig = jax.nn.sigmoid(y)
    off = jnp.where(is_x, gx, 0.0) + jnp.where(is_y, gy, 0.0)
    xy = (sig + off) * det_stride
    wh = jnp.exp(jnp.where(is_wh, y, 0.0)) * anch   # exp only where needed
    o_ref[...] = jnp.where(is_wh, wh, jnp.where(is_x | is_y, xy, sig))


# ----------------------------------------------------------------------------
# Wrappers
# ----------------------------------------------------------------------------
def im2col(x, k, stride, pad):
    """x: (B, H, W, C) -> patches (B*Ho*Wo, k*k*C) ordered as (kh, kw, cin)."""
    B, H, W, C = x.shape
    xp = jnp.pad(x, ((0, 0), (pad, pad), (pad, pad), (0, 0)))
    Ho = (H + 2 * pad - k) // stride + 1
    Wo = (W + 2 * pad - k) // stride + 1
    slabs = []
    for di in range(k):
        for dj in range(k):
            slabs.append(xp[:, di:di + stride * Ho:stride, dj:dj + stride * Wo:stride, :])
    cols = jnp.stack(slabs, axis=3)               # (B, Ho, Wo, k*k, C)
    return cols.reshape(B * Ho * Wo, k * k * C), Ho, Wo


def _prep_cols(x, k, stride, pad, kp):
    """Build (row-padded, K-padded-to-kp) patch matrix; return tiling info."""
    B, H, W, C = x.shape
    if k == 1 and stride == 1 and pad == 0:
        Ho, Wo = H, W
        cols = x.reshape(B * H * W, C)            # 1x1 conv: im2col == reshape
    else:
        cols, Ho, Wo = im2col(x, k, stride, pad)
    M, K = cols.shape
    tm = min(TM_MAX, _round_up(M, LANE))
    Mp = _round_up(M, tm)
    cols = jnp.pad(cols, ((0, Mp - M), (0, kp - K)))
    return cols, M, Mp, tm, Ho, Wo


def conv2d_affine(x, w, shift, n_out, k, stride, pad, leaky):
    """Conv (NHWC) as a single-step Pallas matmul fused with shift/leaky."""
    B = x.shape[0]
    kp, np_ = w.shape
    cols, M, Mp, tm, Ho, Wo = _prep_cols(x, k, stride, pad, kp)
    out = pl.pallas_call(
        functools.partial(conv_kernel, leaky=leaky),
        out_shape=jax.ShapeDtypeStruct((Mp, np_), jnp.float32),
        grid=(Mp // tm,),
        in_specs=[
            pl.BlockSpec((tm, kp), lambda i: (i, 0)),
            pl.BlockSpec((kp, np_), lambda i: (0, 0)),
            pl.BlockSpec((1, np_), lambda i: (0, 0)),
        ],
        out_specs=pl.BlockSpec((tm, np_), lambda i: (i, 0)),
        compiler_params=pltpu.CompilerParams(dimension_semantics=("parallel",)),
    )(cols, w, shift)
    return out[:M, :n_out].reshape(B, Ho, Wo, n_out)


def yolo_col_tables(anchors, bb, n_pad):
    """Per-column selector / anchor tables for the fused YOLO epilogue."""
    A = len(anchors)
    sel = np.full((1, n_pad), 3, dtype=np.int32)
    anch = np.ones((1, n_pad), dtype=np.float32)
    for a in range(A):
        base = a * bb
        sel[0, base + 0] = 0                      # x
        sel[0, base + 1] = 1                      # y
        sel[0, base + 2] = 2                      # w
        sel[0, base + 3] = 2                      # h
        anch[0, base + 2] = float(anchors[a][0])
        anch[0, base + 3] = float(anchors[a][1])
    return jnp.asarray(sel), jnp.asarray(anch)


def conv2d_yolo(x, w, shift, k, stride, pad, leaky, anchors, num_classes, inp_dim):
    """Conv + fused YOLO predict_transform; returns detections (B, G*G*A, 5+nc)."""
    B = x.shape[0]
    kp, np_ = w.shape
    cols, M, Mp, tm, Ho, Wo = _prep_cols(x, k, stride, pad, kp)
    assert Ho == Wo and (Ho & (Ho - 1)) == 0, "YOLO grid size must be a power of two"
    g = Ho
    log2g = g.bit_length() - 1
    det_stride = inp_dim // g
    A = len(anchors)
    bb = 5 + num_classes
    assert A * bb <= np_
    sel, anch = yolo_col_tables(anchors, bb, np_)

    out = pl.pallas_call(
        functools.partial(conv_yolo_kernel, leaky=leaky, g=g, log2g=log2g,
                          det_stride=float(det_stride), tm=tm),
        out_shape=jax.ShapeDtypeStruct((Mp, np_), jnp.float32),
        grid=(Mp // tm,),
        in_specs=[
            pl.BlockSpec((tm, kp), lambda i: (i, 0)),
            pl.BlockSpec((kp, np_), lambda i: (0, 0)),
            pl.BlockSpec((1, np_), lambda i: (0, 0)),
            pl.BlockSpec((1, np_), lambda i: (0, 0)),
            pl.BlockSpec((1, np_), lambda i: (0, 0)),
        ],
        out_specs=pl.BlockSpec((tm, np_), lambda i: (i, 0)),
        compiler_params=pltpu.CompilerParams(dimension_semantics=("parallel",)),
    )(cols, w, shift, sel, anch)

    # rows are (b, gy, gx); real columns are (anchor, attr) -> (B, G*G*A, bb)
    return out[:M, :A * bb].reshape(B, g * g * A, bb)


def predict_transform_jax(x_nhwc, inp_dim, anchors, num_classes):
    """Plain-JAX fallback (only used when the feeding conv cannot be fused)."""
    B, G, _, _ = x_nhwc.shape
    stride = inp_dim // G
    A = len(anchors)
    bb = 5 + num_classes
    p = x_nhwc.reshape(B, G * G * A, bb).astype(jnp.float32)
    js = jnp.tile(jnp.arange(G, dtype=jnp.float32), G)
    is_ = jnp.repeat(jnp.arange(G, dtype=jnp.float32), G)
    off = jnp.repeat(jnp.stack([js, is_], axis=1), A, axis=0)     # (R, 2)
    anch = jnp.tile(jnp.array(anchors, jnp.float32), (G * G, 1))  # (R, 2) raw anchors
    xy = (jax.nn.sigmoid(p[..., :2]) + off) * stride
    wh = jnp.exp(p[..., 2:4]) * anch
    rest = jax.nn.sigmoid(p[..., 4:])
    return jnp.concatenate([xy, wh, rest], axis=-1)


# ----------------------------------------------------------------------------
# Parameter init (mirrors create_modules filter bookkeeping)
# ----------------------------------------------------------------------------
def init_params(blocks, key):
    params = []
    prev_filters = int(blocks[0].get("channels", 3))
    output_filters = []
    filters = prev_filters
    for index, b in enumerate(blocks[1:]):
        if b["type"] == "convolutional":
            bn = int(b["batch_normalize"]) if "batch_normalize" in b else 0
            filters = int(b["filters"])
            k = int(b["size"])
            key, k1, k2, k3, k4, k5 = jax.random.split(key, 6)
            w = jax.random.normal(k1, (filters, prev_filters, k, k), jnp.float32) * 0.1
            if bn:
                gamma = jax.random.uniform(k2, (filters,), minval=0.5, maxval=1.5)
                beta = jax.random.normal(k3, (filters,)) * 0.1
                rmean = jax.random.normal(k4, (filters,)) * 0.1
                rvar = jax.random.uniform(k5, (filters,), minval=0.5, maxval=1.5)
                scale = gamma / jnp.sqrt(rvar + 1e-5)
                shift = beta - rmean * scale
            else:
                bias = jax.random.normal(k2, (filters,)) * 0.1
                scale = jnp.ones((filters,), jnp.float32)
                shift = bias
            K = k * k * prev_filters
            # (Cout, Cin, kh, kw) -> (kh, kw, Cin, Cout) -> (K, Cout); fold BN scale.
            w_mat = jnp.transpose(w, (2, 3, 1, 0)).reshape(K, filters) * scale[None, :]
            Kp, Np = _round_up(K, LANE), _round_up(filters, LANE)
            w_pad = jnp.zeros((Kp, Np), jnp.float32).at[:K, :filters].set(w_mat)
            shift_pad = jnp.zeros((1, Np), jnp.float32).at[:, :filters].set(shift)
            params.append({"w": w_pad, "shift": shift_pad})
        elif b["type"] == "route":
            layers = [int(a) for a in b["layers"].split(",")]
            start = layers[0]
            end = layers[1] if len(layers) > 1 else 0
            if start > 0:
                start -= index
            if end > 0:
                end -= index
            if end < 0:
                filters = output_filters[index + start] + output_filters[index + end]
            else:
                filters = output_filters[index + start]
            params.append(None)
        else:  # upsample / shortcut / yolo: filters unchanged
            params.append(None)
        prev_filters = filters
        output_filters.append(filters)
    return params


# ----------------------------------------------------------------------------
# Darknet forward (mirrors Darknet.forward)
# ----------------------------------------------------------------------------
def yolo_fusable(modules, i):
    """Conv at i can fuse the following yolo transform iff nothing downstream
    (route/shortcut) needs the raw conv feature map."""
    if i + 1 >= len(modules):
        return False
    if modules[i]["type"] != "convolutional" or modules[i + 1]["type"] != "yolo":
        return False
    for j in range(i + 1, len(modules)):
        b = modules[j]
        if b["type"] == "route":
            layers = [int(a) for a in b["layers"].split(",")]
            refs = [(l - j) if l > 0 else l for l in layers]
            if any(j + r == i for r in refs):
                return False
        elif b["type"] == "shortcut":
            if j - 1 == i or j + int(b["from"]) == i:
                return False
    return True


def darknet_forward(blocks, params, x_nchw):
    modules = blocks[1:]
    inp_dim = int(blocks[0]["height"])
    fuse = [yolo_fusable(modules, i) for i in range(len(modules))]

    # PyTorch NCHW input -> internal NHWC
    x = jnp.transpose(x_nchw, (0, 2, 3, 1)).astype(jnp.float32)
    outputs = {}
    detections = None
    for i, b in enumerate(modules):
        t = b["type"]
        if t == "convolutional":
            k = int(b["size"])
            stride = int(b["stride"])
            pad = (k - 1) // 2 if int(b["pad"]) else 0
            leaky = b["activation"] == "leaky"
            n_out = int(b["filters"])
            p = params[i]
            if fuse[i]:
                yb = modules[i + 1]
                mask = [int(m) for m in yb["mask"].split(",")]
                a_flat = [int(a) for a in yb["anchors"].split(",")]
                anchors = [(a_flat[j], a_flat[j + 1]) for j in range(0, len(a_flat), 2)]
                anchors = [anchors[m] for m in mask]
                num_classes = int(yb["classes"])
                x = conv2d_yolo(x, p["w"], p["shift"], k, stride, pad, leaky,
                                anchors, num_classes, inp_dim)
            else:
                x = conv2d_affine(x, p["w"], p["shift"], n_out, k, stride, pad, leaky)
        elif t == "upsample":
            # nearest-neighbor, scale_factor=2
            x = jnp.repeat(jnp.repeat(x, 2, axis=1), 2, axis=2)
        elif t == "route":
            layers = [int(a) for a in b["layers"].split(",")]
            if layers[0] > 0:
                layers[0] -= i
            if len(layers) == 1:
                x = outputs[i + layers[0]]
            else:
                if layers[1] > 0:
                    layers[1] -= i
                # torch.cat(dim=1) on NCHW == concat on channel axis (-1 in NHWC)
                x = jnp.concatenate(
                    [outputs[i + layers[0]], outputs[i + layers[1]]], axis=-1)
        elif t == "shortcut":
            from_ = int(b["from"])
            x = outputs[i - 1] + outputs[i + from_]
        elif t == "yolo":
            if i > 0 and fuse[i - 1]:
                pass  # x already holds the transformed detections (fused conv)
            else:
                mask = [int(m) for m in b["mask"].split(",")]
                a_flat = [int(a) for a in b["anchors"].split(",")]
                anchors = [(a_flat[j], a_flat[j + 1]) for j in range(0, len(a_flat), 2)]
                anchors = [anchors[m] for m in mask]
                num_classes = int(b["classes"])
                x = predict_transform_jax(x, inp_dim, anchors, num_classes)
            detections = x if detections is None else jnp.concatenate(
                [detections, x], axis=1)
        outputs[i] = x
    return detections


# ----------------------------------------------------------------------------
if __name__ == "__main__":
    blocks = parse_cfg_string(CFG_STRING)
    key = jax.random.PRNGKey(0)
    key, pkey, xkey = jax.random.split(key, 3)
    params = init_params(blocks, pkey)

    B = 2
    C = int(blocks[0]["channels"])
    H = int(blocks[0]["height"])
    W = int(blocks[0]["width"])
    x = jax.random.normal(xkey, (B, C, H, W), jnp.float32)

    fwd = jax.jit(lambda p, inp: darknet_forward(blocks, p, inp))
    detections = fwd(params, x)
    detections = jax.block_until_ready(detections)

    # sanity: two yolo heads -> 8*8*3 + 16*16*3 = 960 boxes, 5+4 attrs each
    assert detections.shape == (B, 960, 9), detections.shape
    assert bool(jnp.all(jnp.isfinite(detections)))
    print("KERNEL_OK")
</pallas_src>

<mosaic_0001>
module attributes {stable_mosaic.version = 11 : i64} {
  func.func @conv_kernel(%arg0: i32, %arg1: memref<512x128xf32, #tpu.memory_space<vmem>>, %arg2: memref<128x128xf32, #tpu.memory_space<vmem>>, %arg3: memref<1x128xf32, #tpu.memory_space<vmem>>, %arg4: memref<512x128xf32, #tpu.memory_space<vmem>>) attributes {dimension_semantics = [#tpu.dimension_semantics<parallel>], iteration_bounds = array<i64: 1>, scalar_prefetch = 0 : i64, scratch_operands = 0 : i64, tpu.core_type = #tpu.core_type<tc>, window_params = [{transform_indices = @transform_0, window_bounds = array<i64: 512, 128>}, {pipeline_mode = #tpu.pipeline_mode<synchronous>, transform_indices = @transform_1, window_bounds = array<i64: 128, 128>}, {pipeline_mode = #tpu.pipeline_mode<synchronous>, transform_indices = @transform_2, window_bounds = array<i64: 1, 128>}, {transform_indices = @transform_3, window_bounds = array<i64: 512, 128>}]} {
    %c0 = arith.constant 0 : index
    %c0_0 = arith.constant 0 : index
    %0 = vector.load %arg1[%c0, %c0_0] : memref<512x128xf32, #tpu.memory_space<vmem>>, vector<512x128xf32>
    %c0_1 = arith.constant 0 : index
    %c0_2 = arith.constant 0 : index
    %1 = vector.load %arg2[%c0_1, %c0_2] : memref<128x128xf32, #tpu.memory_space<vmem>>, vector<128x128xf32>
    %cst = arith.constant dense<0.000000e+00> : vector<512x128xf32>
    %2 = tpu.matmul %0, %1, %cst {dimension_numbers = #tpu.dot_dimension_numbers<[1], [0], [0], [1], [0, 0, 1, 1], [], []>} : vector<512x128xf32>, vector<128x128xf32>, vector<512x128xf32> -> vector<512x128xf32>
    %c0_3 = arith.constant 0 : index
    %c0_4 = arith.constant 0 : index
    %3 = vector.load %arg3[%c0_3, %c0_4] : memref<1x128xf32, #tpu.memory_space<vmem>>, vector<1x128xf32>
    %4 = vector.broadcast %3 : vector<1x128xf32> to vector<512x128xf32>
    %5 = arith.addf %2, %4 : vector<512x128xf32>
    %cst_5 = arith.constant 0.000000e+00 : f32
    %6 = vector.broadcast %cst_5 : f32 to vector<512x128xf32>
    %7 = arith.cmpf ogt, %5, %6 : vector<512x128xf32>
    %cst_6 = arith.constant 1.000000e-01 : f32
    %8 = vector.broadcast %cst_6 : f32 to vector<512x128xf32>
    %9 = arith.mulf %8, %5 : vector<512x128xf32>
    %10 = arith.select %7, %5, %9 : vector<512x128xi1>, vector<512x128xf32>
    %c0_7 = arith.constant 0 : index
    %c0_8 = arith.constant 0 : index
    %11 = vector.load %arg4[%c0_7, %c0_8] : memref<512x128xf32, #tpu.memory_space<vmem>>, vector<512x128xf32>
    tpu.vector_store %arg4[%c0_7, %c0_8], %10 {strides = array<i32>} : memref<512x128xf32, #tpu.memory_space<vmem>>, vector<512x128xf32>,
    return
  }
  func.func @transform_0(%arg0: i32) -> (i32, i32) {
    %c0_i32 = arith.constant 0 : i32
    %c0_i32_0 = arith.constant 0 : i32
    return %arg0, %c0_i32 : i32, i32
  }
  func.func @transform_1(%arg0: i32) -> (i32, i32) {
    %c0_i32 = arith.constant 0 : i32
    %c0_i32_0 = arith.constant 0 : i32
    %c0_i32_1 = arith.constant 0 : i32
    return %c0_i32, %c0_i32_0 : i32, i32
  }
  func.func @transform_2(%arg0: i32) -> (i32, i32) {
    %c0_i32 = arith.constant 0 : i32
    %c0_i32_0 = arith.constant 0 : i32
    %c0_i32_1 = arith.constant 0 : i32
    return %c0_i32, %c0_i32_0 : i32, i32
  }
  func.func @transform_3(%arg0: i32) -> (i32, i32) {
    %c0_i32 = arith.constant 0 : i32
    %c0_i32_0 = arith.constant 0 : i32
    return %arg0, %c0_i32 : i32, i32
  }
}

module attributes {stable_mosaic.version = 11 : i64} {
  func.func @conv_kernel(%arg0: i32, %arg1: memref<128x128xf32, #tpu.memory_space<vmem>>, %arg2: memref<128x128xf32, #tpu.memory_space<vmem>>, %arg3: memref<1x128xf32, #tpu.memory_space<vmem>>, %arg4: memref<128x128xf32, #tpu.memory_space<vmem>>) attributes {dimension_semantics = [#tpu.dimension_semantics<parallel>], iteration_bounds = array<i64: 1>, scalar_prefetch = 0 : i64, scratch_operands = 0 : i64, tpu.core_type = #tpu.core_type<tc>, window_params = [{transform_indices = @transform_0, window_bounds = array<i64: 128, 128>}, {pipeline_mode = #tpu.pipeline_mode<synchronous>, transform_indices = @transform_1, window_bounds = array<i64: 128, 128>}, {pipeline_mode = #tpu.pipeline_mode<synchronous>, transform_indices = @transform_2, window_bounds = array<i64: 1, 128>}, {transform_indices = @transform_3, window_bounds = array<i64: 128, 128>}]} {
    %c0 = arith.constant 0 : index
    %c0_0 = arith.constant 0 : index
    %0 = vector.load %arg1[%c0, %c0_0] : memref<128x128xf32, #tpu.memory_space<vmem>>, vector<128x128xf32>
    %c0_1 = arith.constant 0 : index
    %c0_2 = arith.constant 0 : index
    %1 = vector.load %arg2[%c0_1, %c0_2] : memref<128x128xf32, #tpu.memory_space<vmem>>, vector<128x128xf32>
    %cst = arith.constant dense<0.000000e+00> : vector<128x128xf32>
    %2 = tpu.matmul %0, %1, %cst {dimension_numbers = #tpu.dot_dimension_numbers<[1], [0], [0], [1], [0, 0, 1, 1], [], []>} : vector<128x128xf32>, vector<128x128xf32>, vector<128x128xf32> -> vector<128x128xf32>
    %c0_3 = arith.constant 0 : index
    %c0_4 = arith.constant 0 : index
    %3 = vector.load %arg3[%c0_3, %c0_4] : memref<1x128xf32, #tpu.memory_space<vmem>>, vector<1x128xf32>
    %4 = vector.broadcast %3 : vector<1x128xf32> to vector<128x128xf32>
    %5 = arith.addf %2, %4 : vector<128x128xf32>
    %cst_5 = arith.constant 0.000000e+00 : f32
    %6 = vector.broadcast %cst_5 : f32 to vector<128x128xf32>
    %7 = arith.cmpf ogt, %5, %6 : vector<128x128xf32>
    %cst_6 = arith.constant 1.000000e-01 : f32
    %8 = vector.broadcast %cst_6 : f32 to vector<128x128xf32>
    %9 = arith.mulf %8, %5 : vector<128x128xf32>
    %10 = arith.select %7, %5, %9 : vector<128x128xi1>, vector<128x128xf32>
    %c0_7 = arith.constant 0 : index
    %c0_8 = arith.constant 0 : index
    %11 = vector.load %arg4[%c0_7, %c0_8] : memref<128x128xf32, #tpu.memory_space<vmem>>, vector<128x128xf32>
    tpu.vector_store %arg4[%c0_7, %c0_8], %10 {strides = array<i32>} : memref<128x128xf32, #tpu.memory_space<vmem>>, vector<128x128xf32>,
    return
  }
  func.func @transform_0(%arg0: i32) -> (i32, i32) {
    %c0_i32 = arith.constant 0 : i32
    %c0_i32_0 = arith.constant 0 : i32
    return %arg0, %c0_i32 : i32, i32
  }
  func.func @transform_1(%arg0: i32) -> (i32, i32) {
    %c0_i32 = arith.constant 0 : i32
    %c0_i32_0 = arith.constant 0 : i32
    %c0_i32_1 = arith.constant 0 : i32
    return %c0_i32, %c0_i32_0 : i32, i32
  }
  func.func @transform_2(%arg0: i32) -> (i32, i32) {
    %c0_i32 = arith.constant 0 : i32
    %c0_i32_0 = arith.constant 0 : i32
    %c0_i32_1 = arith.constant 0 : i32
    return %c0_i32, %c0_i32_0 : i32, i32
  }
  func.func @transform_3(%arg0: i32) -> (i32, i32) {
    %c0_i32 = arith.constant 0 : i32
    %c0_i32_0 = arith.constant 0 : i32
    return %arg0, %c0_i32 : i32, i32
  }
}

module attributes {stable_mosaic.version = 11 : i64} {
  func.func @conv_yolo_kernel(%arg0: i32, %arg1: memref<512x128xf32, #tpu.memory_space<vmem>>, %arg2: memref<128x128xf32, #tpu.memory_space<vmem>>, %arg3: memref<1x128xf32, #tpu.memory_space<vmem>>, %arg4: memref<1x128xi32, #tpu.memory_space<vmem>>, %arg5: memref<1x128xf32, #tpu.memory_space<vmem>>, %arg6: memref<512x128xf32, #tpu.memory_space<vmem>>) attributes {dimension_semantics = [#tpu.dimension_semantics<parallel>], iteration_bounds = array<i64: 1>, scalar_prefetch = 0 : i64, scratch_operands = 0 : i64, tpu.core_type = #tpu.core_type<tc>, window_params = [{transform_indices = @transform_0, window_bounds = array<i64: 512, 128>}, {pipeline_mode = #tpu.pipeline_mode<synchronous>, transform_indices = @transform_1, window_bounds = array<i64: 128, 128>}, {pipeline_mode = #tpu.pipeline_mode<synchronous>, transform_indices = @transform_2, window_bounds = array<i64: 1, 128>}, {pipeline_mode = #tpu.pipeline_mode<synchronous>, transform_indices = @transform_3, window_bounds = array<i64: 1, 128>}, {pipeline_mode = #tpu.pipeline_mode<synchronous>, transform_indices = @transform_4, window_bounds = array<i64: 1, 128>}, {transform_indices = @transform_5, window_bounds = array<i64: 512, 128>}]} {
    %c0 = arith.constant 0 : index
    %c0_0 = arith.constant 0 : index
    %0 = vector.load %arg1[%c0, %c0_0] : memref<512x128xf32, #tpu.memory_space<vmem>>, vector<512x128xf32>
    %c0_1 = arith.constant 0 : index
    %c0_2 = arith.constant 0 : index
    %1 = vector.load %arg2[%c0_1, %c0_2] : memref<128x128xf32, #tpu.memory_space<vmem>>, vector<128x128xf32>
    %cst = arith.constant dense<0.000000e+00> : vector<512x128xf32>
    %2 = tpu.matmul %0, %1, %cst {dimension_numbers = #tpu.dot_dimension_numbers<[1], [0], [0], [1], [0, 0, 1, 1], [], []>} : vector<512x128xf32>, vector<128x128xf32>, vector<512x128xf32> -> vector<512x128xf32>
    %c0_3 = arith.constant 0 : index
    %c0_4 = arith.constant 0 : index
    %3 = vector.load %arg3[%c0_3, %c0_4] : memref<1x128xf32, #tpu.memory_space<vmem>>, vector<1x128xf32>
    %4 = vector.broadcast %3 : vector<1x128xf32> to vector<512x128xf32>
    %5 = arith.addf %2, %4 : vector<512x128xf32>
    %c512_i32 = arith.constant 512 : i32
    %6 = arith.muli %arg0, %c512_i32 : i32
    %7 = tpu.iota {dimensions = array<i32: 0>} : vector<512x128xi32>
    %8 = vector.broadcast %6 : i32 to vector<512x128xi32>
    %9 = arith.addi %8, %7 : vector<512x128xi32>
    %c255_i32 = arith.constant 255 : i32
    %10 = vector.broadcast %c255_i32 : i32 to vector<512x128xi32>
    %11 = arith.andi %9, %10 : vector<512x128xi32>
    %c4_i32 = arith.constant 4 : i32
    %12 = vector.broadcast %c4_i32 : i32 to vector<512x128xi32>
    %13 = arith.shrsi %11, %12 : vector<512x128xi32>
    %14 = arith.sitofp %13 : vector<512x128xi32> to vector<512x128xf32>
    %c15_i32 = arith.constant 15 : i32
    %15 = vector.broadcast %c15_i32 : i32 to vector<512x128xi32>
    %16 = arith.andi %11, %15 : vector<512x128xi32>
    %17 = arith.sitofp %16 : vector<512x128xi32> to vector<512x128xf32>
    %c0_5 = arith.constant 0 : index
    %c0_6 = arith.constant 0 : index
    %18 = vector.load %arg4[%c0_5, %c0_6] : memref<1x128xi32, #tpu.memory_space<vmem>>, vector<1x128xi32>
    %c0_7 = arith.constant 0 : index
    %c0_8 = arith.constant 0 : index
    %19 = vector.load %arg5[%c0_7, %c0_8] : memref<1x128xf32, #tpu.memory_space<vmem>>, vector<1x128xf32>
    %c0_i32 = arith.constant 0 : i32
    %20 = vector.broadcast %c0_i32 : i32 to vector<1x128xi32>
    %21 = arith.cmpi eq, %18, %20 : vector<1x128xi32>
    %c1_i32 = arith.constant 1 : i32
    %22 = vector.broadcast %c1_i32 : i32 to vector<1x128xi32>
    %23 = arith.cmpi eq, %18, %22 : vector<1x128xi32>
    %c2_i32 = arith.constant 2 : i32
    %24 = vector.broadcast %c2_i32 : i32 to vector<1x128xi32>
    %25 = arith.cmpi eq, %18, %24 : vector<1x128xi32>
    %26 = arith.negf %5 : vector<512x128xf32>
    %27 = math.exp %26 : vector<512x128xf32>
    %cst_9 = arith.constant 1.000000e+00 : f32
    %28 = vector.broadcast %cst_9 : f32 to vector<512x128xf32>
    %29 = arith.addf %28, %27 : vector<512x128xf32>
    %30 = arith.divf %28, %29 : vector<512x128xf32>
    %cst_10 = arith.constant 0.000000e+00 : f32
    %31 = vector.shape_cast %21 : vector<1x128xi1> to vector<1x128xi1>
    %32 = vector.broadcast %31 : vector<1x128xi1> to vector<512x128xi1>
    %33 = vector.broadcast %cst_10 : f32 to vector<512x128xf32>
    %34 = arith.select %32, %17, %33 : vector<512x128xi1>, vector<512x128xf32>
    %cst_11 = arith.constant 0.000000e+00 : f32
    %35 = vector.shape_cast %23 : vector<1x128xi1> to vector<1x128xi1>
    %36 = vector.broadcast %35 : vector<1x128xi1> to vector<512x128xi1>
    %37 = vector.broadcast %cst_11 : f32 to vector<512x128xf32>
    %38 = arith.select %36, %14, %37 : vector<512x128xi1>, vector<512x128xf32>
    %39 = arith.addf %34, %38 : vector<512x128xf32>
    %40 = arith.addf %30, %39 : vector<512x128xf32>
    %cst_12 = arith.constant 1.000000e+00 : f32
    %41 = vector.broadcast %cst_12 : f32 to vector<512x128xf32>
    %42 = arith.mulf %40, %41 : vector<512x128xf32>
    %cst_13 = arith.constant 0.000000e+00 : f32
    %43 = vector.shape_cast %25 : vector<1x128xi1> to vector<1x128xi1>
    %44 = vector.broadcast %43 : vector<1x128xi1> to vector<512x128xi1>
    %45 = vector.broadcast %cst_13 : f32 to vector<512x128xf32>
    %46 = arith.select %44, %5, %45 : vector<512x128xi1>, vector<512x128xf32>
    %47 = math.exp %46 : vector<512x128xf32>
    %48 = vector.broadcast %19 : vector<1x128xf32> to vector<512x128xf32>
    %49 = arith.mulf %47, %48 : vector<512x128xf32>
    %50 = arith.ori %21, %23 : vector<1x128xi1>
    %51 = vector.shape_cast %50 : vector<1x128xi1> to vector<1x128xi1>
    %52 = vector.broadcast %51 : vector<1x128xi1> to vector<512x128xi1>
    %53 = arith.select %52, %42, %30 : vector<512x128xi1>, vector<512x128xf32>
    %54 = vector.shape_cast %25 : vector<1x128xi1> to vector<1x128xi1>
    %55 = vector.broadcast %54 : vector<1x128xi1> to vector<512x128xi1>
    %56 = arith.select %55, %49, %53 : vector<512x128xi1>, vector<512x128xf32>
    %c0_14 = arith.constant 0 : index
    %c0_15 = arith.constant 0 : index
    %57 = vector.load %arg6[%c0_14, %c0_15] : memref<512x128xf32, #tpu.memory_space<vmem>>, vector<512x128xf32>
    tpu.vector_store %arg6[%c0_14, %c0_15], %56 {strides = array<i32>} : memref<512x128xf32, #tpu.memory_space<vmem>>, vector<512x128xf32>,
    return
  }
  func.func @transform_0(%arg0: i32) -> (i32, i32) {
    %c0_i32 = arith.constant 0 : i32
    %c0_i32_0 = arith.constant 0 : i32
    return %arg0, %c0_i32 : i32, i32
  }
  func.func @transform_1(%arg0: i32) -> (i32, i32) {
    %c0_i32 = arith.constant 0 : i32
    %c0_i32_0 = arith.constant 0 : i32
    %c0_i32_1 = arith.constant 0 : i32
    return %c0_i32, %c0_i32_0 : i32, i32
  }
  func.func @transform_2(%arg0: i32) -> (i32, i32) {
    %c0_i32 = arith.constant 0 : i32
    %c0_i32_0 = arith.constant 0 : i32
    %c0_i32_1 = arith.constant 0 : i32
    return %c0_i32, %c0_i32_0 : i32, i32
  }
  func.func @transform_3(%arg0: i32) -> (i32, i32) {
    %c0_i32 = arith.constant 0 : i32
    %c0_i32_0 = arith.constant 0 : i32
    %c0_i32_1 = arith.constant 0 : i32
    return %c0_i32, %c0_i32_0 : i32, i32
  }
  func.func @transform_4(%arg0: i32) -> (i32, i32) {
    %c0_i32 = arith.constant 0 : i32
    %c0_i32_0 = arith.constant 0 : i32
    %c0_i32_1 = arith.constant 0 : i32
    return %c0_i32, %c0_i32_0 : i32, i32
  }
  func.func @transform_5(%arg0: i32) -> (i32, i32) {
    %c0_i32 = arith.constant 0 : i32
    %c0_i32_0 = arith.constant 0 : i32
    return %arg0, %c0_i32 : i32, i32
  }
}

module attributes {stable_mosaic.version = 11 : i64} {
  func.func @conv_yolo_kernel(%arg0: i32, %arg1: memref<128x128xf32, #tpu.memory_space<vmem>>, %arg2: memref<128x128xf32, #tpu.memory_space<vmem>>, %arg3: memref<1x128xf32, #tpu.memory_space<vmem>>, %arg4: memref<1x128xi32, #tpu.memory_space<vmem>>, %arg5: memref<1x128xf32, #tpu.memory_space<vmem>>, %arg6: memref<128x128xf32, #tpu.memory_space<vmem>>) attributes {dimension_semantics = [#tpu.dimension_semantics<parallel>], iteration_bounds = array<i64: 1>, scalar_prefetch = 0 : i64, scratch_operands = 0 : i64, tpu.core_type = #tpu.core_type<tc>, window_params = [{transform_indices = @transform_0, window_bounds = array<i64: 128, 128>}, {pipeline_mode = #tpu.pipeline_mode<synchronous>, transform_indices = @transform_1, window_bounds = array<i64: 128, 128>}, {pipeline_mode = #tpu.pipeline_mode<synchronous>, transform_indices = @transform_2, window_bounds = array<i64: 1, 128>}, {pipeline_mode = #tpu.pipeline_mode<synchronous>, transform_indices = @transform_3, window_bounds = array<i64: 1, 128>}, {pipeline_mode = #tpu.pipeline_mode<synchronous>, transform_indices = @transform_4, window_bounds = array<i64: 1, 128>}, {transform_indices = @transform_5, window_bounds = array<i64: 128, 128>}]} {
    %c0 = arith.constant 0 : index
    %c0_0 = arith.constant 0 : index
    %0 = vector.load %arg1[%c0, %c0_0] : memref<128x128xf32, #tpu.memory_space<vmem>>, vector<128x128xf32>
    %c0_1 = arith.constant 0 : index
    %c0_2 = arith.constant 0 : index
    %1 = vector.load %arg2[%c0_1, %c0_2] : memref<128x128xf32, #tpu.memory_space<vmem>>, vector<128x128xf32>
    %cst = arith.constant dense<0.000000e+00> : vector<128x128xf32>
    %2 = tpu.matmul %0, %1, %cst {dimension_numbers = #tpu.dot_dimension_numbers<[1], [0], [0], [1], [0, 0, 1, 1], [], []>} : vector<128x128xf32>, vector<128x128xf32>, vector<128x128xf32> -> vector<128x128xf32>
    %c0_3 = arith.constant 0 : index
    %c0_4 = arith.constant 0 : index
    %3 = vector.load %arg3[%c0_3, %c0_4] : memref<1x128xf32, #tpu.memory_space<vmem>>, vector<1x128xf32>
    %4 = vector.broadcast %3 : vector<1x128xf32> to vector<128x128xf32>
    %5 = arith.addf %2, %4 : vector<128x128xf32>
    %c128_i32 = arith.constant 128 : i32
    %6 = arith.muli %arg0, %c128_i32 : i32
    %7 = tpu.iota {dimensions = array<i32: 0>} : vector<128x128xi32>
    %8 = vector.broadcast %6 : i32 to vector<128x128xi32>
    %9 = arith.addi %8, %7 : vector<128x128xi32>
    %c63_i32 = arith.constant 63 : i32
    %10 = vector.broadcast %c63_i32 : i32 to vector<128x128xi32>
    %11 = arith.andi %9, %10 : vector<128x128xi32>
    %c3_i32 = arith.constant 3 : i32
    %12 = vector.broadcast %c3_i32 : i32 to vector<128x128xi32>
    %13 = arith.shrsi %11, %12 : vector<128x128xi32>
    %14 = arith.sitofp %13 : vector<128x128xi32> to vector<128x128xf32>
    %c7_i32 = arith.constant 7 : i32
    %15 = vector.broadcast %c7_i32 : i32 to vector<128x128xi32>
    %16 = arith.andi %11, %15 : vector<128x128xi32>
    %17 = arith.sitofp %16 : vector<128x128xi32> to vector<128x128xf32>
    %c0_5 = arith.constant 0 : index
    %c0_6 = arith.constant 0 : index
    %18 = vector.load %arg4[%c0_5, %c0_6] : memref<1x128xi32, #tpu.memory_space<vmem>>, vector<1x128xi32>
    %c0_7 = arith.constant 0 : index
    %c0_8 = arith.constant 0 : index
    %19 = vector.load %arg5[%c0_7, %c0_8] : memref<1x128xf32, #tpu.memory_space<vmem>>, vector<1x128xf32>
    %c0_i32 = arith.constant 0 : i32
    %20 = vector.broadcast %c0_i32 : i32 to vector<1x128xi32>
    %21 = arith.cmpi eq, %18, %20 : vector<1x128xi32>
    %c1_i32 = arith.constant 1 : i32
    %22 = vector.broadcast %c1_i32 : i32 to vector<1x128xi32>
    %23 = arith.cmpi eq, %18, %22 : vector<1x128xi32>
    %c2_i32 = arith.constant 2 : i32
    %24 = vector.broadcast %c2_i32 : i32 to vector<1x128xi32>
    %25 = arith.cmpi eq, %18, %24 : vector<1x128xi32>
    %26 = arith.negf %5 : vector<128x128xf32>
    %27 = math.exp %26 : vector<128x128xf32>
    %cst_9 = arith.constant 1.000000e+00 : f32
    %28 = vector.broadcast %cst_9 : f32 to vector<128x128xf32>
    %29 = arith.addf %28, %27 : vector<128x128xf32>
    %30 = arith.divf %28, %29 : vector<128x128xf32>
    %cst_10 = arith.constant 0.000000e+00 : f32
    %31 = vector.shape_cast %21 : vector<1x128xi1> to vector<1x128xi1>
    %32 = vector.broadcast %31 : vector<1x128xi1> to vector<128x128xi1>
    %33 = vector.broadcast %cst_10 : f32 to vector<128x128xf32>
    %34 = arith.select %32, %17, %33 : vector<128x128xi1>, vector<128x128xf32>
    %cst_11 = arith.constant 0.000000e+00 : f32
    %35 = vector.shape_cast %23 : vector<1x128xi1> to vector<1x128xi1>
    %36 = vector.broadcast %35 : vector<1x128xi1> to vector<128x128xi1>
    %37 = vector.broadcast %cst_11 : f32 to vector<128x128xf32>
    %38 = arith.select %36, %14, %37 : vector<128x128xi1>, vector<128x128xf32>
    %39 = arith.addf %34, %38 : vector<128x128xf32>
    %40 = arith.addf %30, %39 : vector<128x128xf32>
    %cst_12 = arith.constant 2.000000e+00 : f32
    %41 = vector.broadcast %cst_12 : f32 to vector<128x128xf32>
    %42 = arith.mulf %40, %41 : vector<128x128xf32>
    %cst_13 = arith.constant 0.000000e+00 : f32
    %43 = vector.shape_cast %25 : vector<1x128xi1> to vector<1x128xi1>
    %44 = vector.broadcast %43 : vector<1x128xi1> to vector<128x128xi1>
    %45 = vector.broadcast %cst_13 : f32 to vector<128x128xf32>
    %46 = arith.select %44, %5, %45 : vector<128x128xi1>, vector<128x128xf32>
    %47 = math.exp %46 : vector<128x128xf32>
    %48 = vector.broadcast %19 : vector<1x128xf32> to vector<128x128xf32>
    %49 = arith.mulf %47, %48 : vector<128x128xf32>
    %50 = arith.ori %21, %23 : vector<1x128xi1>
    %51 = vector.shape_cast %50 : vector<1x128xi1> to vector<1x128xi1>
    %52 = vector.broadcast %51 : vector<1x128xi1> to vector<128x128xi1>
    %53 = arith.select %52, %42, %30 : vector<128x128xi1>, vector<128x128xf32>
    %54 = vector.shape_cast %25 : vector<1x128xi1> to vector<1x128xi1>
    %55 = vector.broadcast %54 : vector<1x128xi1> to vector<128x128xi1>
    %56 = arith.select %55, %49, %53 : vector<128x128xi1>, vector<128x128xf32>
    %c0_14 = arith.constant 0 : index
    %c0_15 = arith.constant 0 : index
    %57 = vector.load %arg6[%c0_14, %c0_15] : memref<128x128xf32, #tpu.memory_space<vmem>>, vector<128x128xf32>
    tpu.vector_store %arg6[%c0_14, %c0_15], %56 {strides = array<i32>} : memref<128x128xf32, #tpu.memory_space<vmem>>, vector<128x128xf32>,
    return
  }
  func.func @transform_0(%arg0: i32) -> (i32, i32) {
    %c0_i32 = arith.constant 0 : i32
    %c0_i32_0 = arith.constant 0 : i32
    return %arg0, %c0_i32 : i32, i32
  }
  func.func @transform_1(%arg0: i32) -> (i32, i32) {
    %c0_i32 = arith.constant 0 : i32
    %c0_i32_0 = arith.constant 0 : i32
    %c0_i32_1 = arith.constant 0 : i32
    return %c0_i32, %c0_i32_0 : i32, i32
  }
  func.func @transform_2(%arg0: i32) -> (i32, i32) {
    %c0_i32 = arith.constant 0 : i32
    %c0_i32_0 = arith.constant 0 : i32
    %c0_i32_1 = arith.constant 0 : i32
    return %c0_i32, %c0_i32_0 : i32, i32
  }
  func.func @transform_3(%arg0: i32) -> (i32, i32) {
    %c0_i32 = arith.constant 0 : i32
    %c0_i32_0 = arith.constant 0 : i32
    %c0_i32_1 = arith.constant 0 : i32
    return %c0_i32, %c0_i32_0 : i32, i32
  }
  func.func @transform_4(%arg0: i32) -> (i32, i32) {
    %c0_i32 = arith.constant 0 : i32
    %c0_i32_0 = arith.constant 0 : i32
    %c0_i32_1 = arith.constant 0 : i32
    return %c0_i32, %c0_i32_0 : i32, i32
  }
  func.func @transform_5(%arg0: i32) -> (i32, i32) {
    %c0_i32 = arith.constant 0 : i32
    %c0_i32_0 = arith.constant 0 : i32
    return %arg0, %c0_i32 : i32, i32
  }
}

</mosaic_0001>

<bundles_post_ra>
// kernel: _lambda_.7
= control target key start
LH: loop header
LB: loop body
LE: loop exit
PB: predicated region body
PF: predicated region fallthrough
CT: control target
= control target key end

     0   :  { %s1524_s1 = inlined_call_operand.vmem [shape: f32[128,128], index: 1, kind: input, shape index: {}]   ;;  %s1525_s0 = inlined_call_operand.vmem [shape: f32[512,128], index: 0, kind: input, shape index: {}]   ;;  %s1526_s2 = inlined_call_operand.vmem [shape: f32[1,128], index: 2, kind: input, shape index: {}]   ;;  %s1527_s3 = inlined_call_operand.vmem [shape: f32[512,128], index: 3, kind: output, shape index: {}]  }
   0x1   :  { %v78_v0 = vld [vmem:[%s1524_s1] sm:$0xff]  ;;  %v79_v1 = vld [vmem:[%s1524_s1 + $0x8] sm:$0xff]  ;;  %v80_v2 = vld [vmem:[%s1524_s1 + $0x10] sm:$0xff] }
   0x2   :  { %v955_v3 = vpack.c.bf16 %v79_v1, %v78_v0  ;;  %v81_v4 = vld [vmem:[%s1524_s1 + $0x18] sm:$0xff]  ;;  %v82_v6 = vld [vmem:[%s1524_s1 + $0x20] sm:$0xff]  ;;  %v83_v7 = vld [vmem:[%s1524_s1 + $0x28] sm:$0xff] }
   0x3   :  { %v959_v5 = vpack.c.bf16 %v81_v4, %v80_v2  ;;  %v963_v8 = vpack.c.bf16 %v83_v7, %v82_v6  ;;  %v14_v9 = vld [vmem:[%s1525_s0] sm:$0xff]  ;;  %v84_v11 = vld [vmem:[%s1524_s1 + $0x30] sm:$0xff]  ;;  %v85_v12 = vld [vmem:[%s1524_s1 + $0x38] sm:$0xff] }
   0x4   :  { %956 = vmatprep.subr.bf16.mxu0 %v955_v3  ;;  %987 = vmatprep.subr.bf16.mxu1 %v955_v3  ;;  %v46_v10 = vld [vmem:[%s1525_s0 + $0x100] sm:$0xff]  ;;  %v967_v13 = vpack.c.bf16 %v85_v12, %v84_v11  ;;  %v87_v15 = vld [vmem:[%s1524_s1 + $0x48] sm:$0xff]  ;;  %v88_v17 = vld [vmem:[%s1524_s1 + $0x50] sm:$0xff] }
   0x5   :  { %958 = vmatpush3.bf16.msra.mxu0 %v955_v3  ;;  %995 = vmatpush3.bf16.msra.mxu1 %v955_v3  ;;  %v86_v14 = vld [vmem:[%s1524_s1 + $0x40] sm:$0xff]  ;;  %v89_v18 = vld [vmem:[%s1524_s1 + $0x58] sm:$0xff]  ;;  %v91_v21 = vld [vmem:[%s1524_s1 + $0x68] sm:$0xff] }
   0x6   :  { %960 = vmatprep.subr.bf16.mxu0 %v959_v5  ;;  %988 = vmatprep.subr.bf16.mxu1 %v959_v5  ;;  %v971_v16 = vpack.c.bf16 %v87_v15, %v86_v14  ;;  %v975_v19 = vpack.c.bf16 %v89_v18, %v88_v17  ;;  %v90_v20 = vld [vmem:[%s1524_s1 + $0x60] sm:$0xff]  ;;  %v92_v23 = vld [vmem:[%s1524_s1 + $0x70] sm:$0xff]  ;;  %v93_v24 = vld [vmem:[%s1524_s1 + $0x78] sm:$0xff] }
   0x7   :  { %859 = vmatprep.mubr.f32.mxu0 %v14_v9  ;;  %907 = vmatprep.mubr.f32.mxu1 %v46_v10  ;;  %v979_v22 = vpack.c.bf16 %v91_v21, %v90_v20  ;;  %v983_v25 = vpack.c.bf16 %v93_v24, %v92_v23  ;;  %v15_v26 = vld [vmem:[%s1525_s0 + $0x8] sm:$0xff]  ;;  %v16_v28 = vld [vmem:[%s1525_s0 + $0x10] sm:$0xff]  ;;  %v17_v30 = vld [vmem:[%s1525_s0 + $0x18] sm:$0xff] }
   0x8   :  { %v47_v27 = vld [vmem:[%s1525_s0 + $0x108] sm:$0xff]  ;;  %v48_v29 = vld [vmem:[%s1525_s0 + $0x110] sm:$0xff]  ;;  %v49_v31 = vld [vmem:[%s1525_s0 + $0x118] sm:$0xff] }
   0x9   :  { %962 = vmatpush3.bf16.msra.mxu0 %v959_v5  ;;  %996 = vmatpush3.bf16.msra.mxu1 %v959_v5  ;;  %v18_v32 = vld [vmem:[%s1525_s0 + $0x20] sm:$0xff]  ;;  %v19_v34 = vld [vmem:[%s1525_s0 + $0x28] sm:$0xff]  ;;  %v20_v36 = vld [vmem:[%s1525_s0 + $0x30] sm:$0xff] }
   0xa   :  { %964 = vmatprep.subr.bf16.mxu0 %v963_v8  ;;  %989 = vmatprep.subr.bf16.mxu1 %v963_v8  ;;  %v50_v33 = vld [vmem:[%s1525_s0 + $0x120] sm:$0xff]  ;;  %v51_v35 = vld [vmem:[%s1525_s0 + $0x128] sm:$0xff]  ;;  %v52_v37 = vld [vmem:[%s1525_s0 + $0x130] sm:$0xff] }
   0xb   :  { %v21_v38 = vld [vmem:[%s1525_s0 + $0x38] sm:$0xff]  ;;  %v22_v40 = vld [vmem:[%s1525_s0 + $0x40] sm:$0xff]  ;;  %v23_v42 = vld [vmem:[%s1525_s0 + $0x48] sm:$0xff] }
   0xc   :  { %v53_v39 = vld [vmem:[%s1525_s0 + $0x138] sm:$0xff]  ;;  %v54_v41 = vld [vmem:[%s1525_s0 + $0x140] sm:$0xff]  ;;  %v55_v43 = vld [vmem:[%s1525_s0 + $0x148] sm:$0xff] }
   0xd   :  { %966 = vmatpush3.bf16.msra.mxu0 %v963_v8  ;;  %997 = vmatpush3.bf16.msra.mxu1 %v963_v8  ;;  %v24_v44 = vld [vmem:[%s1525_s0 + $0x50] sm:$0xff]  ;;  %v25_v46 = vld [vmem:[%s1525_s0 + $0x58] sm:$0xff]  ;;  %v26_v48 = vld [vmem:[%s1525_s0 + $0x60] sm:$0xff] }
   0xe   :  { %968 = vmatprep.subr.bf16.mxu0 %v967_v13  ;;  %990 = vmatprep.subr.bf16.mxu1 %v967_v13  ;;  %v56_v45 = vld [vmem:[%s1525_s0 + $0x150] sm:$0xff]  ;;  %v57_v47 = vld [vmem:[%s1525_s0 + $0x158] sm:$0xff]  ;;  %v58_v49 = vld [vmem:[%s1525_s0 + $0x160] sm:$0xff] }
   0xf   :  { %v27_v50 = vld [vmem:[%s1525_s0 + $0x68] sm:$0xff]  ;;  %v28_v52 = vld [vmem:[%s1525_s0 + $0x70] sm:$0xff]  ;;  %v29_v54 = vld [vmem:[%s1525_s0 + $0x78] sm:$0xff] }
  0x10   :  { %v59_v51 = vld [vmem:[%s1525_s0 + $0x168] sm:$0xff]  ;;  %v60_v53 = vld [vmem:[%s1525_s0 + $0x170] sm:$0xff]  ;;  %v61_v55 = vld [vmem:[%s1525_s0 + $0x178] sm:$0xff] }
  0x11   :  { %970 = vmatpush3.bf16.msra.mxu0 %v967_v13  ;;  %998 = vmatpush3.bf16.msra.mxu1 %v967_v13  ;;  %v30_v56 = vld [vmem:[%s1525_s0 + $0x80] sm:$0xff]  ;;  %v31_v58 = vld [vmem:[%s1525_s0 + $0x88] sm:$0xff]  ;;  %v32_v60 = vld [vmem:[%s1525_s0 + $0x90] sm:$0xff] }
  0x12   :  { %972 = vmatprep.subr.bf16.mxu0 %v971_v16  ;;  %991 = vmatprep.subr.bf16.mxu1 %v971_v16  ;;  %v62_v57 = vld [vmem:[%s1525_s0 + $0x180] sm:$0xff]  ;;  %v63_v59 = vld [vmem:[%s1525_s0 + $0x188] sm:$0xff]  ;;  %v64_v61 = vld [vmem:[%s1525_s0 + $0x190] sm:$0xff] }
  0x13   :  { %v33_v62 = vld [vmem:[%s1525_s0 + $0x98] sm:$0xff]  ;;  %v34_v0 = vld [vmem:[%s1525_s0 + $0xa0] sm:$0xff]  ;;  %v35_v2 = vld [vmem:[%s1525_s0 + $0xa8] sm:$0xff] }
  0x14   :  { %v65_v63 = vld [vmem:[%s1525_s0 + $0x198] sm:$0xff]  ;;  %v66_v1 = vld [vmem:[%s1525_s0 + $0x1a0] sm:$0xff]  ;;  %v67_v3 = vld [vmem:[%s1525_s0 + $0x1a8] sm:$0xff] }
  0x15   :  { %974 = vmatpush3.bf16.msra.mxu0 %v971_v16  ;;  %999 = vmatpush3.bf16.msra.mxu1 %v971_v16  ;;  %v36_v4 = vld [vmem:[%s1525_s0 + $0xb0] sm:$0xff]  ;;  %v37_v6 = vld [vmem:[%s1525_s0 + $0xb8] sm:$0xff]  ;;  %v38_v8 = vld [vmem:[%s1525_s0 + $0xc0] sm:$0xff] }
  0x16   :  { %976 = vmatprep.subr.bf16.mxu0 %v975_v19  ;;  %992 = vmatprep.subr.bf16.mxu1 %v975_v19  ;;  %v68_v5 = vld [vmem:[%s1525_s0 + $0x1b0] sm:$0xff]  ;;  %v69_v7 = vld [vmem:[%s1525_s0 + $0x1b8] sm:$0xff]  ;;  %v70_v9 = vld [vmem:[%s1525_s0 + $0x1c0] sm:$0xff] }
  0x17   :  { %v39_v10 = vld [vmem:[%s1525_s0 + $0xc8] sm:$0xff]  ;;  %v40_v12 = vld [vmem:[%s1525_s0 + $0xd0] sm:$0xff]  ;;  %v41_v14 = vld [vmem:[%s1525_s0 + $0xd8] sm:$0xff] }
  0x18   :  { %v71_v11 = vld [vmem:[%s1525_s0 + $0x1c8] sm:$0xff]  ;;  %v72_v13 = vld [vmem:[%s1525_s0 + $0x1d0] sm:$0xff]  ;;  %v73_v15 = vld [vmem:[%s1525_s0 + $0x1d8] sm:$0xff] }
  0x19   :  { %978 = vmatpush3.bf16.msra.mxu0 %v975_v19  ;;  %1000 = vmatpush3.bf16.msra.mxu1 %v975_v19  ;;  %v42_v16 = vld [vmem:[%s1525_s0 + $0xe0] sm:$0xff]  ;;  %v43_v18 = vld [vmem:[%s1525_s0 + $0xe8] sm:$0xff]  ;;  %v44_v20 = vld [vmem:[%s1525_s0 + $0xf0] sm:$0xff] }
  0x1a   :  { %980 = vmatprep.subr.bf16.mxu0 %v979_v22  ;;  %993 = vmatprep.subr.bf16.mxu1 %v979_v22  ;;  %v74_v17 = vld [vmem:[%s1525_s0 + $0x1e0] sm:$0xff]  ;;  %v75_v19 = vld [vmem:[%s1525_s0 + $0x1e8] sm:$0xff]  ;;  %v76_v21 = vld [vmem:[%s1525_s0 + $0x1f0] sm:$0xff] }
  0x1b   :  { %v77_v23 = vld [vmem:[%s1525_s0 + $0x1f8] sm:$0xff]  ;;  %v1266_v24 = vld [vmem:[%s1526_s2] ss:$0 sm:$0xff] }
  0x1d   :  { %982 = vmatpush3.bf16.msra.mxu0 %v979_v22  ;;  %1001 = vmatpush3.bf16.msra.mxu1 %v979_v22  ;;  %v45_v22 = vld [vmem:[%s1525_s0 + $0xf8] sm:$0xff] }
  0x1e   :  { %984 = vmatprep.subr.bf16.mxu0 %v983_v25  ;;  %994 = vmatprep.subr.bf16.mxu1 %v983_v25 }
  0x21   :  { %986 = vmatpush3.bf16.msra.mxu0 %v983_v25  ;;  %1002 = vmatpush3.bf16.msra.mxu1 %v983_v25 }
  0x24   :  { %860 = vmatmul.mubr.f32.vlgmr.msra.gmra.mrb[0].mxu0 %v15_v26  ;;  %908 = vmatmul.mubr.f32.vlgmr.msra.gmra.mrb[0].mxu1 %v47_v27 }
  0x25   :  { %862 = vmatprep.mubr.f32.mxu0 %v16_v28  ;;  %910 = vmatprep.mubr.f32.mxu1 %v48_v29 }
  0x28   :  { %863 = vmatmul.mubr.f32.gmra.mrb[2].mxu0 %v17_v30  ;;  %911 = vmatmul.mubr.f32.gmra.mrb[2].mxu1 %v49_v31 }
  0x29   :  { %865 = vmatprep.mubr.f32.mxu0 %v18_v32  ;;  %913 = vmatprep.mubr.f32.mxu1 %v50_v33 }
  0x2c   :  { %866 = vmatmul.mubr.f32.gmra.mrb[4].mxu0 %v19_v34  ;;  %914 = vmatmul.mubr.f32.gmra.mrb[4].mxu1 %v51_v35 }
  0x2d   :  { %868 = vmatprep.mubr.f32.mxu0 %v20_v36  ;;  %916 = vmatprep.mubr.f32.mxu1 %v52_v37 }
  0x30   :  { %869 = vmatmul.mubr.f32.gmra.mrb[6].mxu0 %v21_v38  ;;  %917 = vmatmul.mubr.f32.gmra.mrb[6].mxu1 %v53_v39 }
  0x31   :  { %871 = vmatprep.mubr.f32.mxu0 %v22_v40  ;;  %919 = vmatprep.mubr.f32.mxu1 %v54_v41 }
  0x34   :  { %872 = vmatmul.mubr.f32.gmra.mrb[8].mxu0 %v23_v42  ;;  %920 = vmatmul.mubr.f32.gmra.mrb[8].mxu1 %v55_v43 }
  0x35   :  { %874 = vmatprep.mubr.f32.mxu0 %v24_v44  ;;  %922 = vmatprep.mubr.f32.mxu1 %v56_v45 }
  0x38   :  { %875 = vmatmul.mubr.f32.gmra.mrb[10].mxu0 %v25_v46  ;;  %923 = vmatmul.mubr.f32.gmra.mrb[10].mxu1 %v57_v47 }
  0x39   :  { %877 = vmatprep.mubr.f32.mxu0 %v26_v48  ;;  %925 = vmatprep.mubr.f32.mxu1 %v58_v49 }
  0x3c   :  { %878 = vmatmul.mubr.f32.gmra.mrb[12].mxu0 %v27_v50  ;;  %926 = vmatmul.mubr.f32.gmra.mrb[12].mxu1 %v59_v51 }
  0x3d   :  { %880 = vmatprep.mubr.f32.mxu0 %v28_v52  ;;  %928 = vmatprep.mubr.f32.mxu1 %v60_v53 }
  0x40   :  { %881 = vmatmul.mubr.f32.gmra.mrb[14].mxu0 %v29_v54  ;;  %929 = vmatmul.mubr.f32.gmra.mrb[14].mxu1 %v61_v55 }
  0x41   :  { %883 = vmatprep.mubr.f32.mxu0 %v30_v56  ;;  %931 = vmatprep.mubr.f32.mxu1 %v62_v57 }
  0x44   :  { %884 = vmatmul.mubr.f32.gmra.mrb[16].mxu0 %v31_v58  ;;  %932 = vmatmul.mubr.f32.gmra.mrb[16].mxu1 %v63_v59 }
  0x45   :  { %886 = vmatprep.mubr.f32.mxu0 %v32_v60  ;;  %934 = vmatprep.mubr.f32.mxu1 %v64_v61 }
  0x48   :  { %887 = vmatmul.mubr.f32.gmra.mrb[18].mxu0 %v33_v62  ;;  %935 = vmatmul.mubr.f32.gmra.mrb[18].mxu1 %v65_v63 }
  0x49   :  { %889 = vmatprep.mubr.f32.mxu0 %v34_v0  ;;  %937 = vmatprep.mubr.f32.mxu1 %v66_v1 }
  0x4c   :  { %890 = vmatmul.mubr.f32.gmra.mrb[20].mxu0 %v35_v2  ;;  %938 = vmatmul.mubr.f32.gmra.mrb[20].mxu1 %v67_v3 }
  0x4d   :  { %892 = vmatprep.mubr.f32.mxu0 %v36_v4  ;;  %940 = vmatprep.mubr.f32.mxu1 %v68_v5 }
  0x50   :  { %893 = vmatmul.mubr.f32.gmra.mrb[22].mxu0 %v37_v6  ;;  %941 = vmatmul.mubr.f32.gmra.mrb[22].mxu1 %v69_v7 }
  0x51   :  { %895 = vmatprep.mubr.f32.mxu0 %v38_v8  ;;  %943 = vmatprep.mubr.f32.mxu1 %v70_v9 }
  0x54   :  { %896 = vmatmul.mubr.f32.gmra.mrb[24].mxu0 %v39_v10  ;;  %944 = vmatmul.mubr.f32.gmra.mrb[24].mxu1 %v71_v11 }
  0x55   :  { %898 = vmatprep.mubr.f32.mxu0 %v40_v12  ;;  %946 = vmatprep.mubr.f32.mxu1 %v72_v13 }
  0x58   :  { %899 = vmatmul.mubr.f32.gmra.mrb[26].mxu0 %v41_v14  ;;  %947 = vmatmul.mubr.f32.gmra.mrb[26].mxu1 %v73_v15 }
  0x59   :  { %901 = vmatprep.mubr.f32.mxu0 %v42_v16  ;;  %949 = vmatprep.mubr.f32.mxu1 %v74_v17 }
  0x5c   :  { %902 = vmatmul.mubr.f32.gmra.mrb[28].mxu0 %v43_v18  ;;  %950 = vmatmul.mubr.f32.gmra.mrb[28].mxu1 %v75_v19 }
  0x5d   :  { %904 = vmatprep.mubr.f32.mxu0 %v44_v20  ;;  %952 = vmatprep.mubr.f32.mxu1 %v76_v21 }
  0x60   :  { %905 = vmatmul.mubr.f32.gmra.mrb[30].mxu0 %v45_v22  ;;  %953 = vmatmul.mubr.f32.gmra.mrb[30].mxu1 %v77_v23 }
  0xf7   :  { %v861_v25 = vpop.f32.mrb[0].mxu0  ;;  %v909_v26 = vpop.f32.mrb[0].mxu1 }
  0xf8   :  { %v173_v27 = vadd.f32 %v861_v25, %v1266_v24  ;;  %v333_v28 = vadd.f32 %v909_v26, %v1266_v24  ;;  %v167_v29 = vpop.f32.mrb[1].mxu0  ;;  %v327_v30 = vpop.f32.mrb[1].mxu1 }
  0xf9   :  { %v168_v31 = vadd.f32 %v1266_v24, %v167_v29  ;;  %v328_v32 = vadd.f32 %v1266_v24, %v327_v30 }
  0xfa   :  { %vm487_vm0 = vcmp.gt.f32.partialorder %v173_v27, 0.0  ;;  %v551_v33 = vmul.f32 0.1, %v173_v27  ;;  %vm519_vm1 = vcmp.gt.f32.partialorder %v333_v28, 0.0  ;;  %v583_v34 = vmul.f32 0.1, %v333_v28 }
  0xfb   :  { %vm486_vm2 = vcmp.gt.f32.partialorder %v168_v31, 0.0  ;;  %v550_v35 = vmul.f32 0.1, %v168_v31  ;;  %vm518_vm3 = vcmp.gt.f32.partialorder %v328_v32, 0.0  ;;  %v582_v36 = vmul.f32 0.1, %v328_v32 }
  0xfc   :  { %v615_v37 = vsel %vm487_vm0, %v173_v27, %v551_v33  ;;  %v647_v38 = vsel %vm519_vm1, %v333_v28, %v583_v34  ;;  %v864_v39 = vpop.f32.mrb[2].mxu0  ;;  %v912_v40 = vpop.f32.mrb[2].mxu1 }
  0xfd   :  { %679 = vst [vmem:[%s1527_s3 + $0x8] sm:$0xff] %v615_v37  ;;  %711 = vst [vmem:[%s1527_s3 + $0x108] sm:$0xff] %v647_v38  ;;  %v614_v41 = vsel %vm486_vm2, %v168_v31, %v550_v35  ;;  %v646_v42 = vsel %vm518_vm3, %v328_v32, %v582_v36  ;;  %v183_v43 = vadd.f32 %v864_v39, %v1266_v24  ;;  %v177_v45 = vpop.f32.mrb[3].mxu0  ;;  %v337_v46 = vpop.f32.mrb[3].mxu1 }
  0xfe   :  { %v343_v44 = vadd.f32 %v912_v40, %v1266_v24  ;;  %678 = vst [vmem:[%s1527_s3] sm:$0xff] %v614_v41  ;;  %710 = vst [vmem:[%s1527_s3 + $0x100] sm:$0xff] %v646_v42  ;;  %v178_v47 = vadd.f32 %v1266_v24, %v177_v45  ;;  %v338_v48 = vadd.f32 %v1266_v24, %v337_v46 }
  0xff   :  { %vm489_vm4 = vcmp.gt.f32.partialorder %v183_v43, 0.0  ;;  %v553_v49 = vmul.f32 0.1, %v183_v43  ;;  %v867_v55 = vpop.f32.mrb[4].mxu0  ;;  %v915_v56 = vpop.f32.mrb[4].mxu1 }
 0x100   :  { %vm521_vm5 = vcmp.gt.f32.partialorder %v343_v44, 0.0  ;;  %v585_v50 = vmul.f32 0.1, %v343_v44  ;;  %vm488_vm6 = vcmp.gt.f32.partialorder %v178_v47, 0.0  ;;  %v552_v51 = vmul.f32 0.1, %v178_v47 }
 0x101   :  { %vm520_vm7 = vcmp.gt.f32.partialorder %v338_v48, 0.0  ;;  %v584_v52 = vmul.f32 0.1, %v338_v48  ;;  %v617_v53 = vsel %vm489_vm4, %v183_v43, %v553_v49  ;;  %v193_v59 = vadd.f32 %v867_v55, %v1266_v24  ;;  %v187_v61 = vpop.f32.mrb[5].mxu0  ;;  %v347_v62 = vpop.f32.mrb[5].mxu1 }
 0x102   :  { %v649_v54 = vsel %vm521_vm5, %v343_v44, %v585_v50  ;;  %681 = vst [vmem:[%s1527_s3 + $0x18] sm:$0xff] %v617_v53  ;;  %v616_v57 = vsel %vm488_vm6, %v178_v47, %v552_v51  ;;  %v353_v60 = vadd.f32 %v915_v56, %v1266_v24  ;;  %v188_v63 = vadd.f32 %v1266_v24, %v187_v61 }
 0x103   :  { %713 = vst [vmem:[%s1527_s3 + $0x118] sm:$0xff] %v649_v54  ;;  %v648_v58 = vsel %vm520_vm7, %v338_v48, %v584_v52  ;;  %680 = vst [vmem:[%s1527_s3 + $0x10] sm:$0xff] %v616_v57  ;;  %v348_v0 = vadd.f32 %v1266_v24, %v347_v62  ;;  %v870_v1 = vpop.f32.mrb[6].mxu0  ;;  %v918_v2 = vpop.f32.mrb[6].mxu1  ;;  %vm491_vm8 = vcmp.gt.f32.partialorder %v193_v59, 0.0 }
 0x104   :  { %712 = vst [vmem:[%s1527_s3 + $0x110] sm:$0xff] %v648_v58  ;;  %v555_v3 = vmul.f32 0.1, %v193_v59  ;;  %vm523_vm9 = vcmp.gt.f32.partialorder %v353_v60, 0.0  ;;  %v587_v4 = vmul.f32 0.1, %v353_v60  ;;  %v203_v9 = vadd.f32 %v870_v1, %v1266_v24 }
 0x105   :  { %vm490_vm10 = vcmp.gt.f32.partialorder %v188_v63, 0.0  ;;  %v554_v5 = vmul.f32 0.1, %v188_v63  ;;  %vm522_vm11 = vcmp.gt.f32.partialorder %v348_v0, 0.0  ;;  %v586_v6 = vmul.f32 0.1, %v348_v0 }
 0x106   :  { %v619_v7 = vsel %vm491_vm8, %v193_v59, %v555_v3  ;;  %v651_v8 = vsel %vm523_vm9, %v353_v60, %v587_v4  ;;  %v363_v10 = vadd.f32 %v918_v2, %v1266_v24  ;;  %v197_v11 = vpop.f32.mrb[7].mxu0  ;;  %v357_v12 = vpop.f32.mrb[7].mxu1  ;;  %vm493_vm12 = vcmp.gt.f32.partialorder %v203_v9, 0.0 }
 0x107   :  { %683 = vst [vmem:[%s1527_s3 + $0x28] sm:$0xff] %v619_v7  ;;  %715 = vst [vmem:[%s1527_s3 + $0x128] sm:$0xff] %v651_v8  ;;  %v618_v13 = vsel %vm490_vm10, %v188_v63, %v554_v5  ;;  %v650_v14 = vsel %vm522_vm11, %v348_v0, %v586_v6  ;;  %v198_v15 = vadd.f32 %v1266_v24, %v197_v11  ;;  %v873_v17 = vpop.f32.mrb[8].mxu0  ;;  %v921_v18 = vpop.f32.mrb[8].mxu1  ;;  %v557_v19 = vmul.f32 0.1, %v203_v9 }
 0x108   :  { %v358_v16 = vadd.f32 %v1266_v24, %v357_v12  ;;  %682 = vst [vmem:[%s1527_s3 + $0x20] sm:$0xff] %v618_v13  ;;  %714 = vst [vmem:[%s1527_s3 + $0x120] sm:$0xff] %v650_v14  ;;  %vm525_vm13 = vcmp.gt.f32.partialorder %v363_v10, 0.0  ;;  %v589_v20 = vmul.f32 0.1, %v363_v10  ;;  %v213_v26 = vadd.f32 %v873_v17, %v1266_v24  ;;  %v207_v28 = vpop.f32.mrb[9].mxu0 }
 0x109   :  { %vm492_vm14 = vcmp.gt.f32.partialorder %v198_v15, 0.0  ;;  %v556_v21 = vmul.f32 0.1, %v198_v15  ;;  %v621_v23 = vsel %vm493_vm12, %v203_v9, %v557_v19  ;;  %v373_v27 = vadd.f32 %v921_v18, %v1266_v24  ;;  %v367_v29 = vpop.f32.mrb[9].mxu1 }
 0x10a   :  { %vm524_vm15 = vcmp.gt.f32.partialorder %v358_v16, 0.0  ;;  %v588_v22 = vmul.f32 0.1, %v358_v16  ;;  %v653_v25 = vsel %vm525_vm13, %v363_v10, %v589_v20  ;;  %685 = vst [vmem:[%s1527_s3 + $0x38] sm:$0xff] %v621_v23  ;;  %v208_v32 = vadd.f32 %v1266_v24, %v207_v28 }
 0x10b   :  { %717 = vst [vmem:[%s1527_s3 + $0x138] sm:$0xff] %v653_v25  ;;  %v620_v30 = vsel %vm492_vm14, %v198_v15, %v556_v21  ;;  %v368_v33 = vadd.f32 %v1266_v24, %v367_v29  ;;  %v876_v34 = vpop.f32.mrb[10].mxu0  ;;  %v924_v35 = vpop.f32.mrb[10].mxu1  ;;  %vm495_vm0 = vcmp.gt.f32.partialorder %v213_v26, 0.0  ;;  %v559_v36 = vmul.f32 0.1, %v213_v26 }
 0x10c   :  { %v652_v31 = vsel %vm524_vm15, %v358_v16, %v588_v22  ;;  %684 = vst [vmem:[%s1527_s3 + $0x30] sm:$0xff] %v620_v30  ;;  %vm527_vm1 = vcmp.gt.f32.partialorder %v373_v27, 0.0  ;;  %v591_v37 = vmul.f32 0.1, %v373_v27  ;;  %vm494_vm2 = vcmp.gt.f32.partialorder %v208_v32, 0.0  ;;  %v217_v44 = vpop.f32.mrb[11].mxu0 }
 0x10d   :  { %716 = vst [vmem:[%s1527_s3 + $0x130] sm:$0xff] %v652_v31  ;;  %v558_v38 = vmul.f32 0.1, %v208_v32  ;;  %vm526_vm3 = vcmp.gt.f32.partialorder %v368_v33, 0.0  ;;  %v590_v39 = vmul.f32 0.1, %v368_v33  ;;  %v623_v40 = vsel %vm495_vm0, %v213_v26, %v559_v36 }
 0x10e   :  { %v655_v41 = vsel %vm527_vm1, %v373_v27, %v591_v37  ;;  %v223_v42 = vadd.f32 %v876_v34, %v1266_v24  ;;  %v383_v43 = vadd.f32 %v924_v35, %v1266_v24  ;;  %v377_v45 = vpop.f32.mrb[11].mxu1  ;;  %687 = vst [vmem:[%s1527_s3 + $0x48] sm:$0xff] %v623_v40  ;;  %v218_v48 = vadd.f32 %v1266_v24, %v217_v44 }
 0x10f   :  { %719 = vst [vmem:[%s1527_s3 + $0x148] sm:$0xff] %v655_v41  ;;  %v622_v46 = vsel %vm494_vm2, %v208_v32, %v558_v38  ;;  %v654_v47 = vsel %vm526_vm3, %v368_v33, %v590_v39  ;;  %v378_v49 = vadd.f32 %v1266_v24, %v377_v45  ;;  %v879_v50 = vpop.f32.mrb[12].mxu0  ;;  %v927_v51 = vpop.f32.mrb[12].mxu1 }
 0x110   :  { %686 = vst [vmem:[%s1527_s3 + $0x40] sm:$0xff] %v622_v46  ;;  %718 = vst [vmem:[%s1527_s3 + $0x140] sm:$0xff] %v654_v47  ;;  %vm497_vm4 = vcmp.gt.f32.partialorder %v223_v42, 0.0  ;;  %v561_v52 = vmul.f32 0.1, %v223_v42  ;;  %vm529_vm5 = vcmp.gt.f32.partialorder %v383_v43, 0.0  ;;  %v233_v58 = vadd.f32 %v879_v50, %v1266_v24 }
 0x111   :  { %v593_v53 = vmul.f32 0.1, %v383_v43  ;;  %vm496_vm6 = vcmp.gt.f32.partialorder %v218_v48, 0.0  ;;  %v560_v54 = vmul.f32 0.1, %v218_v48  ;;  %vm528_vm7 = vcmp.gt.f32.partialorder %v378_v49, 0.0 }
 0x112   :  { %v592_v55 = vmul.f32 0.1, %v378_v49  ;;  %v625_v56 = vsel %vm497_vm4, %v223_v42, %v561_v52  ;;  %v393_v59 = vadd.f32 %v927_v51, %v1266_v24  ;;  %v227_v60 = vpop.f32.mrb[13].mxu0  ;;  %v387_v61 = vpop.f32.mrb[13].mxu1  ;;  %vm499_vm8 = vcmp.gt.f32.partialorder %v233_v58, 0.0 }
 0x113   :  { %v657_v57 = vsel %vm529_vm5, %v383_v43, %v593_v53  ;;  %689 = vst [vmem:[%s1527_s3 + $0x58] sm:$0xff] %v625_v56  ;;  %v624_v62 = vsel %vm496_vm6, %v218_v48, %v560_v54  ;;  %v228_v0 = vadd.f32 %v1266_v24, %v227_v60  ;;  %v388_v1 = vadd.f32 %v1266_v24, %v387_v61  ;;  %v882_v2 = vpop.f32.mrb[14].mxu0  ;;  %v930_v3 = vpop.f32.mrb[14].mxu1 }
 0x114   :  { %721 = vst [vmem:[%s1527_s3 + $0x158] sm:$0xff] %v657_v57  ;;  %v656_v63 = vsel %vm528_vm7, %v378_v49, %v592_v55  ;;  %688 = vst [vmem:[%s1527_s3 + $0x50] sm:$0xff] %v624_v62  ;;  %v563_v4 = vmul.f32 0.1, %v233_v58  ;;  %vm531_vm9 = vcmp.gt.f32.partialorder %v393_v59, 0.0  ;;  %v243_v10 = vadd.f32 %v882_v2, %v1266_v24  ;;  %v237_v12 = vpop.f32.mrb[15].mxu0 }
 0x115   :  { %720 = vst [vmem:[%s1527_s3 + $0x150] sm:$0xff] %v656_v63  ;;  %v595_v5 = vmul.f32 0.1, %v393_v59  ;;  %vm498_vm10 = vcmp.gt.f32.partialorder %v228_v0, 0.0  ;;  %v562_v6 = vmul.f32 0.1, %v228_v0  ;;  %v403_v11 = vadd.f32 %v930_v3, %v1266_v24 }
 0x116   :  { %vm530_vm11 = vcmp.gt.f32.partialorder %v388_v1, 0.0  ;;  %v594_v7 = vmul.f32 0.1, %v388_v1  ;;  %v627_v8 = vsel %vm499_vm8, %v233_v58, %v563_v4  ;;  %v397_v13 = vpop.f32.mrb[15].mxu1  ;;  %v238_v16 = vadd.f32 %v1266_v24, %v237_v12 }
 0x117   :  { %v659_v9 = vsel %vm531_vm9, %v393_v59, %v595_v5  ;;  %691 = vst [vmem:[%s1527_s3 + $0x68] sm:$0xff] %v627_v8  ;;  %v626_v14 = vsel %vm498_vm10, %v228_v0, %v562_v6  ;;  %v398_v17 = vadd.f32 %v1266_v24, %v397_v13  ;;  %v885_v18 = vpop.f32.mrb[16].mxu0  ;;  %v933_v19 = vpop.f32.mrb[16].mxu1  ;;  %vm501_vm12 = vcmp.gt.f32.partialorder %v243_v10, 0.0 }
 0x118   :  { %723 = vst [vmem:[%s1527_s3 + $0x168] sm:$0xff] %v659_v9  ;;  %v658_v15 = vsel %vm530_vm11, %v388_v1, %v594_v7  ;;  %690 = vst [vmem:[%s1527_s3 + $0x60] sm:$0xff] %v626_v14  ;;  %v565_v20 = vmul.f32 0.1, %v243_v10  ;;  %vm533_vm13 = vcmp.gt.f32.partialorder %v403_v11, 0.0  ;;  %vm500_vm14 = vcmp.gt.f32.partialorder %v238_v16, 0.0 }
 0x119   :  { %722 = vst [vmem:[%s1527_s3 + $0x160] sm:$0xff] %v658_v15  ;;  %v597_v21 = vmul.f32 0.1, %v403_v11  ;;  %v564_v22 = vmul.f32 0.1, %v238_v16  ;;  %vm532_vm15 = vcmp.gt.f32.partialorder %v398_v17, 0.0  ;;  %v253_v27 = vadd.f32 %v885_v18, %v1266_v24 }
 0x11a   :  { %v596_v23 = vmul.f32 0.1, %v398_v17  ;;  %v629_v25 = vsel %vm501_vm12, %v243_v10, %v565_v20  ;;  %v413_v28 = vadd.f32 %v933_v19, %v1266_v24  ;;  %v247_v29 = vpop.f32.mrb[17].mxu0  ;;  %v407_v30 = vpop.f32.mrb[17].mxu1 }
 0x11b   :  { %v661_v26 = vsel %vm533_vm13, %v403_v11, %v597_v21  ;;  %693 = vst [vmem:[%s1527_s3 + $0x78] sm:$0xff] %v629_v25  ;;  %v628_v31 = vsel %vm500_vm14, %v238_v16, %v564_v22  ;;  %v248_v33 = vadd.f32 %v1266_v24, %v247_v29  ;;  %v408_v34 = vadd.f32 %v1266_v24, %v407_v30  ;;  %v888_v35 = vpop.f32.mrb[18].mxu0  ;;  %v936_v36 = vpop.f32.mrb[18].mxu1 }
 0x11c   :  { %725 = vst [vmem:[%s1527_s3 + $0x178] sm:$0xff] %v661_v26  ;;  %v660_v32 = vsel %vm532_vm15, %v398_v17, %v596_v23  ;;  %692 = vst [vmem:[%s1527_s3 + $0x70] sm:$0xff] %v628_v31  ;;  %vm503_vm0 = vcmp.gt.f32.partialorder %v253_v27, 0.0  ;;  %v567_v37 = vmul.f32 0.1, %v253_v27  ;;  %vm535_vm1 = vcmp.gt.f32.partialorder %v413_v28, 0.0 }
 0x11d   :  { %724 = vst [vmem:[%s1527_s3 + $0x170] sm:$0xff] %v660_v32  ;;  %v599_v38 = vmul.f32 0.1, %v413_v28  ;;  %vm502_vm2 = vcmp.gt.f32.partialorder %v248_v33, 0.0  ;;  %v566_v39 = vmul.f32 0.1, %v248_v33  ;;  %v263_v43 = vadd.f32 %v888_v35, %v1266_v24 }
 0x11e   :  { %vm534_vm3 = vcmp.gt.f32.partialorder %v408_v34, 0.0  ;;  %v598_v40 = vmul.f32 0.1, %v408_v34  ;;  %v631_v41 = vsel %vm503_vm0, %v253_v27, %v567_v37  ;;  %v423_v44 = vadd.f32 %v936_v36, %v1266_v24  ;;  %v257_v45 = vpop.f32.mrb[19].mxu0  ;;  %v417_v46 = vpop.f32.mrb[19].mxu1 }
 0x11f   :  { %v663_v42 = vsel %vm535_vm1, %v413_v28, %v599_v38  ;;  %695 = vst [vmem:[%s1527_s3 + $0x88] sm:$0xff] %v631_v41  ;;  %v630_v47 = vsel %vm502_vm2, %v248_v33, %v566_v39  ;;  %v258_v49 = vadd.f32 %v1266_v24, %v257_v45  ;;  %v418_v50 = vadd.f32 %v1266_v24, %v417_v46  ;;  %v891_v51 = vpop.f32.mrb[20].mxu0  ;;  %v939_v52 = vpop.f32.mrb[20].mxu1 }
 0x120   :  { %727 = vst [vmem:[%s1527_s3 + $0x188] sm:$0xff] %v663_v42  ;;  %v662_v48 = vsel %vm534_vm3, %v408_v34, %v598_v40  ;;  %694 = vst [vmem:[%s1527_s3 + $0x80] sm:$0xff] %v630_v47  ;;  %vm505_vm4 = vcmp.gt.f32.partialorder %v263_v43, 0.0  ;;  %v569_v53 = vmul.f32 0.1, %v263_v43  ;;  %vm537_vm5 = vcmp.gt.f32.partialorder %v423_v44, 0.0 }
 0x121   :  { %726 = vst [vmem:[%s1527_s3 + $0x180] sm:$0xff] %v662_v48  ;;  %v601_v54 = vmul.f32 0.1, %v423_v44  ;;  %vm504_vm6 = vcmp.gt.f32.partialorder %v258_v49, 0.0  ;;  %v568_v55 = vmul.f32 0.1, %v258_v49  ;;  %v273_v59 = vadd.f32 %v891_v51, %v1266_v24 }
 0x122   :  { %vm536_vm7 = vcmp.gt.f32.partialorder %v418_v50, 0.0  ;;  %v600_v56 = vmul.f32 0.1, %v418_v50  ;;  %v633_v57 = vsel %vm505_vm4, %v263_v43, %v569_v53  ;;  %v433_v60 = vadd.f32 %v939_v52, %v1266_v24  ;;  %v267_v61 = vpop.f32.mrb[21].mxu0  ;;  %v427_v62 = vpop.f32.mrb[21].mxu1 }
 0x123   :  { %v665_v58 = vsel %vm537_vm5, %v423_v44, %v601_v54  ;;  %697 = vst [vmem:[%s1527_s3 + $0x98] sm:$0xff] %v633_v57  ;;  %v632_v63 = vsel %vm504_vm6, %v258_v49, %v568_v55  ;;  %v268_v1 = vadd.f32 %v1266_v24, %v267_v61  ;;  %v428_v2 = vadd.f32 %v1266_v24, %v427_v62  ;;  %v894_v3 = vpop.f32.mrb[22].mxu0  ;;  %v942_v4 = vpop.f32.mrb[22].mxu1 }
 0x124   :  { %729 = vst [vmem:[%s1527_s3 + $0x198] sm:$0xff] %v665_v58  ;;  %v664_v0 = vsel %vm536_vm7, %v418_v50, %v600_v56  ;;  %696 = vst [vmem:[%s1527_s3 + $0x90] sm:$0xff] %v632_v63  ;;  %vm507_vm8 = vcmp.gt.f32.partialorder %v273_v59, 0.0  ;;  %v571_v5 = vmul.f32 0.1, %v273_v59  ;;  %vm539_vm9 = vcmp.gt.f32.partialorder %v433_v60, 0.0 }
 0x125   :  { %728 = vst [vmem:[%s1527_s3 + $0x190] sm:$0xff] %v664_v0  ;;  %v603_v6 = vmul.f32 0.1, %v433_v60  ;;  %vm506_vm10 = vcmp.gt.f32.partialorder %v268_v1, 0.0  ;;  %v570_v7 = vmul.f32 0.1, %v268_v1  ;;  %v283_v11 = vadd.f32 %v894_v3, %v1266_v24 }
 0x126   :  { %vm538_vm11 = vcmp.gt.f32.partialorder %v428_v2, 0.0  ;;  %v602_v8 = vmul.f32 0.1, %v428_v2  ;;  %v635_v9 = vsel %vm507_vm8, %v273_v59, %v571_v5  ;;  %v443_v12 = vadd.f32 %v942_v4, %v1266_v24  ;;  %v277_v13 = vpop.f32.mrb[23].mxu0  ;;  %v437_v14 = vpop.f32.mrb[23].mxu1 }
 0x127   :  { %v667_v10 = vsel %vm539_vm9, %v433_v60, %v603_v6  ;;  %699 = vst [vmem:[%s1527_s3 + $0xa8] sm:$0xff] %v635_v9  ;;  %v634_v15 = vsel %vm506_vm10, %v268_v1, %v570_v7  ;;  %v278_v17 = vadd.f32 %v1266_v24, %v277_v13  ;;  %v438_v18 = vadd.f32 %v1266_v24, %v437_v14  ;;  %v897_v19 = vpop.f32.mrb[24].mxu0  ;;  %v945_v20 = vpop.f32.mrb[24].mxu1 }
 0x128   :  { %731 = vst [vmem:[%s1527_s3 + $0x1a8] sm:$0xff] %v667_v10  ;;  %v666_v16 = vsel %vm538_vm11, %v428_v2, %v602_v8  ;;  %698 = vst [vmem:[%s1527_s3 + $0xa0] sm:$0xff] %v634_v15  ;;  %vm509_vm12 = vcmp.gt.f32.partialorder %v283_v11, 0.0  ;;  %v573_v21 = vmul.f32 0.1, %v283_v11  ;;  %vm541_vm13 = vcmp.gt.f32.partialorder %v443_v12, 0.0 }
 0x129   :  { %730 = vst [vmem:[%s1527_s3 + $0x1a0] sm:$0xff] %v666_v16  ;;  %v605_v22 = vmul.f32 0.1, %v443_v12  ;;  %vm508_vm14 = vcmp.gt.f32.partialorder %v278_v17, 0.0  ;;  %v572_v23 = vmul.f32 0.1, %v278_v17  ;;  %v293_v28 = vadd.f32 %v897_v19, %v1266_v24 }
 0x12a   :  { %vm540_vm15 = vcmp.gt.f32.partialorder %v438_v18, 0.0  ;;  %v604_v25 = vmul.f32 0.1, %v438_v18  ;;  %v637_v26 = vsel %vm509_vm12, %v283_v11, %v573_v21  ;;  %v453_v29 = vadd.f32 %v945_v20, %v1266_v24  ;;  %v287_v30 = vpop.f32.mrb[25].mxu0  ;;  %v447_v31 = vpop.f32.mrb[25].mxu1 }
 0x12b   :  { %v669_v27 = vsel %vm541_vm13, %v443_v12, %v605_v22  ;;  %701 = vst [vmem:[%s1527_s3 + $0xb8] sm:$0xff] %v637_v26  ;;  %v636_v32 = vsel %vm508_vm14, %v278_v17, %v572_v23  ;;  %v288_v34 = vadd.f32 %v1266_v24, %v287_v30  ;;  %v448_v35 = vadd.f32 %v1266_v24, %v447_v31  ;;  %v900_v36 = vpop.f32.mrb[26].mxu0  ;;  %v948_v37 = vpop.f32.mrb[26].mxu1 }
 0x12c   :  { %733 = vst [vmem:[%s1527_s3 + $0x1b8] sm:$0xff] %v669_v27  ;;  %v668_v33 = vsel %vm540_vm15, %v438_v18, %v604_v25  ;;  %700 = vst [vmem:[%s1527_s3 + $0xb0] sm:$0xff] %v636_v32  ;;  %vm511_vm0 = vcmp.gt.f32.partialorder %v293_v28, 0.0  ;;  %v575_v38 = vmul.f32 0.1, %v293_v28  ;;  %vm543_vm1 = vcmp.gt.f32.partialorder %v453_v29, 0.0 }
 0x12d   :  { %732 = vst [vmem:[%s1527_s3 + $0x1b0] sm:$0xff] %v668_v33  ;;  %v607_v39 = vmul.f32 0.1, %v453_v29  ;;  %vm510_vm2 = vcmp.gt.f32.partialorder %v288_v34, 0.0  ;;  %v574_v40 = vmul.f32 0.1, %v288_v34  ;;  %v303_v44 = vadd.f32 %v900_v36, %v1266_v24 }
 0x12e   :  { %vm542_vm3 = vcmp.gt.f32.partialorder %v448_v35, 0.0  ;;  %v606_v41 = vmul.f32 0.1, %v448_v35  ;;  %v639_v42 = vsel %vm511_vm0, %v293_v28, %v575_v38  ;;  %v463_v45 = vadd.f32 %v948_v37, %v1266_v24  ;;  %v297_v46 = vpop.f32.mrb[27].mxu0  ;;  %v457_v47 = vpop.f32.mrb[27].mxu1 }
 0x12f   :  { %v671_v43 = vsel %vm543_vm1, %v453_v29, %v607_v39  ;;  %703 = vst [vmem:[%s1527_s3 + $0xc8] sm:$0xff] %v639_v42  ;;  %v638_v48 = vsel %vm510_vm2, %v288_v34, %v574_v40  ;;  %v298_v50 = vadd.f32 %v1266_v24, %v297_v46  ;;  %v458_v51 = vadd.f32 %v1266_v24, %v457_v47  ;;  %v903_v52 = vpop.f32.mrb[28].mxu0  ;;  %v951_v53 = vpop.f32.mrb[28].mxu1 }
 0x130   :  { %735 = vst [vmem:[%s1527_s3 + $0x1c8] sm:$0xff] %v671_v43  ;;  %v670_v49 = vsel %vm542_vm3, %v448_v35, %v606_v41  ;;  %702 = vst [vmem:[%s1527_s3 + $0xc0] sm:$0xff] %v638_v48  ;;  %vm513_vm4 = vcmp.gt.f32.partialorder %v303_v44, 0.0  ;;  %v577_v54 = vmul.f32 0.1, %v303_v44  ;;  %vm545_vm5 = vcmp.gt.f32.partialorder %v463_v45, 0.0 }
 0x131   :  { %734 = vst [vmem:[%s1527_s3 + $0x1c0] sm:$0xff] %v670_v49  ;;  %v609_v55 = vmul.f32 0.1, %v463_v45  ;;  %vm512_vm6 = vcmp.gt.f32.partialorder %v298_v50, 0.0  ;;  %v576_v56 = vmul.f32 0.1, %v298_v50  ;;  %v313_v60 = vadd.f32 %v903_v52, %v1266_v24 }
 0x132   :  { %vm544_vm7 = vcmp.gt.f32.partialorder %v458_v51, 0.0  ;;  %v608_v57 = vmul.f32 0.1, %v458_v51  ;;  %v641_v58 = vsel %vm513_vm4, %v303_v44, %v577_v54  ;;  %v473_v61 = vadd.f32 %v951_v53, %v1266_v24  ;;  %v307_v62 = vpop.f32.mrb[29].mxu0  ;;  %v467_v63 = vpop.f32.mrb[29].mxu1 }
 0x133   :  { %v673_v59 = vsel %vm545_vm5, %v463_v45, %v609_v55  ;;  %705 = vst [vmem:[%s1527_s3 + $0xd8] sm:$0xff] %v641_v58  ;;  %v640_v0 = vsel %vm512_vm6, %v298_v50, %v576_v56  ;;  %v308_v2 = vadd.f32 %v1266_v24, %v307_v62  ;;  %v468_v3 = vadd.f32 %v1266_v24, %v467_v63  ;;  %v906_v4 = vpop.f32.mrb[30].mxu0  ;;  %v954_v5 = vpop.f32.mrb[30].mxu1 }
 0x134   :  { %737 = vst [vmem:[%s1527_s3 + $0x1d8] sm:$0xff] %v673_v59  ;;  %v672_v1 = vsel %vm544_vm7, %v458_v51, %v608_v57  ;;  %704 = vst [vmem:[%s1527_s3 + $0xd0] sm:$0xff] %v640_v0  ;;  %vm515_vm8 = vcmp.gt.f32.partialorder %v313_v60, 0.0  ;;  %v579_v6 = vmul.f32 0.1, %v313_v60  ;;  %vm547_vm9 = vcmp.gt.f32.partialorder %v473_v61, 0.0 }
 0x135   :  { %736 = vst [vmem:[%s1527_s3 + $0x1d0] sm:$0xff] %v672_v1  ;;  %v611_v7 = vmul.f32 0.1, %v473_v61  ;;  %vm514_vm10 = vcmp.gt.f32.partialorder %v308_v2, 0.0  ;;  %v578_v8 = vmul.f32 0.1, %v308_v2  ;;  %v323_v12 = vadd.f32 %v906_v4, %v1266_v24 }
 0x136   :  { %vm546_vm11 = vcmp.gt.f32.partialorder %v468_v3, 0.0  ;;  %v610_v9 = vmul.f32 0.1, %v468_v3  ;;  %v643_v10 = vsel %vm515_vm8, %v313_v60, %v579_v6  ;;  %v483_v13 = vadd.f32 %v954_v5, %v1266_v24  ;;  %v317_v14 = vpop.f32.mrb[31].mxu0  ;;  %v477_v15 = vpop.f32.mrb[31].mxu1 }
 0x137   :  { %v675_v11 = vsel %vm547_vm9, %v473_v61, %v611_v7  ;;  %707 = vst [vmem:[%s1527_s3 + $0xe8] sm:$0xff] %v643_v10  ;;  %v642_v16 = vsel %vm514_vm10, %v308_v2, %v578_v8  ;;  %v318_v18 = vadd.f32 %v1266_v24, %v317_v14  ;;  %v478_v19 = vadd.f32 %v1266_v24, %v477_v15 }
 0x138   :  { %739 = vst [vmem:[%s1527_s3 + $0x1e8] sm:$0xff] %v675_v11  ;;  %v674_v17 = vsel %vm546_vm11, %v468_v3, %v610_v9  ;;  %706 = vst [vmem:[%s1527_s3 + $0xe0] sm:$0xff] %v642_v16  ;;  %vm517_vm12 = vcmp.gt.f32.partialorder %v323_v12, 0.0  ;;  %v581_v20 = vmul.f32 0.1, %v323_v12  ;;  %vm549_vm13 = vcmp.gt.f32.partialorder %v483_v13, 0.0 }
 0x139   :  { %738 = vst [vmem:[%s1527_s3 + $0x1e0] sm:$0xff] %v674_v17  ;;  %v613_v21 = vmul.f32 0.1, %v483_v13  ;;  %vm516_vm14 = vcmp.gt.f32.partialorder %v318_v18, 0.0  ;;  %v580_v22 = vmul.f32 0.1, %v318_v18 }
 0x13a   :  { %vm548_vm15 = vcmp.gt.f32.partialorder %v478_v19, 0.0  ;;  %v612_v23 = vmul.f32 0.1, %v478_v19  ;;  %v645_v25 = vsel %vm517_vm12, %v323_v12, %v581_v20 }
 0x13b   :  { %v677_v26 = vsel %vm549_vm13, %v483_v13, %v613_v21  ;;  %709 = vst [vmem:[%s1527_s3 + $0xf8] sm:$0xff] %v645_v25  ;;  %v644_v24 = vsel %vm516_vm14, %v318_v18, %v580_v22 }
 0x13c   :  { %741 = vst [vmem:[%s1527_s3 + $0x1f8] sm:$0xff] %v677_v26  ;;  %v676_v27 = vsel %vm548_vm15, %v478_v19, %v612_v23  ;;  %708 = vst [vmem:[%s1527_s3 + $0xf0] sm:$0xff] %v644_v24 }
 0x13d   :  { %740 = vst [vmem:[%s1527_s3 + $0x1f0] sm:$0xff] %v676_v27 }

// kernel: _lambda_.8
= control target key start
LH: loop header
LB: loop body
LE: loop exit
PB: predicated region body
PF: predicated region fallthrough
CT: control target
= control target key end

     0   :  { %s588_s1 = inlined_call_operand.vmem [shape: f32[128,128], index: 1, kind: input, shape index: {}]   ;;  %s589_s0 = inlined_call_operand.vmem [shape: f32[128,128], index: 0, kind: input, shape index: {}]   ;;  %s590_s2 = inlined_call_operand.vmem [shape: f32[1,128], index: 2, kind: input, shape index: {}]   ;;  %s591_s3 = inlined_call_operand.vmem [shape: f32[128,128], index: 3, kind: output, shape index: {}]  }
   0x1   :  { %v30_v0 = vld [vmem:[%s588_s1] sm:$0xff]  ;;  %v31_v1 = vld [vmem:[%s588_s1 + $0x8] sm:$0xff]  ;;  %v32_v2 = vld [vmem:[%s588_s1 + $0x10] sm:$0xff] }
   0x2   :  { %v355_v3 = vpack.c.bf16 %v31_v1, %v30_v0  ;;  %v33_v4 = vld [vmem:[%s588_s1 + $0x18] sm:$0xff]  ;;  %v34_v6 = vld [vmem:[%s588_s1 + $0x20] sm:$0xff]  ;;  %v35_v7 = vld [vmem:[%s588_s1 + $0x28] sm:$0xff] }
   0x3   :  { %v359_v5 = vpack.c.bf16 %v33_v4, %v32_v2  ;;  %v363_v8 = vpack.c.bf16 %v35_v7, %v34_v6  ;;  %v14_v9 = vld [vmem:[%s589_s0] sm:$0xff]  ;;  %v36_v11 = vld [vmem:[%s588_s1 + $0x30] sm:$0xff]  ;;  %v37_v12 = vld [vmem:[%s588_s1 + $0x38] sm:$0xff] }
   0x4   :  { %356 = vmatprep.subr.bf16.mxu0 %v355_v3  ;;  %387 = vmatprep.subr.bf16.mxu1 %v355_v3  ;;  %v22_v10 = vld [vmem:[%s589_s0 + $0x40] sm:$0xff]  ;;  %v367_v13 = vpack.c.bf16 %v37_v12, %v36_v11  ;;  %v39_v15 = vld [vmem:[%s588_s1 + $0x48] sm:$0xff]  ;;  %v40_v17 = vld [vmem:[%s588_s1 + $0x50] sm:$0xff] }
   0x5   :  { %358 = vmatpush3.bf16.msra.mxu0 %v355_v3  ;;  %395 = vmatpush3.bf16.msra.mxu1 %v355_v3  ;;  %v38_v14 = vld [vmem:[%s588_s1 + $0x40] sm:$0xff]  ;;  %v41_v18 = vld [vmem:[%s588_s1 + $0x58] sm:$0xff]  ;;  %v43_v21 = vld [vmem:[%s588_s1 + $0x68] sm:$0xff] }
   0x6   :  { %360 = vmatprep.subr.bf16.mxu0 %v359_v5  ;;  %388 = vmatprep.subr.bf16.mxu1 %v359_v5  ;;  %v371_v16 = vpack.c.bf16 %v39_v15, %v38_v14  ;;  %v375_v19 = vpack.c.bf16 %v41_v18, %v40_v17  ;;  %v42_v20 = vld [vmem:[%s588_s1 + $0x60] sm:$0xff]  ;;  %v44_v23 = vld [vmem:[%s588_s1 + $0x70] sm:$0xff]  ;;  %v45_v24 = vld [vmem:[%s588_s1 + $0x78] sm:$0xff] }
   0x7   :  { %331 = vmatprep.mubr.f32.mxu0 %v14_v9  ;;  %343 = vmatprep.mubr.f32.mxu1 %v22_v10  ;;  %v379_v22 = vpack.c.bf16 %v43_v21, %v42_v20  ;;  %v383_v25 = vpack.c.bf16 %v45_v24, %v44_v23  ;;  %v15_v26 = vld [vmem:[%s589_s0 + $0x8] sm:$0xff]  ;;  %v16_v28 = vld [vmem:[%s589_s0 + $0x10] sm:$0xff]  ;;  %v17_v30 = vld [vmem:[%s589_s0 + $0x18] sm:$0xff] }
   0x8   :  { %v23_v27 = vld [vmem:[%s589_s0 + $0x48] sm:$0xff]  ;;  %v24_v29 = vld [vmem:[%s589_s0 + $0x50] sm:$0xff]  ;;  %v25_v31 = vld [vmem:[%s589_s0 + $0x58] sm:$0xff] }
   0x9   :  { %362 = vmatpush3.bf16.msra.mxu0 %v359_v5  ;;  %396 = vmatpush3.bf16.msra.mxu1 %v359_v5  ;;  %v18_v32 = vld [vmem:[%s589_s0 + $0x20] sm:$0xff]  ;;  %v19_v34 = vld [vmem:[%s589_s0 + $0x28] sm:$0xff]  ;;  %v20_v36 = vld [vmem:[%s589_s0 + $0x30] sm:$0xff] }
   0xa   :  { %364 = vmatprep.subr.bf16.mxu0 %v363_v8  ;;  %389 = vmatprep.subr.bf16.mxu1 %v363_v8  ;;  %v26_v33 = vld [vmem:[%s589_s0 + $0x60] sm:$0xff]  ;;  %v27_v35 = vld [vmem:[%s589_s0 + $0x68] sm:$0xff]  ;;  %v28_v37 = vld [vmem:[%s589_s0 + $0x70] sm:$0xff] }
   0xb   :  { %v21_v38 = vld [vmem:[%s589_s0 + $0x38] sm:$0xff]  ;;  %v522_v40 = vld [vmem:[%s590_s2] ss:$0 sm:$0xff] }
   0xc   :  { %v29_v39 = vld [vmem:[%s589_s0 + $0x78] sm:$0xff] }
   0xd   :  { %366 = vmatpush3.bf16.msra.mxu0 %v363_v8  ;;  %397 = vmatpush3.bf16.msra.mxu1 %v363_v8 }
   0xe   :  { %368 = vmatprep.subr.bf16.mxu0 %v367_v13  ;;  %390 = vmatprep.subr.bf16.mxu1 %v367_v13 }
  0x11   :  { %370 = vmatpush3.bf16.msra.mxu0 %v367_v13  ;;  %398 = vmatpush3.bf16.msra.mxu1 %v367_v13 }
  0x12   :  { %372 = vmatprep.subr.bf16.mxu0 %v371_v16  ;;  %391 = vmatprep.subr.bf16.mxu1 %v371_v16 }
  0x15   :  { %374 = vmatpush3.bf16.msra.mxu0 %v371_v16  ;;  %399 = vmatpush3.bf16.msra.mxu1 %v371_v16 }
  0x16   :  { %376 = vmatprep.subr.bf16.mxu0 %v375_v19  ;;  %392 = vmatprep.subr.bf16.mxu1 %v375_v19 }
  0x19   :  { %378 = vmatpush3.bf16.msra.mxu0 %v375_v19  ;;  %400 = vmatpush3.bf16.msra.mxu1 %v375_v19 }
  0x1a   :  { %380 = vmatprep.subr.bf16.mxu0 %v379_v22  ;;  %393 = vmatprep.subr.bf16.mxu1 %v379_v22 }
  0x1d   :  { %382 = vmatpush3.bf16.msra.mxu0 %v379_v22  ;;  %401 = vmatpush3.bf16.msra.mxu1 %v379_v22 }
  0x1e   :  { %384 = vmatprep.subr.bf16.mxu0 %v383_v25  ;;  %394 = vmatprep.subr.bf16.mxu1 %v383_v25 }
  0x21   :  { %386 = vmatpush3.bf16.msra.mxu0 %v383_v25  ;;  %402 = vmatpush3.bf16.msra.mxu1 %v383_v25 }
  0x24   :  { %332 = vmatmul.mubr.f32.vlgmr.msra.gmra.mrb[0].mxu0 %v15_v26  ;;  %344 = vmatmul.mubr.f32.vlgmr.msra.gmra.mrb[0].mxu1 %v23_v27 }
  0x25   :  { %334 = vmatprep.mubr.f32.mxu0 %v16_v28  ;;  %346 = vmatprep.mubr.f32.mxu1 %v24_v29 }
  0x28   :  { %335 = vmatmul.mubr.f32.gmra.mrb[2].mxu0 %v17_v30  ;;  %347 = vmatmul.mubr.f32.gmra.mrb[2].mxu1 %v25_v31 }
  0x29   :  { %337 = vmatprep.mubr.f32.mxu0 %v18_v32  ;;  %349 = vmatprep.mubr.f32.mxu1 %v26_v33 }
  0x2c   :  { %338 = vmatmul.mubr.f32.gmra.mrb[4].mxu0 %v19_v34  ;;  %350 = vmatmul.mubr.f32.gmra.mrb[4].mxu1 %v27_v35 }
  0x2d   :  { %340 = vmatprep.mubr.f32.mxu0 %v20_v36  ;;  %352 = vmatprep.mubr.f32.mxu1 %v28_v37 }
  0x30   :  { %341 = vmatmul.mubr.f32.gmra.mrb[6].mxu0 %v21_v38  ;;  %353 = vmatmul.mubr.f32.gmra.mrb[6].mxu1 %v29_v39 }
  0xf7   :  { %v333_v41 = vpop.f32.mrb[0].mxu0  ;;  %v345_v42 = vpop.f32.mrb[0].mxu1 }
  0xf8   :  { %v125_v43 = vadd.f32 %v333_v41, %v522_v40  ;;  %v165_v44 = vadd.f32 %v345_v42, %v522_v40  ;;  %v119_v45 = vpop.f32.mrb[1].mxu0  ;;  %v159_v46 = vpop.f32.mrb[1].mxu1 }
  0xf9   :  { %v120_v47 = vadd.f32 %v522_v40, %v119_v45  ;;  %v160_v48 = vadd.f32 %v522_v40, %v159_v46 }
  0xfa   :  { %vm199_vm0 = vcmp.gt.f32.partialorder %v125_v43, 0.0  ;;  %v215_v49 = vmul.f32 0.1, %v125_v43  ;;  %vm207_vm1 = vcmp.gt.f32.partialorder %v165_v44, 0.0  ;;  %v223_v50 = vmul.f32 0.1, %v165_v44 }
  0xfb   :  { %vm198_vm2 = vcmp.gt.f32.partialorder %v120_v47, 0.0  ;;  %v214_v51 = vmul.f32 0.1, %v120_v47  ;;  %vm206_vm3 = vcmp.gt.f32.partialorder %v160_v48, 0.0  ;;  %v222_v52 = vmul.f32 0.1, %v160_v48 }
  0xfc   :  { %v231_v53 = vsel %vm199_vm0, %v125_v43, %v215_v49  ;;  %v239_v54 = vsel %vm207_vm1, %v165_v44, %v223_v50  ;;  %v336_v55 = vpop.f32.mrb[2].mxu0  ;;  %v348_v56 = vpop.f32.mrb[2].mxu1 }
  0xfd   :  { %247 = vst [vmem:[%s591_s3 + $0x8] sm:$0xff] %v231_v53  ;;  %255 = vst [vmem:[%s591_s3 + $0x48] sm:$0xff] %v239_v54  ;;  %v230_v57 = vsel %vm198_vm2, %v120_v47, %v214_v51  ;;  %v238_v58 = vsel %vm206_vm3, %v160_v48, %v222_v52  ;;  %v135_v59 = vadd.f32 %v336_v55, %v522_v40  ;;  %v129_v61 = vpop.f32.mrb[3].mxu0  ;;  %v169_v62 = vpop.f32.mrb[3].mxu1 }
  0xfe   :  { %v175_v60 = vadd.f32 %v348_v56, %v522_v40  ;;  %246 = vst [vmem:[%s591_s3] sm:$0xff] %v230_v57  ;;  %254 = vst [vmem:[%s591_s3 + $0x40] sm:$0xff] %v238_v58  ;;  %v130_v63 = vadd.f32 %v522_v40, %v129_v61  ;;  %v170_v0 = vadd.f32 %v522_v40, %v169_v62 }
  0xff   :  { %vm201_vm4 = vcmp.gt.f32.partialorder %v135_v59, 0.0  ;;  %v217_v1 = vmul.f32 0.1, %v135_v59  ;;  %v339_v7 = vpop.f32.mrb[4].mxu0  ;;  %v351_v8 = vpop.f32.mrb[4].mxu1 }
 0x100   :  { %vm209_vm5 = vcmp.gt.f32.partialorder %v175_v60, 0.0  ;;  %v225_v2 = vmul.f32 0.1, %v175_v60  ;;  %vm200_vm6 = vcmp.gt.f32.partialorder %v130_v63, 0.0  ;;  %v216_v3 = vmul.f32 0.1, %v130_v63 }
 0x101   :  { %vm208_vm7 = vcmp.gt.f32.partialorder %v170_v0, 0.0  ;;  %v224_v4 = vmul.f32 0.1, %v170_v0  ;;  %v233_v5 = vsel %vm201_vm4, %v135_v59, %v217_v1  ;;  %v145_v11 = vadd.f32 %v339_v7, %v522_v40  ;;  %v139_v13 = vpop.f32.mrb[5].mxu0  ;;  %v179_v14 = vpop.f32.mrb[5].mxu1 }
 0x102   :  { %v241_v6 = vsel %vm209_vm5, %v175_v60, %v225_v2  ;;  %249 = vst [vmem:[%s591_s3 + $0x18] sm:$0xff] %v233_v5  ;;  %v232_v9 = vsel %vm200_vm6, %v130_v63, %v216_v3  ;;  %v185_v12 = vadd.f32 %v351_v8, %v522_v40  ;;  %v140_v15 = vadd.f32 %v522_v40, %v139_v13 }
 0x103   :  { %257 = vst [vmem:[%s591_s3 + $0x58] sm:$0xff] %v241_v6  ;;  %v240_v10 = vsel %vm208_vm7, %v170_v0, %v224_v4  ;;  %248 = vst [vmem:[%s591_s3 + $0x10] sm:$0xff] %v232_v9  ;;  %v180_v16 = vadd.f32 %v522_v40, %v179_v14  ;;  %v342_v17 = vpop.f32.mrb[6].mxu0  ;;  %v354_v18 = vpop.f32.mrb[6].mxu1  ;;  %vm203_vm8 = vcmp.gt.f32.partialorder %v145_v11, 0.0 }
 0x104   :  { %256 = vst [vmem:[%s591_s3 + $0x50] sm:$0xff] %v240_v10  ;;  %v219_v19 = vmul.f32 0.1, %v145_v11  ;;  %vm211_vm9 = vcmp.gt.f32.partialorder %v185_v12, 0.0  ;;  %v227_v20 = vmul.f32 0.1, %v185_v12  ;;  %v155_v25 = vadd.f32 %v342_v17, %v522_v40 }
 0x105   :  { %vm202_vm10 = vcmp.gt.f32.partialorder %v140_v15, 0.0  ;;  %v218_v21 = vmul.f32 0.1, %v140_v15  ;;  %vm210_vm11 = vcmp.gt.f32.partialorder %v180_v16, 0.0  ;;  %v226_v22 = vmul.f32 0.1, %v180_v16 }
 0x106   :  { %v235_v23 = vsel %vm203_vm8, %v145_v11, %v219_v19  ;;  %v243_v24 = vsel %vm211_vm9, %v185_v12, %v227_v20  ;;  %v195_v26 = vadd.f32 %v354_v18, %v522_v40  ;;  %v149_v27 = vpop.f32.mrb[7].mxu0  ;;  %v189_v28 = vpop.f32.mrb[7].mxu1  ;;  %vm205_vm12 = vcmp.gt.f32.partialorder %v155_v25, 0.0 }
 0x107   :  { %251 = vst [vmem:[%s591_s3 + $0x28] sm:$0xff] %v235_v23  ;;  %259 = vst [vmem:[%s591_s3 + $0x68] sm:$0xff] %v243_v24  ;;  %v234_v29 = vsel %vm202_vm10, %v140_v15, %v218_v21  ;;  %v242_v30 = vsel %vm210_vm11, %v180_v16, %v226_v22  ;;  %v150_v31 = vadd.f32 %v522_v40, %v149_v27  ;;  %v221_v33 = vmul.f32 0.1, %v155_v25 }
 0x108   :  { %v190_v32 = vadd.f32 %v522_v40, %v189_v28  ;;  %250 = vst [vmem:[%s591_s3 + $0x20] sm:$0xff] %v234_v29  ;;  %258 = vst [vmem:[%s591_s3 + $0x60] sm:$0xff] %v242_v30  ;;  %vm213_vm13 = vcmp.gt.f32.partialorder %v195_v26, 0.0  ;;  %v229_v34 = vmul.f32 0.1, %v195_v26 }
 0x109   :  { %vm204_vm14 = vcmp.gt.f32.partialorder %v150_v31, 0.0  ;;  %v220_v35 = vmul.f32 0.1, %v150_v31  ;;  %v237_v37 = vsel %vm205_vm12, %v155_v25, %v221_v33 }
 0x10a   :  { %vm212_vm15 = vcmp.gt.f32.partialorder %v190_v32, 0.0  ;;  %v228_v36 = vmul.f32 0.1, %v190_v32  ;;  %v245_v38 = vsel %vm213_vm13, %v195_v26, %v229_v34  ;;  %253 = vst [vmem:[%s591_s3 + $0x38] sm:$0xff] %v237_v37 }
 0x10b   :  { %261 = vst [vmem:[%s591_s3 + $0x78] sm:$0xff] %v245_v38  ;;  %v236_v39 = vsel %vm204_vm14, %v150_v31, %v220_v35 }
 0x10c   :  { %v244_v40 = vsel %vm212_vm15, %v190_v32, %v228_v36  ;;  %252 = vst [vmem:[%s591_s3 + $0x30] sm:$0xff] %v236_v39 }
 0x10d   :  { %260 = vst [vmem:[%s591_s3 + $0x70] sm:$0xff] %v244_v40 }

// kernel: _lambda_.11
= control target key start
LH: loop header
LB: loop body
LE: loop exit
PB: predicated region body
PF: predicated region fallthrough
CT: control target
= control target key end

     0   :  { %v205_v40 = vlaneseq  ;;  %v898_v45 = vmov 0   ;;  %s1460_s1 = inlined_call_operand.vmem [shape: f32[128,128], index: 1, kind: input, shape index: {}]   ;;  %s1461_s0 = inlined_call_operand.vmem [shape: f32[128,128], index: 0, kind: input, shape index: {}]   ;;  %s1462_s3 = inlined_call_operand.vmem [shape: s32[1,128], index: 3, kind: input, shape index: {}]   ;;  %s1463_s2 = inlined_call_operand.vmem [shape: f32[1,128], index: 2, kind: input, shape index: {}]   ;;  %s1464_s4 = inlined_call_operand.vmem [shape: f32[1,128], index: 4, kind: input, shape index: {}]   ;;  %s1465_s5 = inlined_call_operand.vmem [shape: f32[128,128], index: 5, kind: output, shape index: {}]  }
   0x1   :  { %v36_v0 = vld [vmem:[%s1460_s1] sm:$0xff]  ;;  %v37_v1 = vld [vmem:[%s1460_s1 + $0x8] sm:$0xff]  ;;  %v38_v2 = vld [vmem:[%s1460_s1 + $0x10] sm:$0xff] }
   0x2   :  { %v753_v3 = vpack.c.bf16 %v37_v1, %v36_v0  ;;  %v39_v4 = vld [vmem:[%s1460_s1 + $0x18] sm:$0xff]  ;;  %v40_v6 = vld [vmem:[%s1460_s1 + $0x20] sm:$0xff]  ;;  %v41_v7 = vld [vmem:[%s1460_s1 + $0x28] sm:$0xff]  ;;  %v1025_v41 = vshrl.u32 %v205_v40, 7 }
   0x3   :  { %v757_v5 = vpack.c.bf16 %v39_v4, %v38_v2  ;;  %v761_v8 = vpack.c.bf16 %v41_v7, %v40_v6  ;;  %v20_v9 = vld [vmem:[%s1461_s0] sm:$0xff]  ;;  %v42_v11 = vld [vmem:[%s1460_s1 + $0x30] sm:$0xff]  ;;  %v43_v12 = vld [vmem:[%s1460_s1 + $0x38] sm:$0xff] }
   0x4   :  { %754 = vmatprep.subr.bf16.mxu0 %v753_v3  ;;  %785 = vmatprep.subr.bf16.mxu1 %v753_v3  ;;  %v28_v10 = vld [vmem:[%s1461_s0 + $0x40] sm:$0xff]  ;;  %v765_v13 = vpack.c.bf16 %v43_v12, %v42_v11  ;;  %v45_v15 = vld [vmem:[%s1460_s1 + $0x48] sm:$0xff]  ;;  %v46_v17 = vld [vmem:[%s1460_s1 + $0x50] sm:$0xff]  ;;  %v207_v42 = vadd.s32 8, %v1025_v41  ;;  %v215_v47 = vadd.s32 72, %v1025_v41  ;;  %v1034_v48 = vsub.s32 0, %v1025_v41 }
   0x5   :  { %756 = vmatpush3.bf16.msra.mxu0 %v753_v3  ;;  %793 = vmatpush3.bf16.msra.mxu1 %v753_v3  ;;  %v44_v14 = vld [vmem:[%s1460_s1 + $0x40] sm:$0xff]  ;;  %v47_v18 = vld [vmem:[%s1460_s1 + $0x58] sm:$0xff]  ;;  %v49_v21 = vld [vmem:[%s1460_s1 + $0x68] sm:$0xff]  ;;  %v214_v58 = vadd.s32 64, %v1025_v41  ;;  %v209_v62 = vadd.s32 24, %v1025_v41  ;;  %v239_v63 = vand.u32 63, %v1025_v41 }
   0x6   :  { %758 = vmatprep.subr.bf16.mxu0 %v757_v5  ;;  %786 = vmatprep.subr.bf16.mxu1 %v757_v5  ;;  %v769_v16 = vpack.c.bf16 %v45_v15, %v44_v14  ;;  %v773_v19 = vpack.c.bf16 %v47_v18, %v46_v17  ;;  %v48_v20 = vld [vmem:[%s1460_s1 + $0x60] sm:$0xff]  ;;  %v50_v23 = vld [vmem:[%s1460_s1 + $0x70] sm:$0xff]  ;;  %v51_v24 = vld [vmem:[%s1460_s1 + $0x78] sm:$0xff]  ;;  %v240_v44 = vand.u32 63, %v207_v42  ;;  %v248_v54 = vand.u32 63, %v215_v47 }
   0x7   :  { %729 = vmatprep.mubr.f32.mxu0 %v20_v9  ;;  %741 = vmatprep.mubr.f32.mxu1 %v28_v10  ;;  %v777_v22 = vpack.c.bf16 %v49_v21, %v48_v20  ;;  %v781_v25 = vpack.c.bf16 %v51_v24, %v50_v23  ;;  %v21_v26 = vld [vmem:[%s1461_s0 + $0x8] sm:$0xff]  ;;  %v22_v28 = vld [vmem:[%s1461_s0 + $0x10] sm:$0xff]  ;;  %v23_v30 = vld [vmem:[%s1461_s0 + $0x18] sm:$0xff]  ;;  %v217_v1 = vadd.s32 88, %v1025_v41  ;;  %v247_v4 = vand.u32 63, %v214_v58 }
   0x8   :  { %v29_v27 = vld [vmem:[%s1461_s0 + $0x48] sm:$0xff]  ;;  %v30_v29 = vld [vmem:[%s1461_s0 + $0x50] sm:$0xff]  ;;  %v31_v31 = vld [vmem:[%s1461_s0 + $0x58] sm:$0xff]  ;;  %v256_v50 = vshra.s32 %v240_v44, 3  ;;  %v288_v51 = vand.u32 7, %v240_v44  ;;  %v264_v60 = vshra.s32 %v248_v54, 3 }
   0x9   :  { %760 = vmatpush3.bf16.msra.mxu0 %v757_v5  ;;  %794 = vmatpush3.bf16.msra.mxu1 %v757_v5  ;;  %v24_v32 = vld [vmem:[%s1461_s0 + $0x20] sm:$0xff]  ;;  %v25_v34 = vld [vmem:[%s1461_s0 + $0x28] sm:$0xff]  ;;  %v26_v36 = vld [vmem:[%s1461_s0 + $0x30] sm:$0xff]  ;;  %v296_v61 = vand.u32 7, %v248_v54  ;;  %v208_v5 = vadd.s32 16, %v1025_v41  ;;  %v216_v9 = vadd.s32 80, %v1025_v41 }
   0xa   :  { %762 = vmatprep.subr.bf16.mxu0 %v761_v8  ;;  %787 = vmatprep.subr.bf16.mxu1 %v761_v8  ;;  %v32_v33 = vld [vmem:[%s1461_s0 + $0x60] sm:$0xff]  ;;  %v33_v35 = vld [vmem:[%s1461_s0 + $0x68] sm:$0xff]  ;;  %v34_v37 = vld [vmem:[%s1461_s0 + $0x70] sm:$0xff]  ;;  %v272_v55 = vcvt.s32.f32 %v256_v50  ;;  %v304_v56 = vcvt.s32.f32 %v288_v51  ;;  %v280_v6 = vcvt.s32.f32 %v264_v60  ;;  %v255_v10 = vshra.s32 %v239_v63, 3 }
   0xb   :  { %v27_v38 = vld [vmem:[%s1461_s0 + $0x38] sm:$0xff]  ;;  %v319_v43 = vld [vmem:[%s1462_s3] sm:$0x1]  ;;  %v312_v7 = vcvt.s32.f32 %v296_v61  ;;  %v287_v11 = vand.u32 7, %v239_v63  ;;  %v263_v15 = vshra.s32 %v247_v4, 3  ;;  %v241_v17 = vand.u32 63, %v208_v5 }
   0xc   :  { %v35_v39 = vld [vmem:[%s1461_s0 + $0x78] sm:$0xff]  ;;  %vm321_vm0 = vcmp.eq.s32.totalorder %v319_v43, 0  ;;  %vm322_vm1 = vcmp.eq.s32.totalorder %v319_v43, 1  ;;  %vm323_vm2 = vcmp.eq.s32.totalorder %v319_v43, 2  ;;  %v249_v21 = vand.u32 63, %v216_v9 }
   0xd   :  { %764 = vmatpush3.bf16.msra.mxu0 %v761_v8  ;;  %795 = vmatpush3.bf16.msra.mxu1 %v761_v8  ;;  %v420_v46 = vsel %vm321_vm0, 1, %v898_v45  ;;  %v442_v49 = vsel %vm322_vm1, 1, %v898_v45  ;;  %v512_v0 = vsel %vm323_vm2, 1, %v898_v45  ;;  %v242_v8 = vand.u32 63, %v209_v62  ;;  %vm588_vm5 = vmor %vm321_vm0, %vm322_vm1 }
   0xe   :  { %766 = vmatprep.subr.bf16.mxu0 %v765_v13  ;;  %788 = vmatprep.subr.bf16.mxu1 %v765_v13  ;;  %v424_v52 = vrot.slane %v420_v46, %v1034_v48  ;;  %v446_v53 = vrot.slane %v442_v49, %v1034_v48  ;;  %v516_v12 = vrot.slane %v512_v0, %v1034_v48  ;;  %v303_v23 = vcvt.s32.f32 %v287_v11 }
   0xf   :  { %v258_v20 = vshra.s32 %v242_v8, 3  ;;  %v290_v24 = vand.u32 7, %v242_v8  ;;  %v218_v62 = vadd.s32 96, %v1025_v41 }
  0x10   :  { %vm1039_vm3 = vcmp.eq.s32.totalorder %v424_v52, 1  ;;  %vm1044_vm4 = vcmp.eq.s32.totalorder %v446_v53, 1  ;;  %vm1078_vm6 = vcmp.eq.s32.totalorder %v516_v12, 1  ;;  %v210_v52 = vadd.s32 32, %v1025_v41 }
  0x11   :  { %768 = vmatpush3.bf16.msra.mxu0 %v765_v13  ;;  %796 = vmatpush3.bf16.msra.mxu1 %v765_v13  ;;  %v427_v2 = vsel %vm1039_vm3, %v304_v56, 0.0  ;;  %v449_v3 = vsel %vm1044_vm4, %v272_v55, 0.0  ;;  %v250_v13 = vand.u32 63, %v217_v1  ;;  %v435_v18 = vsel %vm1039_vm3, %v312_v7, 0.0 }
  0x12   :  { %770 = vmatprep.subr.bf16.mxu0 %v769_v16  ;;  %789 = vmatprep.subr.bf16.mxu1 %v769_v16  ;;  %v1058_v14 = vadd.f32 %v449_v3, %v427_v2  ;;  %v306_v40 = vcvt.s32.f32 %v290_v24  ;;  %v1101_v3 = vld [vmem:[%s1463_s2] ss:$0 sm:$0xff]  ;;  %v243_v7 = vand.u32 63, %v210_v52 }
  0x14   :  { %v429_v58 = vsel %vm1039_vm3, %v306_v40, 0.0 }
  0x15   :  { %772 = vmatpush3.bf16.msra.mxu0 %v769_v16  ;;  %797 = vmatpush3.bf16.msra.mxu1 %v769_v16  ;;  %v295_v16 = vand.u32 7, %v247_v4 }
  0x16   :  { %774 = vmatprep.subr.bf16.mxu0 %v773_v19  ;;  %790 = vmatprep.subr.bf16.mxu1 %v773_v19 }
  0x19   :  { %776 = vmatpush3.bf16.msra.mxu0 %v773_v19  ;;  %798 = vmatpush3.bf16.msra.mxu1 %v773_v19  ;;  %v457_v19 = vsel %vm1044_vm4, %v280_v6, 0.0 }
  0x1a   :  { %778 = vmatprep.subr.bf16.mxu0 %v777_v22  ;;  %791 = vmatprep.subr.bf16.mxu1 %v777_v22 }
  0x1d   :  { %780 = vmatpush3.bf16.msra.mxu0 %v777_v22  ;;  %799 = vmatpush3.bf16.msra.mxu1 %v777_v22  ;;  %v271_v22 = vcvt.s32.f32 %v255_v10 }
  0x1e   :  { %782 = vmatprep.subr.bf16.mxu0 %v781_v25  ;;  %792 = vmatprep.subr.bf16.mxu1 %v781_v25 }
  0x1f   :  { %v448_v43 = vsel %vm1044_vm4, %v271_v22, 0.0 }
  0x21   :  { %784 = vmatpush3.bf16.msra.mxu0 %v781_v25  ;;  %800 = vmatpush3.bf16.msra.mxu1 %v781_v25  ;;  %v211_v25 = vadd.s32 40, %v1025_v41 }
  0x23   :  { %v244_v42 = vand.u32 63, %v211_v25 }
  0x24   :  { %730 = vmatmul.mubr.f32.vlgmr.msra.gmra.mrb[0].mxu0 %v21_v26  ;;  %742 = vmatmul.mubr.f32.vlgmr.msra.gmra.mrb[0].mxu1 %v29_v27  ;;  %v1067_v26 = vsel %vm588_vm5, 1, %v898_v45  ;;  %v266_v27 = vshra.s32 %v250_v13, 3 }
  0x25   :  { %732 = vmatprep.mubr.f32.mxu0 %v22_v28  ;;  %744 = vmatprep.mubr.f32.mxu1 %v30_v29  ;;  %v298_v28 = vand.u32 7, %v250_v13  ;;  %v219_v29 = vadd.s32 104, %v1025_v41  ;;  %v260_v60 = vshra.s32 %v244_v42, 3  ;;  %v292_v61 = vand.u32 7, %v244_v42 }
  0x26   :  { %v282_v44 = vcvt.s32.f32 %v266_v27 }
  0x27   :  { %v314_v45 = vcvt.s32.f32 %v298_v28  ;;  %v252_v46 = vand.u32 63, %v219_v29  ;;  %v259_v28 = vshra.s32 %v243_v7, 3  ;;  %v291_v29 = vand.u32 7, %v243_v7 }
  0x28   :  { %733 = vmatmul.mubr.f32.gmra.mrb[2].mxu0 %v23_v30  ;;  %745 = vmatmul.mubr.f32.gmra.mrb[2].mxu1 %v31_v31  ;;  %v1070_v30 = vadd.f32 %v457_v19, %v435_v18  ;;  %v311_v31 = vcvt.s32.f32 %v295_v16  ;;  %v459_v1 = vsel %vm1044_vm4, %v282_v44, 0.0  ;;  %v276_v16 = vcvt.s32.f32 %v260_v60 }
  0x29   :  { %735 = vmatprep.mubr.f32.mxu0 %v24_v32  ;;  %747 = vmatprep.mubr.f32.mxu1 %v32_v33  ;;  %v257_v32 = vshra.s32 %v241_v17, 3  ;;  %v289_v33 = vand.u32 7, %v241_v17  ;;  %v437_v0 = vsel %vm1039_vm3, %v314_v45, 0.0  ;;  %v300_v2 = vand.u32 7, %v252_v46 }
  0x2a   :  { %v434_v49 = vsel %vm1039_vm3, %v311_v31, 0.0  ;;  %v268_v11 = vshra.s32 %v252_v46, 3  ;;  %v308_v17 = vcvt.s32.f32 %v292_v61  ;;  %v251_v18 = vand.u32 63, %v218_v62 }
  0x2b   :  { %v273_v50 = vcvt.s32.f32 %v257_v32  ;;  %v305_v51 = vcvt.s32.f32 %v289_v33  ;;  %v316_v24 = vcvt.s32.f32 %v300_v2  ;;  %v307_v52 = vcvt.s32.f32 %v291_v29 }
  0x2c   :  { %736 = vmatmul.mubr.f32.gmra.mrb[4].mxu0 %v25_v34  ;;  %748 = vmatmul.mubr.f32.gmra.mrb[4].mxu1 %v33_v35  ;;  %v279_v34 = vcvt.s32.f32 %v263_v15  ;;  %v274_v35 = vcvt.s32.f32 %v258_v20  ;;  %v1115_v15 = vadd.f32 %v459_v1, %v437_v0  ;;  %v221_v1 = vadd.s32 120, %v1025_v41 }
  0x2d   :  { %738 = vmatprep.mubr.f32.mxu0 %v26_v36  ;;  %750 = vmatprep.mubr.f32.mxu1 %v34_v37  ;;  %v265_v36 = vshra.s32 %v249_v21, 3  ;;  %v297_v37 = vand.u32 7, %v249_v21  ;;  %v428_v5 = vsel %vm1039_vm3, %v305_v51, 0.0  ;;  %v450_v6 = vsel %vm1044_vm4, %v273_v50, 0.0 }
  0x2e   :  { %v456_v53 = vsel %vm1044_vm4, %v279_v34, 0.0  ;;  %v451_v54 = vsel %vm1044_vm4, %v274_v35, 0.0  ;;  %v284_v34 = vcvt.s32.f32 %v268_v11  ;;  %v431_v35 = vsel %vm1039_vm3, %v308_v17, 0.0 }
  0x2f   :  { %v281_v55 = vcvt.s32.f32 %v265_v36  ;;  %v313_v56 = vcvt.s32.f32 %v297_v37  ;;  %v1103_v4 = vadd.f32 %v456_v53, %v434_v49  ;;  %v1109_v8 = vadd.f32 %v451_v54, %v429_v58 }
  0x30   :  { %739 = vmatmul.mubr.f32.gmra.mrb[6].mxu0 %v27_v38  ;;  %751 = vmatmul.mubr.f32.gmra.mrb[6].mxu1 %v35_v39  ;;  %v593_v38 = vrot.slane %v1067_v26, %v1034_v48  ;;  %v426_v39 = vsel %vm1039_vm3, %v303_v23, 0.0  ;;  %v1119_v23 = vadd.f32 %v450_v6, %v428_v5  ;;  %v453_v36 = vsel %vm1044_vm4, %v276_v16, 0.0 }
  0x31   :  { %v1092_v63 = vadd.f32 %v448_v43, %v426_v39  ;;  %v436_v9 = vsel %vm1039_vm3, %v313_v56, 0.0  ;;  %v458_v10 = vsel %vm1044_vm4, %v281_v55, 0.0  ;;  %v267_v37 = vshra.s32 %v251_v18, 3 }
  0x32   :  { %v1122_v27 = vadd.f32 %v458_v10, %v436_v9  ;;  %v299_v39 = vand.u32 7, %v251_v18  ;;  %v439_v45 = vsel %vm1039_vm3, %v316_v24, 0.0  ;;  %v275_v51 = vcvt.s32.f32 %v259_v28 }
  0x33   :  { %v213_v53 = vadd.s32 56, %v1025_v41  ;;  %v1142_v61 = vadd.f32 %v453_v36, %v431_v35  ;;  %v461_v0 = vsel %vm1044_vm4, %v284_v34, 0.0  ;;  %v283_v11 = vcvt.s32.f32 %v267_v37 }
  0x34   :  { %v430_v17 = vsel %vm1039_vm3, %v307_v52, 0.0  ;;  %v452_v18 = vsel %vm1044_vm4, %v275_v51, 0.0  ;;  %v254_v29 = vand.u32 63, %v221_v1  ;;  %vm1213_vm7 = vcmp.eq.s32.totalorder %v593_v38, 1 }
  0x35   :  { %v1180_v34 = vadd.f32 %v452_v18, %v430_v17  ;;  %v1224_v48 = vadd.s32 112, %v1025_v41 }
  0x36   :  { %v1196_v51 = vshra.s32 %v254_v29, 3 }
  0xf7   :  { %v731_v12 = vpop.f32.mrb[0].mxu0  ;;  %v743_v13 = vpop.f32.mrb[0].mxu1 }
  0xf8   :  { %v131_v19 = vadd.f32 %v731_v12, %v1101_v3  ;;  %v171_v20 = vadd.f32 %v743_v13, %v1101_v3  ;;  %v125_v21 = vpop.f32.mrb[1].mxu0  ;;  %v165_v22 = vpop.f32.mrb[1].mxu1  ;;  %v315_v12 = vcvt.s32.f32 %v299_v39  ;;  %v246_v13 = vand.u32 63, %v213_v53 }
  0xf9   :  { %v126_v25 = vadd.f32 %v1101_v3, %v125_v21  ;;  %v166_v33 = vadd.f32 %v1101_v3, %v165_v22  ;;  %v1166_v21 = vadd.f32 %v461_v0, %v439_v45 }
  0xfa   :  { %v649_v31 = vmul.f32 -1.442695, %v131_v19  ;;  %v657_v32 = vmul.f32 -1.442695, %v171_v20  ;;  %v519_v40 = vsel %vm1078_vm6, %v131_v19, 0.0  ;;  %v527_v54 = vsel %vm1078_vm6, %v171_v20, 0.0 }
  0xfb   :  { %v648_v42 = vmul.f32 -1.442695, %v126_v25  ;;  %v734_v43 = vpop.f32.mrb[2].mxu0  ;;  %v746_v44 = vpop.f32.mrb[2].mxu1  ;;  %v656_v55 = vmul.f32 -1.442695, %v166_v33 }
  0xfc   :  { %802 = vpow2.f32 %v649_v31  ;;  %v1134_v46 = vadd.f32 %v734_v43, %v1101_v3  ;;  %v135_v49 = vpop.f32.mrb[3].mxu0  ;;  %v175_v50 = vpop.f32.mrb[3].mxu1  ;;  %v1140_v56 = vadd.f32 %v746_v44, %v1101_v3  ;;  %v536_v58 = vmul.f32 1.442695, %v519_v40 }
  0xfd   :  { %804 = vpow2.f32 %v657_v32  ;;  %v518_v2 = vsel %vm1078_vm6, %v126_v25, 0.0  ;;  %v1153_v6 = vadd.f32 %v1101_v3, %v135_v49  ;;  %v552_v9 = vmul.f32 1.442695, %v527_v54 }
  0xfe   :  { %806 = vpow2.f32 %v648_v42  ;;  %v651_v5 = vmul.f32 -1.442695, %v1134_v46  ;;  %v659_v16 = vmul.f32 -1.442695, %v1140_v56  ;;  %v534_v19 = vmul.f32 1.442695, %v518_v2 }
  0xff   :  { %v737_v60 = vpop.f32.mrb[4].mxu0  ;;  %v1144_v62 = vpop.f32.mrb[4].mxu1  ;;  %808 = vpow2.f32 %v656_v55  ;;  %v526_v20 = vsel %vm1078_vm6, %v166_v33, 0.0  ;;  %v650_v25 = vmul.f32 -1.442695, %v1153_v6  ;;  %v1174_v28 = vadd.f32 %v1101_v3, %v175_v50 }
 0x100   :  { %v1155_v7 = vpop.f32.mrb[5].mxu0  ;;  %v1157_v10 = vpop.f32.mrb[5].mxu1  ;;  %810 = vpow2.f32 %v536_v58  ;;  %v1182_v33 = vshra.s32 %v246_v13, 3  ;;  %v294_v35 = vand.u32 7, %v246_v13  ;;  %v550_v37 = vmul.f32 1.442695, %v526_v20 }
 0x101   :  { %812 = vpow2.f32 %v651_v5  ;;  %v438_v39 = vsel %vm1039_vm3, %v315_v12, 0.0  ;;  %v460_v40 = vsel %vm1044_vm4, %v283_v11, 0.0  ;;  %v521_v43 = vsel %vm1078_vm6, %v1134_v46, 0.0 }
 0x102   :  { %814 = vpow2.f32 %v552_v9  ;;  %v1192_v44 = vadd.s32 48, %v1025_v41  ;;  %v658_v49 = vmul.f32 -1.442695, %v1174_v28  ;;  %v151_v50 = vadd.f32 %v737_v60, %v1101_v3 }
 0x103   :  { %v1168_v22 = vpop.f32.mrb[6].mxu0  ;;  %v1170_v24 = vpop.f32.mrb[6].mxu1  ;;  %816 = vpow2.f32 %v659_v16  ;;  %v1198_v53 = vadd.f32 %v460_v40, %v438_v39  ;;  %v1200_v54 = vand.u32 7, %v254_v29  ;;  %v540_v46 = vmul.f32 1.442695, %v521_v43 }
 0x104   :  { %v1176_v31 = vpop.f32.mrb[7].mxu0  ;;  %v1178_v32 = vpop.f32.mrb[7].mxu1  ;;  %818 = vpow2.f32 %v534_v19  ;;  %v278_v58 = vcvt.s32.f32 %v1182_v33  ;;  %v310_v0 = vcvt.s32.f32 %v294_v35  ;;  %v529_v60 = vsel %vm1078_vm6, %v1140_v56, 0.0 }
 0x105   :  { %820 = vpow2.f32 %v650_v25  ;;  %v245_v2 = vand.u32 63, %v1192_v44  ;;  %v653_v9 = vmul.f32 -1.442695, %v151_v50  ;;  %v191_v11 = vadd.f32 %v1144_v62, %v1101_v3 }
 0x106   :  { %v803_v36 = vpop.eup %802  ;;  %v286_v12 = vcvt.s32.f32 %v1196_v51  ;;  %v520_v17 = vsel %vm1078_vm6, %v1153_v6, 0.0  ;;  %v318_v18 = vcvt.s32.f32 %v1200_v54  ;;  %v556_v62 = vmul.f32 1.442695, %v529_v60 }
 0x107   :  { %v373_v42 = vadd.f32 1.0, %v803_v36  ;;  %v805_v45 = vpop.eup %804  ;;  %v146_v20 = vadd.f32 %v1101_v3, %v1155_v7  ;;  %v528_v25 = vsel %vm1078_vm6, %v1174_v28, 0.0  ;;  %v1231_v6 = vsel %vm1039_vm3, %v310_v0, 0.0 }
 0x108   :  { %v381_v52 = vadd.f32 1.0, %v805_v45  ;;  %v807_v55 = vpop.eup %806  ;;  %v538_v35 = vmul.f32 1.442695, %v520_v17  ;;  %v523_v7 = vsel %vm1078_vm6, %v151_v50, 0.0  ;;  %v661_v36 = vmul.f32 -1.442695, %v191_v11 }
 0x109   :  { %822 = vrcp.f32 %v373_v42  ;;  %v372_v1 = vadd.f32 1.0, %v807_v55  ;;  %v809_v5 = vpop.eup %808  ;;  %v531_v28 = vsel %vm1078_vm6, %v191_v11, 0.0  ;;  %v1244_v40 = vadd.f32 %v1101_v3, %v1157_v10 }
 0x10a   :  { %824 = vpow2.f32 %v550_v37  ;;  %v811_v13 = vpop.eup %810  ;;  %v380_v56 = vadd.f32 1.0, %v809_v5  ;;  %v1238_v37 = vld [vmem:[%s1464_s4] ss:$0 sm:$0xff]  ;;  %v554_v43 = vmul.f32 1.442695, %v528_v25  ;;  %v522_v45 = vsel %vm1078_vm6, %v146_v20, 0.0 }
 0x10b   :  { %826 = vrcp.f32 %v381_v52  ;;  %v813_v19 = vpop.eup %812  ;;  %v544_v55 = vmul.f32 1.442695, %v523_v7  ;;  %v573_v10 = vmul.f32 %v811_v13, %v1238_v37  ;;  %v1254_v60 = vmul.f32 1.442695, %v531_v28 }
 0x10c   :  { %828 = vpow2.f32 %v658_v49  ;;  %v815_v26 = vpop.eup %814  ;;  %v375_v38 = vadd.f32 1.0, %v813_v19  ;;  %v1250_v49 = vadd.f32 %v1168_v22, %v1101_v3  ;;  %v660_v22 = vmul.f32 -1.442695, %v1244_v40 }
 0x10d   :  { %830 = vrcp.f32 %v372_v1  ;;  %v817_v29 = vpop.eup %816  ;;  %v530_v11 = vsel %vm1078_vm6, %v1244_v40, 0.0  ;;  %v253_v44 = vand.u32 63, %v1224_v48 }
 0x10e   :  { %832 = vpow2.f32 %v540_v46  ;;  %v819_v41 = vpop.eup %818  ;;  %v383_v39 = vadd.f32 1.0, %v817_v29  ;;  %v652_v46 = vmul.f32 -1.442695, %v146_v20 }
 0x10f   :  { %834 = vrcp.f32 %v380_v56  ;;  %v821_v42 = vpop.eup %820 }
 0x110   :  { %836 = vpow2.f32 %v653_v9  ;;  %v374_v52 = vadd.f32 1.0, %v821_v42  ;;  %v1256_v9 = vmul.f32 1.442695, %v522_v45 }
 0x111   :  { %838 = vrcp.f32 %v375_v38  ;;  %v1267_v38 = vadd.f32 %v1170_v24, %v1101_v3 }
 0x112   :  { %840 = vpow2.f32 %v556_v62  ;;  %v581_v62 = vmul.f32 %v815_v26, %v1238_v37  ;;  %v572_v26 = vmul.f32 %v819_v41, %v1238_v37 }
 0x113   :  { %v823_v50 = vpop.eup %822  ;;  %842 = vrcp.f32 %v383_v39  ;;  %v1277_v39 = vadd.f32 %v1101_v3, %v1176_v31  ;;  %v663_v31 = vmul.f32 -1.442695, %v1267_v38  ;;  %v533_v40 = vsel %vm1078_vm6, %v1267_v38, 0.0 }
 0x114   :  { %v825_v0 = vpop.eup %824  ;;  %v481_v1 = vadd.f32 %v823_v50, %v1058_v14  ;;  %844 = vpow2.f32 %v661_v36  ;;  %v655_v14 = vmul.f32 -1.442695, %v1250_v49 }
 0x115   :  { %v827_v5 = vpop.eup %826  ;;  %846 = vrcp.f32 %v374_v52  ;;  %v524_v38 = vsel %vm1078_vm6, %v1277_v39, 0.0 }
 0x116   :  { %v829_v56 = vpop.eup %828  ;;  %v497_v17 = vmul.f32 2.0, %v481_v1  ;;  %v489_v19 = vadd.f32 %v827_v5, %v1070_v30  ;;  %848 = vpow2.f32 %v538_v35 }
 0x117   :  { %v831_v13 = vpop.eup %830  ;;  %v382_v20 = vadd.f32 1.0, %v829_v56  ;;  %850 = vpow2.f32 %v652_v46 }
 0x118   :  { %v833_v25 = vpop.eup %832  ;;  %v596_v29 = vsel %vm1213_vm7, %v497_v17, %v823_v50  ;;  %v505_v7 = vmul.f32 2.0, %v489_v19  ;;  %v480_v36 = vadd.f32 %v831_v13, %v1092_v63  ;;  %852 = vpow2.f32 %v554_v43 }
 0x119   :  { %v835_v30 = vpop.eup %834  ;;  %v612_v35 = vsel %vm1078_vm6, %v573_v10, %v596_v29  ;;  %854 = vrcp.f32 %v382_v20  ;;  %v1290_v50 = vadd.f32 %v1101_v3, %v1178_v32  ;;  %v654_v3 = vmul.f32 -1.442695, %v1277_v39 }
 0x11a   :  { %v837_v24 = vpop.eup %836  ;;  %628 = vst [vmem:[%s1465_s5 + $0x8] sm:$0xff] %v612_v35  ;;  %v604_v63 = vsel %vm1213_vm7, %v505_v7, %v827_v5  ;;  %v496_v28 = vmul.f32 2.0, %v480_v36  ;;  %v488_v42 = vadd.f32 %v835_v30, %v1103_v4  ;;  %856 = vpow2.f32 %v660_v22 }
 0x11b   :  { %v839_v43 = vpop.eup %838  ;;  %v620_v41 = vsel %vm1078_vm6, %v581_v62, %v604_v63  ;;  %v377_v45 = vadd.f32 1.0, %v837_v24  ;;  %858 = vpow2.f32 %v655_v14  ;;  %v580_v22 = vmul.f32 %v825_v0, %v1238_v37 }
 0x11c   :  { %v841_v52 = vpop.eup %840  ;;  %636 = vst [vmem:[%s1465_s5 + $0x48] sm:$0xff] %v620_v41  ;;  %v595_v4 = vsel %vm1213_vm7, %v496_v28, %v831_v13  ;;  %v504_v46 = vmul.f32 2.0, %v488_v42  ;;  %v483_v1 = vadd.f32 %v839_v43, %v1109_v8  ;;  %v575_v0 = vmul.f32 %v833_v25, %v1238_v37 }
 0x11d   :  { %v843_v10 = vpop.eup %842  ;;  %v611_v5 = vsel %vm1078_vm6, %v572_v26, %v595_v4  ;;  %860 = vrcp.f32 %v377_v45  ;;  %v583_v25 = vmul.f32 %v841_v52, %v1238_v37  ;;  %v662_v36 = vmul.f32 -1.442695, %v1290_v50 }
 0x11e   :  { %v845_v32 = vpop.eup %844  ;;  %627 = vst [vmem:[%s1465_s5] sm:$0xff] %v611_v5  ;;  %v603_v56 = vsel %vm1213_vm7, %v504_v46, %v835_v30  ;;  %v499_v17 = vmul.f32 2.0, %v483_v1  ;;  %v491_v8 = vadd.f32 %v843_v10, %v1115_v15  ;;  %862 = vpow2.f32 %v544_v55 }
 0x11f   :  { %v847_v19 = vpop.eup %846  ;;  %v619_v14 = vsel %vm1078_vm6, %v580_v22, %v603_v56  ;;  %v385_v13 = vadd.f32 1.0, %v845_v32  ;;  %864 = vpow2.f32 %v663_v31  ;;  %v525_v28 = vsel %vm1078_vm6, %v1250_v49, 0.0 }
 0x120   :  { %v849_v62 = vpop.eup %848  ;;  %635 = vst [vmem:[%s1465_s5 + $0x40] sm:$0xff] %v619_v14  ;;  %v598_v20 = vsel %vm1213_vm7, %v499_v17, %v839_v43  ;;  %v507_v29 = vmul.f32 2.0, %v491_v8  ;;  %v482_v15 = vadd.f32 %v847_v19, %v1119_v23  ;;  %866 = vpow2.f32 %v1254_v60 }
 0x121   :  { %v851_v55 = vpop.eup %850  ;;  %v614_v7 = vsel %vm1078_vm6, %v575_v0, %v598_v20  ;;  %868 = vrcp.f32 %v385_v13  ;;  %v574_v63 = vmul.f32 %v849_v62, %v1238_v37  ;;  %v455_v31 = vsel %vm1044_vm4, %v278_v58, 0.0 }
 0x122   :  { %v853_v30 = vpop.eup %852  ;;  %630 = vst [vmem:[%s1465_s5 + $0x18] sm:$0xff] %v614_v7  ;;  %v606_v35 = vsel %vm1213_vm7, %v507_v29, %v843_v10  ;;  %v498_v23 = vmul.f32 2.0, %v482_v15  ;;  %v376_v26 = vadd.f32 1.0, %v851_v55  ;;  %870 = vpow2.f32 %v654_v3 }
 0x123   :  { %v855_v60 = vpop.eup %854  ;;  %v622_v24 = vsel %vm1078_vm6, %v583_v25, %v606_v35  ;;  %872 = vpow2.f32 %v1256_v9  ;;  %v558_v9 = vmul.f32 1.442695, %v530_v11  ;;  %v548_v4 = vmul.f32 1.442695, %v525_v28 }
 0x124   :  { %v857_v42 = vpop.eup %856  ;;  %638 = vst [vmem:[%s1465_s5 + $0x58] sm:$0xff] %v622_v24  ;;  %v597_v43 = vsel %vm1213_vm7, %v498_v23, %v847_v19  ;;  %v490_v41 = vadd.f32 %v855_v60, %v1122_v27  ;;  %874 = vrcp.f32 %v376_v26  ;;  %v261_v11 = vshra.s32 %v245_v2, 3 }
 0x125   :  { %v613_v45 = vsel %vm1078_vm6, %v574_v63, %v597_v43  ;;  %v384_v49 = vadd.f32 1.0, %v857_v42  ;;  %876 = vpow2.f32 %v662_v36  ;;  %v859_v52 = vpop.eup %858  ;;  %v582_v33 = vmul.f32 %v853_v30, %v1238_v37 }
 0x126   :  { %629 = vst [vmem:[%s1465_s5 + $0x10] sm:$0xff] %v613_v45  ;;  %v506_v27 = vmul.f32 2.0, %v490_v41  ;;  %v379_v58 = vadd.f32 1.0, %v859_v52  ;;  %v293_v1 = vand.u32 7, %v245_v2  ;;  %v564_v56 = vmul.f32 1.442695, %v533_v40 }
 0x127   :  { %v861_v46 = vpop.eup %860  ;;  %878 = vrcp.f32 %v384_v49  ;;  %v277_v14 = vcvt.s32.f32 %v261_v11  ;;  %v546_v13 = vmul.f32 1.442695, %v524_v38  ;;  %v532_v29 = vsel %vm1078_vm6, %v1290_v50, 0.0 }
 0x128   :  { %v863_v10 = vpop.eup %862  ;;  %v605_v5 = vsel %vm1213_vm7, %v506_v27, %v855_v60  ;;  %v485_v22 = vadd.f32 %v861_v46, %v1142_v61  ;;  %880 = vpow2.f32 %v558_v9  ;;  %v471_v61 = vadd.f32 %v455_v31, %v1231_v6 }
 0x129   :  { %v865_v3 = vpop.eup %864  ;;  %v621_v32 = vsel %vm1078_vm6, %v582_v33, %v605_v5  ;;  %882 = vrcp.f32 %v379_v58  ;;  %v577_v39 = vmul.f32 %v863_v10, %v1238_v37  ;;  %v309_v0 = vcvt.s32.f32 %v293_v1 }
 0x12a   :  { %v867_v2 = vpop.eup %866  ;;  %637 = vst [vmem:[%s1465_s5 + $0x50] sm:$0xff] %v621_v32  ;;  %v501_v17 = vmul.f32 2.0, %v485_v22  ;;  %884 = vpow2.f32 %v548_v4  ;;  %v387_v8 = vadd.f32 1.0, %v865_v3  ;;  %v269_v7 = vshra.s32 %v253_v44, 3 }
 0x12b   :  { %v869_v19 = vpop.eup %868  ;;  %v463_v50 = vsel %vm1044_vm4, %v286_v12, 0.0  ;;  %v301_v30 = vand.u32 7, %v253_v44  ;;  %v585_v23 = vmul.f32 %v867_v2, %v1238_v37  ;;  %v562_v60 = vmul.f32 1.442695, %v532_v29 }
 0x12c   :  { %v871_v62 = vpop.eup %870  ;;  %v600_v48 = vsel %vm1213_vm7, %v501_v17, %v861_v46  ;;  %v493_v20 = vadd.f32 %v869_v19, %v1166_v21  ;;  %886 = vrcp.f32 %v387_v8  ;;  %v441_v21 = vsel %vm1039_vm3, %v318_v18, 0.0 }
 0x12d   :  { %v873_v6 = vpop.eup %872  ;;  %v616_v15 = vsel %vm1078_vm6, %v577_v39, %v600_v48  ;;  %888 = vpow2.f32 %v564_v56  ;;  %v378_v55 = vadd.f32 1.0, %v871_v62  ;;  %v432_v54 = vsel %vm1039_vm3, %v309_v0, 0.0 }
 0x12e   :  { %v875_v25 = vpop.eup %874  ;;  %632 = vst [vmem:[%s1465_s5 + $0x28] sm:$0xff] %v616_v15  ;;  %v509_v36 = vmul.f32 2.0, %v493_v20  ;;  %v454_v28 = vsel %vm1044_vm4, %v277_v14, 0.0  ;;  %v285_v42 = vcvt.s32.f32 %v269_v7  ;;  %v576_v43 = vmul.f32 %v873_v6, %v1238_v37 }
 0x12f   :  { %v877_v35 = vpop.eup %876  ;;  %v484_v26 = vadd.f32 %v875_v25, %v1180_v34  ;;  %890 = vrcp.f32 %v378_v55  ;;  %v317_v9 = vcvt.s32.f32 %v301_v30  ;;  %v479_v31 = vadd.f32 %v463_v50, %v441_v21 }
 0x130   :  { %v608_v24 = vsel %vm1213_vm7, %v509_v36, %v869_v19  ;;  %892 = vpow2.f32 %v546_v13  ;;  %v386_v18 = vadd.f32 1.0, %v877_v35  ;;  %v470_v11 = vadd.f32 %v454_v28, %v432_v54 }
 0x131   :  { %v879_v51 = vpop.eup %878  ;;  %v624_v12 = vsel %vm1078_vm6, %v585_v23, %v608_v24  ;;  %v500_v63 = vmul.f32 2.0, %v484_v26  ;;  %v440_v1 = vsel %vm1039_vm3, %v317_v9, 0.0  ;;  %v462_v10 = vsel %vm1044_vm4, %v285_v42, 0.0 }
 0x132   :  { %v881_v34 = vpop.eup %880  ;;  %640 = vst [vmem:[%s1465_s5 + $0x68] sm:$0xff] %v624_v12  ;;  %v492_v41 = vadd.f32 %v879_v51, %v1198_v53  ;;  %894 = vrcp.f32 %v386_v18  ;;  %v478_v44 = vadd.f32 %v462_v10, %v440_v1 }
 0x133   :  { %v883_v45 = vpop.eup %882  ;;  %v599_v49 = vsel %vm1213_vm7, %v500_v63, %v875_v25  ;;  %896 = vpow2.f32 %v562_v60  ;;  %v584_v53 = vmul.f32 %v881_v34, %v1238_v37 }
 0x134   :  { %v885_v52 = vpop.eup %884  ;;  %v615_v27 = vsel %vm1078_vm6, %v576_v43, %v599_v49  ;;  %v508_v4 = vmul.f32 2.0, %v492_v41  ;;  %v487_v40 = vadd.f32 %v883_v45, %v471_v61 }
 0x135   :  { %631 = vst [vmem:[%s1465_s5 + $0x20] sm:$0xff] %v615_v27  ;;  %v579_v38 = vmul.f32 %v885_v52, %v1238_v37 }
 0x136   :  { %v887_v46 = vpop.eup %886  ;;  %v607_v33 = vsel %vm1213_vm7, %v508_v4, %v879_v51  ;;  %v503_v58 = vmul.f32 2.0, %v487_v40 }
 0x137   :  { %v889_v5 = vpop.eup %888  ;;  %v623_v22 = vsel %vm1078_vm6, %v584_v53, %v607_v33  ;;  %v495_v3 = vadd.f32 %v887_v46, %v479_v31 }
 0x138   :  { %639 = vst [vmem:[%s1465_s5 + $0x60] sm:$0xff] %v623_v22  ;;  %v602_v32 = vsel %vm1213_vm7, %v503_v58, %v883_v45  ;;  %v587_v17 = vmul.f32 %v889_v5, %v1238_v37 }
 0x139   :  { %v891_v56 = vpop.eup %890  ;;  %v618_v57 = vsel %vm1078_vm6, %v579_v38, %v602_v32  ;;  %v511_v59 = vmul.f32 2.0, %v495_v3 }
 0x13a   :  { %v893_v2 = vpop.eup %892  ;;  %634 = vst [vmem:[%s1465_s5 + $0x38] sm:$0xff] %v618_v57  ;;  %v486_v61 = vadd.f32 %v891_v56, %v470_v11 }
 0x13b   :  { %v610_v8 = vsel %vm1213_vm7, %v511_v59, %v887_v46  ;;  %v578_v13 = vmul.f32 %v893_v2, %v1238_v37 }
 0x13c   :  { %v895_v19 = vpop.eup %894  ;;  %v626_v39 = vsel %vm1078_vm6, %v587_v17, %v610_v8  ;;  %v502_v14 = vmul.f32 2.0, %v486_v61 }
 0x13d   :  { %v897_v0 = vpop.eup %896  ;;  %642 = vst [vmem:[%s1465_s5 + $0x78] sm:$0xff] %v626_v39  ;;  %v494_v62 = vadd.f32 %v895_v19, %v478_v44 }
 0x13e   :  { %v601_v48 = vsel %vm1213_vm7, %v502_v14, %v891_v56  ;;  %v586_v6 = vmul.f32 %v897_v0, %v1238_v37 }
 0x13f   :  { %v617_v20 = vsel %vm1078_vm6, %v578_v13, %v601_v48  ;;  %v510_v29 = vmul.f32 2.0, %v494_v62 }
 0x140   :  { %633 = vst [vmem:[%s1465_s5 + $0x30] sm:$0xff] %v617_v20 }
 0x141   :  { %v609_v15 = vsel %vm1213_vm7, %v510_v29, %v895_v19 }
 0x142   :  { %v625_v55 = vsel %vm1078_vm6, %v586_v6, %v609_v15 }
 0x143   :  { %641 = vst [vmem:[%s1465_s5 + $0x70] sm:$0xff] %v625_v55 }

// kernel: _lambda_.13
= control target key start
LH: loop header
LB: loop body
LE: loop exit
PB: predicated region body
PF: predicated region fallthrough
CT: control target
= control target key end

     0   :  { %s4644_s1 = inlined_call_operand.vmem [shape: f32[128,128], index: 1, kind: input, shape index: {}]   ;;  %s4645_s0 = inlined_call_operand.vmem [shape: f32[512,128], index: 0, kind: input, shape index: {}]   ;;  %s4646_s3 = inlined_call_operand.vmem [shape: s32[1,128], index: 3, kind: input, shape index: {}]   ;;  %s4647_s2 = inlined_call_operand.vmem [shape: f32[1,128], index: 2, kind: input, shape index: {}]   ;;  %s4648_s4 = inlined_call_operand.vmem [shape: f32[1,128], index: 4, kind: input, shape index: {}]   ;;  %s4649_s5 = inlined_call_operand.vmem [shape: f32[512,128], index: 5, kind: output, shape index: {}]  }
   0x1   :  { %v84_v0 = vld [vmem:[%s4644_s1] sm:$0xff]  ;;  %v85_v1 = vld [vmem:[%s4644_s1 + $0x8] sm:$0xff]  ;;  %v86_v2 = vld [vmem:[%s4644_s1 + $0x10] sm:$0xff] }
   0x2   :  { %v2345_v3 = vpack.c.bf16 %v85_v1, %v84_v0  ;;  %v87_v4 = vld [vmem:[%s4644_s1 + $0x18] sm:$0xff]  ;;  %v88_v6 = vld [vmem:[%s4644_s1 + $0x20] sm:$0xff]  ;;  %v89_v7 = vld [vmem:[%s4644_s1 + $0x28] sm:$0xff] }
   0x3   :  { %v2349_v5 = vpack.c.bf16 %v87_v4, %v86_v2  ;;  %v2353_v8 = vpack.c.bf16 %v89_v7, %v88_v6  ;;  %v20_v9 = vld [vmem:[%s4645_s0] sm:$0xff]  ;;  %v90_v11 = vld [vmem:[%s4644_s1 + $0x30] sm:$0xff]  ;;  %v91_v12 = vld [vmem:[%s4644_s1 + $0x38] sm:$0xff] }
   0x4   :  { %2346 = vmatprep.subr.bf16.mxu0 %v2345_v3  ;;  %2377 = vmatprep.subr.bf16.mxu1 %v2345_v3  ;;  %v52_v10 = vld [vmem:[%s4645_s0 + $0x100] sm:$0xff]  ;;  %v2357_v13 = vpack.c.bf16 %v91_v12, %v90_v11  ;;  %v93_v15 = vld [vmem:[%s4644_s1 + $0x48] sm:$0xff]  ;;  %v94_v17 = vld [vmem:[%s4644_s1 + $0x50] sm:$0xff] }
   0x5   :  { %2348 = vmatpush3.bf16.msra.mxu0 %v2345_v3  ;;  %2385 = vmatpush3.bf16.msra.mxu1 %v2345_v3  ;;  %v92_v14 = vld [vmem:[%s4644_s1 + $0x40] sm:$0xff]  ;;  %v95_v18 = vld [vmem:[%s4644_s1 + $0x58] sm:$0xff]  ;;  %v97_v21 = vld [vmem:[%s4644_s1 + $0x68] sm:$0xff] }
   0x6   :  { %2350 = vmatprep.subr.bf16.mxu0 %v2349_v5  ;;  %2378 = vmatprep.subr.bf16.mxu1 %v2349_v5  ;;  %v2361_v16 = vpack.c.bf16 %v93_v15, %v92_v14  ;;  %v2365_v19 = vpack.c.bf16 %v95_v18, %v94_v17  ;;  %v96_v20 = vld [vmem:[%s4644_s1 + $0x60] sm:$0xff]  ;;  %v98_v23 = vld [vmem:[%s4644_s1 + $0x70] sm:$0xff]  ;;  %v99_v24 = vld [vmem:[%s4644_s1 + $0x78] sm:$0xff] }
   0x7   :  { %2249 = vmatprep.mubr.f32.mxu0 %v20_v9  ;;  %2297 = vmatprep.mubr.f32.mxu1 %v52_v10  ;;  %v2369_v22 = vpack.c.bf16 %v97_v21, %v96_v20  ;;  %v2373_v25 = vpack.c.bf16 %v99_v24, %v98_v23  ;;  %v21_v26 = vld [vmem:[%s4645_s0 + $0x8] sm:$0xff]  ;;  %v22_v28 = vld [vmem:[%s4645_s0 + $0x10] sm:$0xff]  ;;  %v23_v30 = vld [vmem:[%s4645_s0 + $0x18] sm:$0xff]  ;;  %v493_v24 = vlaneseq }
   0x8   :  { %v53_v27 = vld [vmem:[%s4645_s0 + $0x108] sm:$0xff]  ;;  %v54_v29 = vld [vmem:[%s4645_s0 + $0x110] sm:$0xff]  ;;  %v55_v31 = vld [vmem:[%s4645_s0 + $0x118] sm:$0xff] }
   0x9   :  { %2352 = vmatpush3.bf16.msra.mxu0 %v2349_v5  ;;  %2386 = vmatpush3.bf16.msra.mxu1 %v2349_v5  ;;  %v24_v32 = vld [vmem:[%s4645_s0 + $0x20] sm:$0xff]  ;;  %v25_v34 = vld [vmem:[%s4645_s0 + $0x28] sm:$0xff]  ;;  %v26_v36 = vld [vmem:[%s4645_s0 + $0x30] sm:$0xff] }
   0xa   :  { %2354 = vmatprep.subr.bf16.mxu0 %v2353_v8  ;;  %2379 = vmatprep.subr.bf16.mxu1 %v2353_v8  ;;  %v56_v33 = vld [vmem:[%s4645_s0 + $0x120] sm:$0xff]  ;;  %v57_v35 = vld [vmem:[%s4645_s0 + $0x128] sm:$0xff]  ;;  %v58_v37 = vld [vmem:[%s4645_s0 + $0x130] sm:$0xff] }
   0xb   :  { %v27_v38 = vld [vmem:[%s4645_s0 + $0x38] sm:$0xff]  ;;  %v28_v40 = vld [vmem:[%s4645_s0 + $0x40] sm:$0xff]  ;;  %v29_v42 = vld [vmem:[%s4645_s0 + $0x48] sm:$0xff] }
   0xc   :  { %v59_v39 = vld [vmem:[%s4645_s0 + $0x138] sm:$0xff]  ;;  %v60_v41 = vld [vmem:[%s4645_s0 + $0x140] sm:$0xff]  ;;  %v61_v43 = vld [vmem:[%s4645_s0 + $0x148] sm:$0xff] }
   0xd   :  { %2356 = vmatpush3.bf16.msra.mxu0 %v2353_v8  ;;  %2387 = vmatpush3.bf16.msra.mxu1 %v2353_v8  ;;  %v30_v44 = vld [vmem:[%s4645_s0 + $0x50] sm:$0xff]  ;;  %v31_v46 = vld [vmem:[%s4645_s0 + $0x58] sm:$0xff]  ;;  %v32_v48 = vld [vmem:[%s4645_s0 + $0x60] sm:$0xff] }
   0xe   :  { %2358 = vmatprep.subr.bf16.mxu0 %v2357_v13  ;;  %2380 = vmatprep.subr.bf16.mxu1 %v2357_v13  ;;  %v62_v45 = vld [vmem:[%s4645_s0 + $0x150] sm:$0xff]  ;;  %v63_v47 = vld [vmem:[%s4645_s0 + $0x158] sm:$0xff]  ;;  %v64_v49 = vld [vmem:[%s4645_s0 + $0x160] sm:$0xff] }
   0xf   :  { %v33_v50 = vld [vmem:[%s4645_s0 + $0x68] sm:$0xff]  ;;  %v34_v52 = vld [vmem:[%s4645_s0 + $0x70] sm:$0xff]  ;;  %v35_v54 = vld [vmem:[%s4645_s0 + $0x78] sm:$0xff] }
  0x10   :  { %v65_v51 = vld [vmem:[%s4645_s0 + $0x168] sm:$0xff]  ;;  %v66_v53 = vld [vmem:[%s4645_s0 + $0x170] sm:$0xff]  ;;  %v67_v55 = vld [vmem:[%s4645_s0 + $0x178] sm:$0xff] }
  0x11   :  { %2360 = vmatpush3.bf16.msra.mxu0 %v2357_v13  ;;  %2388 = vmatpush3.bf16.msra.mxu1 %v2357_v13  ;;  %v36_v56 = vld [vmem:[%s4645_s0 + $0x80] sm:$0xff]  ;;  %v37_v58 = vld [vmem:[%s4645_s0 + $0x88] sm:$0xff]  ;;  %v38_v60 = vld [vmem:[%s4645_s0 + $0x90] sm:$0xff] }
  0x12   :  { %2362 = vmatprep.subr.bf16.mxu0 %v2361_v16  ;;  %2381 = vmatprep.subr.bf16.mxu1 %v2361_v16  ;;  %v68_v57 = vld [vmem:[%s4645_s0 + $0x180] sm:$0xff]  ;;  %v69_v59 = vld [vmem:[%s4645_s0 + $0x188] sm:$0xff]  ;;  %v70_v61 = vld [vmem:[%s4645_s0 + $0x190] sm:$0xff] }
  0x13   :  { %v39_v62 = vld [vmem:[%s4645_s0 + $0x98] sm:$0xff]  ;;  %v40_v0 = vld [vmem:[%s4645_s0 + $0xa0] sm:$0xff]  ;;  %v41_v2 = vld [vmem:[%s4645_s0 + $0xa8] sm:$0xff] }
  0x14   :  { %v71_v63 = vld [vmem:[%s4645_s0 + $0x198] sm:$0xff]  ;;  %v72_v1 = vld [vmem:[%s4645_s0 + $0x1a0] sm:$0xff]  ;;  %v73_v3 = vld [vmem:[%s4645_s0 + $0x1a8] sm:$0xff] }
  0x15   :  { %2364 = vmatpush3.bf16.msra.mxu0 %v2361_v16  ;;  %2389 = vmatpush3.bf16.msra.mxu1 %v2361_v16  ;;  %v42_v4 = vld [vmem:[%s4645_s0 + $0xb0] sm:$0xff]  ;;  %v43_v6 = vld [vmem:[%s4645_s0 + $0xb8] sm:$0xff]  ;;  %v44_v8 = vld [vmem:[%s4645_s0 + $0xc0] sm:$0xff] }
  0x16   :  { %2366 = vmatprep.subr.bf16.mxu0 %v2365_v19  ;;  %2382 = vmatprep.subr.bf16.mxu1 %v2365_v19  ;;  %v74_v5 = vld [vmem:[%s4645_s0 + $0x1b0] sm:$0xff]  ;;  %v75_v7 = vld [vmem:[%s4645_s0 + $0x1b8] sm:$0xff]  ;;  %v76_v9 = vld [vmem:[%s4645_s0 + $0x1c0] sm:$0xff] }
  0x17   :  { %v45_v10 = vld [vmem:[%s4645_s0 + $0xc8] sm:$0xff]  ;;  %v46_v12 = vld [vmem:[%s4645_s0 + $0xd0] sm:$0xff]  ;;  %v47_v14 = vld [vmem:[%s4645_s0 + $0xd8] sm:$0xff] }
  0x18   :  { %v77_v11 = vld [vmem:[%s4645_s0 + $0x1c8] sm:$0xff]  ;;  %v78_v13 = vld [vmem:[%s4645_s0 + $0x1d0] sm:$0xff]  ;;  %v79_v15 = vld [vmem:[%s4645_s0 + $0x1d8] sm:$0xff] }
  0x19   :  { %2368 = vmatpush3.bf16.msra.mxu0 %v2365_v19  ;;  %2390 = vmatpush3.bf16.msra.mxu1 %v2365_v19  ;;  %v48_v16 = vld [vmem:[%s4645_s0 + $0xe0] sm:$0xff]  ;;  %v49_v18 = vld [vmem:[%s4645_s0 + $0xe8] sm:$0xff]  ;;  %v50_v20 = vld [vmem:[%s4645_s0 + $0xf0] sm:$0xff] }
  0x1a   :  { %2370 = vmatprep.subr.bf16.mxu0 %v2369_v22  ;;  %2383 = vmatprep.subr.bf16.mxu1 %v2369_v22  ;;  %v80_v17 = vld [vmem:[%s4645_s0 + $0x1e0] sm:$0xff]  ;;  %v81_v19 = vld [vmem:[%s4645_s0 + $0x1e8] sm:$0xff]  ;;  %v82_v21 = vld [vmem:[%s4645_s0 + $0x1f0] sm:$0xff] }
  0x1b   :  { %v83_v23 = vld [vmem:[%s4645_s0 + $0x1f8] sm:$0xff] }
  0x1d   :  { %2372 = vmatpush3.bf16.msra.mxu0 %v2369_v22  ;;  %2391 = vmatpush3.bf16.msra.mxu1 %v2369_v22  ;;  %v51_v22 = vld [vmem:[%s4645_s0 + $0xf8] sm:$0xff] }
  0x1e   :  { %2374 = vmatprep.subr.bf16.mxu0 %v2373_v25  ;;  %2384 = vmatprep.subr.bf16.mxu1 %v2373_v25 }
  0x21   :  { %2376 = vmatpush3.bf16.msra.mxu0 %v2373_v25  ;;  %2392 = vmatpush3.bf16.msra.mxu1 %v2373_v25  ;;  %v3053_v25 = vshrl.u32 %v493_v24, 7 }
  0x23   :  { %4659 = vst [vmem:[#allocation2_spill] sm:$0xff] %v3053_v25 }
  0x24   :  { %2250 = vmatmul.mubr.f32.vlgmr.msra.gmra.mrb[0].mxu0 %v21_v26  ;;  %2298 = vmatmul.mubr.f32.vlgmr.msra.gmra.mrb[0].mxu1 %v53_v27  ;;  %v495_v26 = vadd.s32 8, %v3053_v25  ;;  %v943_v27 = vld [vmem:[%s4646_s3] sm:$0x1] }
  0x25   :  { %2252 = vmatprep.mubr.f32.mxu0 %v22_v28  ;;  %2300 = vmatprep.mubr.f32.mxu1 %v54_v29  ;;  %v527_v28 = vadd.s32 264, %v3053_v25  ;;  %vm945_vm0 = vcmp.eq.s32.totalorder %v943_v27, 0  ;;  %vm946_vm1 = vcmp.eq.s32.totalorder %v943_v27, 1  ;;  %vm947_vm2 = vcmp.eq.s32.totalorder %v943_v27, 2 }
  0x26   :  { %v624_v29 = vand.u32 255, %v495_v26  ;;  %vm1868_vm5 = vmor %vm945_vm0, %vm946_vm1 }
  0x28   :  { %2253 = vmatmul.mubr.f32.gmra.mrb[2].mxu0 %v23_v30  ;;  %2301 = vmatmul.mubr.f32.gmra.mrb[2].mxu1 %v55_v31  ;;  %v2782_v30 = vmov 0  }
  0x29   :  { %2255 = vmatprep.mubr.f32.mxu0 %v24_v32  ;;  %2303 = vmatprep.mubr.f32.mxu1 %v56_v33  ;;  %v1332_v31 = vsel %vm945_vm0, 1, %v2782_v30  ;;  %v1402_v32 = vsel %vm946_vm1, 1, %v2782_v30  ;;  %v656_v33 = vand.u32 255, %v527_v28  ;;  %v498_v28 = vadd.s32 32, %v3053_v25 }
  0x2c   :  { %2256 = vmatmul.mubr.f32.gmra.mrb[4].mxu0 %v25_v34  ;;  %2304 = vmatmul.mubr.f32.gmra.mrb[4].mxu1 %v57_v35  ;;  %v3063_v34 = vsub.s32 0, %v3053_v25  ;;  %v688_v35 = vshra.s32 %v624_v29, 4 }
  0x2d   :  { %2258 = vmatprep.mubr.f32.mxu0 %v26_v36  ;;  %2306 = vmatprep.mubr.f32.mxu1 %v58_v37  ;;  %v816_v36 = vand.u32 15, %v624_v29 }
  0x2e   :  { %v1336_v37 = vrot.slane %v1332_v31, %v3063_v34 }
  0x30   :  { %2259 = vmatmul.mubr.f32.gmra.mrb[6].mxu0 %v27_v38  ;;  %2307 = vmatmul.mubr.f32.gmra.mrb[6].mxu1 %v59_v39  ;;  %v1406_v38 = vrot.slane %v1402_v32, %v3063_v34  ;;  %v526_v39 = vadd.s32 256, %v3053_v25  ;;  %vm3071_vm3 = vcmp.eq.s32.totalorder %v1336_v37, 1  ;;  %v530_v32 = vadd.s32 288, %v3053_v25 }
  0x31   :  { %2261 = vmatprep.mubr.f32.mxu0 %v28_v40  ;;  %2309 = vmatprep.mubr.f32.mxu1 %v60_v41  ;;  %v848_v40 = vand.u32 15, %v656_v33  ;;  %v623_v41 = vand.u32 255, %v3053_v25 }
  0x32   :  { %vm3075_vm4 = vcmp.eq.s32.totalorder %v1406_v38, 1 }
  0x34   :  { %2262 = vmatmul.mubr.f32.gmra.mrb[8].mxu0 %v29_v42  ;;  %2310 = vmatmul.mubr.f32.gmra.mrb[8].mxu1 %v61_v43  ;;  %v497_v42 = vadd.s32 24, %v3053_v25  ;;  %v720_v43 = vshra.s32 %v656_v33, 4 }
  0x35   :  { %2264 = vmatprep.mubr.f32.mxu0 %v30_v44  ;;  %2312 = vmatprep.mubr.f32.mxu1 %v62_v45  ;;  %v529_v44 = vadd.s32 280, %v3053_v25  ;;  %v752_v45 = vcvt.s32.f32 %v688_v35 }
  0x38   :  { %2265 = vmatmul.mubr.f32.gmra.mrb[10].mxu0 %v31_v46  ;;  %2313 = vmatmul.mubr.f32.gmra.mrb[10].mxu1 %v63_v47  ;;  %v880_v46 = vcvt.s32.f32 %v816_v36  ;;  %v4660_v47 = vmov 0 }
  0x39   :  { %2267 = vmatprep.mubr.f32.mxu0 %v32_v48  ;;  %2315 = vmatprep.mubr.f32.mxu1 %v64_v49  ;;  %v4661_v47 = vsel %vm3071_vm3, 4294967295, %v4660_v47  ;;  %v4663_v48 = vmov 0  ;;  %v655_v49 = vand.u32 255, %v526_v39 }
  0x3a   :  { %4662 = vst [vmem:[#allocation3_spill] sm:$0xff] %v4661_v47  ;;  %v4664_v48 = vsel %vm3075_vm4, 4294967295, %v4663_v48 }
  0x3b   :  { %4665 = vst [vmem:[#allocation4_spill] sm:$0xff] %v4664_v48 }
  0x3c   :  { %2268 = vmatmul.mubr.f32.gmra.mrb[12].mxu0 %v33_v50  ;;  %2316 = vmatmul.mubr.f32.gmra.mrb[12].mxu1 %v65_v51  ;;  %v912_v50 = vcvt.s32.f32 %v848_v40  ;;  %v815_v51 = vand.u32 15, %v623_v41 }
  0x3d   :  { %2270 = vmatprep.mubr.f32.mxu0 %v34_v52  ;;  %2318 = vmatprep.mubr.f32.mxu1 %v66_v53  ;;  %v626_v52 = vand.u32 255, %v497_v42  ;;  %v3081_v53 = vsel %vm947_vm2, 1, %v2782_v30 }
  0x40   :  { %2271 = vmatmul.mubr.f32.gmra.mrb[14].mxu0 %v35_v54  ;;  %2319 = vmatmul.mubr.f32.gmra.mrb[14].mxu1 %v67_v55  ;;  %v784_v54 = vcvt.s32.f32 %v720_v43  ;;  %v658_v55 = vand.u32 255, %v529_v44 }
  0x41   :  { %2273 = vmatprep.mubr.f32.mxu0 %v36_v56  ;;  %2321 = vmatprep.mubr.f32.mxu1 %v68_v57  ;;  %v1339_v56 = vsel %vm3071_vm3, %v880_v46, 0.0  ;;  %v1409_v57 = vsel %vm3075_vm4, %v752_v45, 0.0  ;;  %v627_v45 = vand.u32 255, %v498_v28 }
  0x44   :  { %2274 = vmatmul.mubr.f32.gmra.mrb[16].mxu0 %v37_v58  ;;  %2322 = vmatmul.mubr.f32.gmra.mrb[16].mxu1 %v69_v59  ;;  %v687_v58 = vshra.s32 %v623_v41, 4  ;;  %v496_v59 = vadd.s32 16, %v3053_v25 }
  0x45   :  { %2276 = vmatprep.mubr.f32.mxu0 %v38_v60  ;;  %2324 = vmatprep.mubr.f32.mxu1 %v70_v61  ;;  %v3088_v60 = vsel %vm1868_vm5, 1, %v2782_v30  ;;  %v719_v61 = vshra.s32 %v655_v49, 4 }
  0x48   :  { %2277 = vmatmul.mubr.f32.gmra.mrb[18].mxu0 %v39_v62  ;;  %2325 = vmatmul.mubr.f32.gmra.mrb[18].mxu1 %v71_v63  ;;  %v847_v62 = vand.u32 15, %v655_v49  ;;  %v528_v63 = vadd.s32 272, %v3053_v25 }
  0x49   :  { %2279 = vmatprep.mubr.f32.mxu0 %v40_v0  ;;  %2327 = vmatprep.mubr.f32.mxu1 %v72_v1  ;;  %v1371_v0 = vsel %vm3071_vm3, %v912_v50, 0.0  ;;  %v879_v1 = vcvt.s32.f32 %v815_v51  ;;  %v659_v51 = vand.u32 255, %v530_v32 }
  0x4c   :  { %2280 = vmatmul.mubr.f32.gmra.mrb[20].mxu0 %v41_v2  ;;  %2328 = vmatmul.mubr.f32.gmra.mrb[20].mxu1 %v73_v3  ;;  %v690_v2 = vshra.s32 %v626_v52, 4  ;;  %v818_v3 = vand.u32 15, %v626_v52 }
  0x4d   :  { %2282 = vmatprep.mubr.f32.mxu0 %v42_v4  ;;  %2330 = vmatprep.mubr.f32.mxu1 %v74_v5  ;;  %v1441_v4 = vsel %vm3075_vm4, %v784_v54, 0.0  ;;  %v722_v5 = vshra.s32 %v658_v55, 4 }
  0x50   :  { %2283 = vmatmul.mubr.f32.gmra.mrb[22].mxu0 %v43_v6  ;;  %2331 = vmatmul.mubr.f32.gmra.mrb[22].mxu1 %v75_v7  ;;  %v850_v6 = vand.u32 15, %v658_v55  ;;  %v499_v7 = vadd.s32 40, %v3053_v25 }
  0x51   :  { %2285 = vmatprep.mubr.f32.mxu0 %v44_v8  ;;  %2333 = vmatprep.mubr.f32.mxu1 %v76_v9  ;;  %v3096_v8 = vadd.f32 %v1409_v57, %v1339_v56  ;;  %v501_v56 = vadd.s32 56, %v3053_v25 }
  0x54   :  { %2286 = vmatmul.mubr.f32.gmra.mrb[24].mxu0 %v45_v10  ;;  %2334 = vmatmul.mubr.f32.gmra.mrb[24].mxu1 %v77_v11  ;;  %v751_v10 = vcvt.s32.f32 %v687_v58  ;;  %v625_v11 = vand.u32 255, %v496_v59 }
  0x55   :  { %2288 = vmatprep.mubr.f32.mxu0 %v46_v12  ;;  %2336 = vmatprep.mubr.f32.mxu1 %v78_v13  ;;  %v783_v13 = vcvt.s32.f32 %v719_v61  ;;  %v533_v61 = vadd.s32 312, %v3053_v25 }
  0x56   :  { %v1408_v24 = vsel %vm3075_vm4, %v751_v10, 0.0  ;;  %v689_v26 = vshra.s32 %v625_v11, 4  ;;  %v817_v27 = vand.u32 15, %v625_v11  ;;  %v630_v10 = vand.u32 255, %v501_v56 }
  0x57   :  { %v1440_v30 = vsel %vm3075_vm4, %v783_v13, 0.0  ;;  %v532_v11 = vadd.s32 304, %v3053_v25 }
  0x58   :  { %2289 = vmatmul.mubr.f32.gmra.mrb[26].mxu0 %v47_v14  ;;  %2337 = vmatmul.mubr.f32.gmra.mrb[26].mxu1 %v79_v15  ;;  %v911_v14 = vcvt.s32.f32 %v847_v62  ;;  %v657_v15 = vand.u32 255, %v528_v63  ;;  %v753_v43 = vcvt.s32.f32 %v689_v26  ;;  %v881_v44 = vcvt.s32.f32 %v817_v27 }
  0x59   :  { %2291 = vmatprep.mubr.f32.mxu0 %v48_v16  ;;  %2339 = vmatprep.mubr.f32.mxu1 %v80_v17  ;;  %v3102_v16 = vadd.f32 %v1441_v4, %v1371_v0  ;;  %v754_v17 = vcvt.s32.f32 %v690_v2  ;;  %v691_v0 = vshra.s32 %v627_v45, 4  ;;  %v851_v4 = vand.u32 15, %v659_v51 }
  0x5a   :  { %v1370_v29 = vsel %vm3071_vm3, %v911_v14, 0.0  ;;  %v849_v31 = vand.u32 15, %v657_v15  ;;  %v721_v36 = vshra.s32 %v657_v15, 4  ;;  %v1340_v62 = vsel %vm3071_vm3, %v881_v44, 0.0 }
  0x5b   :  { %v1411_v35 = vsel %vm3075_vm4, %v754_v17, 0.0  ;;  %v3125_v46 = vadd.f32 %v1440_v30, %v1370_v29  ;;  %v1410_v63 = vsel %vm3075_vm4, %v753_v43, 0.0  ;;  %v662_v17 = vand.u32 255, %v533_v61 }
  0x5c   :  { %2292 = vmatmul.mubr.f32.gmra.mrb[28].mxu0 %v49_v18  ;;  %2340 = vmatmul.mubr.f32.gmra.mrb[28].mxu1 %v81_v19  ;;  %v882_v18 = vcvt.s32.f32 %v818_v3  ;;  %v531_v19 = vadd.s32 296, %v3053_v25  ;;  %v913_v50 = vcvt.s32.f32 %v849_v31  ;;  %v785_v54 = vcvt.s32.f32 %v721_v36 }
  0x5d   :  { %2294 = vmatprep.mubr.f32.mxu0 %v50_v20  ;;  %2342 = vmatprep.mubr.f32.mxu1 %v82_v21  ;;  %v1338_v20 = vsel %vm3071_vm3, %v879_v1, 0.0  ;;  %v786_v21 = vcvt.s32.f32 %v722_v5  ;;  %v819_v1 = vand.u32 15, %v627_v45  ;;  %v723_v3 = vshra.s32 %v659_v51, 4 }
  0x5e   :  { %v1341_v33 = vsel %vm3071_vm3, %v882_v18, 0.0  ;;  %v660_v37 = vand.u32 255, %v531_v19  ;;  %v3123_v42 = vadd.f32 %v1408_v24, %v1338_v20  ;;  %v1372_v2 = vsel %vm3071_vm3, %v913_v50, 0.0 }
  0x5f   :  { %v1443_v39 = vsel %vm3075_vm4, %v786_v21, 0.0  ;;  %v3127_v49 = vadd.f32 %v1411_v35, %v1341_v33  ;;  %v500_v5 = vadd.s32 48, %v3053_v25  ;;  %v3147_v18 = vadd.f32 %v1410_v63, %v1340_v62 }
  0x60   :  { %2295 = vmatmul.mubr.f32.gmra.mrb[30].mxu0 %v51_v22  ;;  %2343 = vmatmul.mubr.f32.gmra.mrb[30].mxu1 %v83_v23  ;;  %v914_v22 = vcvt.s32.f32 %v850_v6  ;;  %v628_v23 = vand.u32 255, %v499_v7  ;;  %v852_v55 = vand.u32 15, %v660_v37  ;;  %v724_v59 = vshra.s32 %v660_v37, 4 }
  0x61   :  { %v1442_v6 = vsel %vm3075_vm4, %v785_v54, 0.0  ;;  %v755_v19 = vcvt.s32.f32 %v691_v0  ;;  %v883_v20 = vcvt.s32.f32 %v819_v1  ;;  %v503_v21 = vadd.s32 72, %v3053_v25 }
  0x62   :  { %v1373_v38 = vsel %vm3071_vm3, %v914_v22, 0.0  ;;  %v692_v40 = vshra.s32 %v628_v23, 4  ;;  %v820_v41 = vand.u32 15, %v628_v23  ;;  %v916_v7 = vcvt.s32.f32 %v852_v55 }
  0x63   :  { %v3129_v52 = vadd.f32 %v1443_v39, %v1373_v38  ;;  %v788_v15 = vcvt.s32.f32 %v724_v59  ;;  %v3150_v22 = vadd.f32 %v1442_v6, %v1372_v2  ;;  %v787_v23 = vcvt.s32.f32 %v723_v3 }
  0x64   :  { %v756_v57 = vcvt.s32.f32 %v692_v40  ;;  %v884_v58 = vcvt.s32.f32 %v820_v41  ;;  %v915_v24 = vcvt.s32.f32 %v851_v4  ;;  %v629_v26 = vand.u32 255, %v500_v5 }
  0x65   :  { %v1375_v28 = vsel %vm3071_vm3, %v916_v7, 0.0  ;;  %v822_v29 = vand.u32 15, %v630_v10  ;;  %v661_v30 = vand.u32 255, %v532_v11  ;;  %v1445_v31 = vsel %vm3075_vm4, %v788_v15, 0.0 }
  0x66   :  { %v1343_v13 = vsel %vm3071_vm3, %v884_v58, 0.0  ;;  %v1413_v14 = vsel %vm3075_vm4, %v756_v57, 0.0  ;;  %v694_v32 = vshra.s32 %v630_v10, 4  ;;  %v854_v33 = vand.u32 15, %v662_v17 }
  0x67   :  { %v3152_v27 = vadd.f32 %v1413_v14, %v1343_v13  ;;  %v535_v35 = vadd.s32 328, %v3053_v25  ;;  %v1342_v36 = vsel %vm3071_vm3, %v883_v20, 0.0  ;;  %v1412_v37 = vsel %vm3075_vm4, %v755_v19, 0.0 }
  0x68   :  { %v726_v38 = vshra.s32 %v662_v17, 4  ;;  %v632_v39 = vand.u32 255, %v503_v21  ;;  %v1374_v40 = vsel %vm3071_vm3, %v915_v24, 0.0  ;;  %v1444_v41 = vsel %vm3075_vm4, %v787_v23, 0.0 }
  0x69   :  { %v693_v43 = vshra.s32 %v629_v26, 4  ;;  %v821_v44 = vand.u32 15, %v629_v26  ;;  %v886_v45 = vcvt.s32.f32 %v822_v29  ;;  %v725_v50 = vshra.s32 %v661_v30, 4 }
  0x6a   :  { %v853_v51 = vand.u32 15, %v661_v30  ;;  %v502_v54 = vadd.s32 64, %v3053_v25  ;;  %v758_v55 = vcvt.s32.f32 %v694_v32  ;;  %v918_v56 = vcvt.s32.f32 %v854_v33 }
  0x6b   :  { %v664_v57 = vand.u32 255, %v535_v35  ;;  %v534_v58 = vadd.s32 320, %v3053_v25  ;;  %v3169_v59 = vadd.f32 %v1445_v31, %v1375_v28  ;;  %v790_v61 = vcvt.s32.f32 %v726_v38 }
  0x6c   :  { %v696_v62 = vshra.s32 %v632_v39, 4  ;;  %v824_v63 = vand.u32 15, %v632_v39  ;;  %v3171_v0 = vadd.f32 %v1412_v37, %v1342_v36  ;;  %v3173_v1 = vadd.f32 %v1444_v41, %v1374_v40 }
  0x6d   :  { %v757_v2 = vcvt.s32.f32 %v693_v43  ;;  %v885_v3 = vcvt.s32.f32 %v821_v44  ;;  %v1345_v4 = vsel %vm3071_vm3, %v886_v45, 0.0  ;;  %v789_v5 = vcvt.s32.f32 %v725_v50 }
  0x6e   :  { %v917_v6 = vcvt.s32.f32 %v853_v51  ;;  %v631_v7 = vand.u32 255, %v502_v54  ;;  %v1415_v10 = vsel %vm3075_vm4, %v758_v55, 0.0  ;;  %v1377_v11 = vsel %vm3071_vm3, %v918_v56, 0.0 }
  0x6f   :  { %v856_v13 = vand.u32 15, %v664_v57  ;;  %v663_v14 = vand.u32 255, %v534_v58  ;;  %v1447_v15 = vsel %vm3075_vm4, %v790_v61, 0.0  ;;  %v760_v17 = vcvt.s32.f32 %v696_v62 }
  0x70   :  { %v888_v19 = vcvt.s32.f32 %v824_v63  ;;  %v505_v20 = vadd.s32 88, %v3053_v25  ;;  %v1344_v21 = vsel %vm3071_vm3, %v885_v3, 0.0  ;;  %v1414_v23 = vsel %vm3075_vm4, %v757_v2, 0.0 }
  0x71   :  { %v537_v24 = vadd.s32 344, %v3053_v25  ;;  %v504_v26 = vadd.s32 80, %v3053_v25  ;;  %v1376_v28 = vsel %vm3071_vm3, %v917_v6, 0.0  ;;  %v1446_v29 = vsel %vm3075_vm4, %v789_v5, 0.0 }
  0x72   :  { %v728_v30 = vshra.s32 %v664_v57, 4  ;;  %v823_v31 = vand.u32 15, %v631_v7  ;;  %v920_v32 = vcvt.s32.f32 %v856_v13  ;;  %v695_v33 = vshra.s32 %v631_v7, 4 }
  0x73   :  { %v855_v35 = vand.u32 15, %v663_v14  ;;  %v536_v36 = vadd.s32 336, %v3053_v25  ;;  %v1347_v37 = vsel %vm3071_vm3, %v888_v19, 0.0  ;;  %v1417_v38 = vsel %vm3075_vm4, %v760_v17, 0.0 }
  0x74   :  { %v727_v39 = vshra.s32 %v663_v14, 4  ;;  %v634_v40 = vand.u32 255, %v505_v20  ;;  %v3199_v41 = vadd.f32 %v1415_v10, %v1345_v4  ;;  %v3201_v43 = vadd.f32 %v1447_v15, %v1377_v11 }
  0x75   :  { %v666_v44 = vand.u32 255, %v537_v24  ;;  %v633_v45 = vand.u32 255, %v504_v26  ;;  %v3203_v50 = vadd.f32 %v1414_v23, %v1344_v21  ;;  %v3205_v51 = vadd.f32 %v1446_v29, %v1376_v28 }
  0x76   :  { %v792_v54 = vcvt.s32.f32 %v728_v30  ;;  %v887_v55 = vcvt.s32.f32 %v823_v31  ;;  %v3207_v56 = vadd.f32 %v1417_v38, %v1347_v37  ;;  %v759_v57 = vcvt.s32.f32 %v695_v33 }
  0x77   :  { %4666 = vst [vmem:[#allocation5_spill] sm:$0xff] %v3205_v51  ;;  %v919_v58 = vcvt.s32.f32 %v855_v35  ;;  %v665_v61 = vand.u32 255, %v536_v36  ;;  %v1379_v62 = vsel %vm3071_vm3, %v920_v32, 0.0  ;;  %v791_v63 = vcvt.s32.f32 %v727_v39 }
  0x78   :  { %4667 = vst [vmem:[#allocation6_spill] sm:$0xff] %v3207_v56  ;;  %v826_v2 = vand.u32 15, %v634_v40  ;;  %v507_v3 = vadd.s32 104, %v3053_v25  ;;  %v698_v4 = vshra.s32 %v634_v40, 4  ;;  %v730_v5 = vshra.s32 %v666_v44, 4 }
  0x79   :  { %v858_v6 = vand.u32 15, %v666_v44  ;;  %v825_v7 = vand.u32 15, %v633_v45  ;;  %v1449_v10 = vsel %vm3075_vm4, %v792_v54, 0.0  ;;  %v1346_v11 = vsel %vm3071_vm3, %v887_v55, 0.0 }
  0x7a   :  { %v697_v13 = vshra.s32 %v633_v45, 4  ;;  %v539_v14 = vadd.s32 360, %v3053_v25  ;;  %v1416_v15 = vsel %vm3075_vm4, %v759_v57, 0.0  ;;  %v1378_v17 = vsel %vm3071_vm3, %v919_v58, 0.0 }
  0x7b   :  { %v729_v19 = vshra.s32 %v665_v61, 4  ;;  %v857_v20 = vand.u32 15, %v665_v61  ;;  %v1448_v21 = vsel %vm3075_vm4, %v791_v63, 0.0  ;;  %v890_v23 = vcvt.s32.f32 %v826_v2 }
  0x7c   :  { %v636_v24 = vand.u32 255, %v507_v3  ;;  %v506_v26 = vadd.s32 96, %v3053_v25  ;;  %v762_v28 = vcvt.s32.f32 %v698_v4  ;;  %v794_v29 = vcvt.s32.f32 %v730_v5 }
  0x7d   :  { %v922_v30 = vcvt.s32.f32 %v858_v6  ;;  %v889_v31 = vcvt.s32.f32 %v825_v7  ;;  %v3224_v32 = vadd.f32 %v1449_v10, %v1379_v62  ;;  %v761_v33 = vcvt.s32.f32 %v697_v13 }
  0x7e   :  { %v668_v35 = vand.u32 255, %v539_v14  ;;  %v538_v36 = vadd.s32 352, %v3053_v25  ;;  %v3227_v37 = vadd.f32 %v1416_v15, %v1346_v11  ;;  %v3229_v38 = vadd.f32 %v1448_v21, %v1378_v17 }
  0x7f   :  { %4668 = vst [vmem:[#allocation7_spill] sm:$0xff] %v3224_v32  ;;  %v793_v39 = vcvt.s32.f32 %v729_v19  ;;  %v921_v40 = vcvt.s32.f32 %v857_v20  ;;  %v1349_v44 = vsel %vm3071_vm3, %v890_v23, 0.0  ;;  %v700_v45 = vshra.s32 %v636_v24, 4 }
  0x80   :  { %4669 = vst [vmem:[#allocation8_spill] sm:$0xff] %v3227_v37  ;;  %4670 = vst [vmem:[#allocation9_spill] sm:$0xff] %v3229_v38  ;;  %v828_v54 = vand.u32 15, %v636_v24  ;;  %v635_v55 = vand.u32 255, %v506_v26  ;;  %v1419_v57 = vsel %vm3075_vm4, %v762_v28, 0.0  ;;  %v1381_v58 = vsel %vm3071_vm3, %v922_v30, 0.0 }
  0x81   :  { %v1451_v61 = vsel %vm3075_vm4, %v794_v29, 0.0  ;;  %v1348_v62 = vsel %vm3071_vm3, %v889_v31, 0.0  ;;  %v1418_v63 = vsel %vm3075_vm4, %v761_v33, 0.0  ;;  %v732_v2 = vshra.s32 %v668_v35, 4 }
  0x82   :  { %v860_v3 = vand.u32 15, %v668_v35  ;;  %v667_v4 = vand.u32 255, %v538_v36  ;;  %v1380_v5 = vsel %vm3071_vm3, %v921_v40, 0.0  ;;  %v1450_v6 = vsel %vm3075_vm4, %v793_v39, 0.0 }
  0x83   :  { %v509_v7 = vadd.s32 120, %v3053_v25  ;;  %v541_v10 = vadd.s32 376, %v3053_v25  ;;  %v764_v11 = vcvt.s32.f32 %v700_v45  ;;  %v892_v13 = vcvt.s32.f32 %v828_v54 }
  0x84   :  { %v827_v14 = vand.u32 15, %v635_v55  ;;  %v508_v15 = vadd.s32 112, %v3053_v25  ;;  %v3250_v17 = vadd.f32 %v1419_v57, %v1349_v44  ;;  %v3252_v19 = vadd.f32 %v1451_v61, %v1381_v58 }
  0x85   :  { %v699_v20 = vshra.s32 %v635_v55, 4  ;;  %v540_v21 = vadd.s32 368, %v3053_v25  ;;  %v796_v23 = vcvt.s32.f32 %v732_v2  ;;  %v924_v24 = vcvt.s32.f32 %v860_v3 }
  0x86   :  { %4671 = vst [vmem:[#allocation10_spill] sm:$0xff] %v3250_v17  ;;  %4672 = vst [vmem:[#allocation11_spill] sm:$0xff] %v3252_v19  ;;  %v731_v26 = vshra.s32 %v667_v4, 4  ;;  %v859_v28 = vand.u32 15, %v667_v4  ;;  %v3255_v29 = vadd.f32 %v1418_v63, %v1348_v62  ;;  %v3257_v30 = vadd.f32 %v1450_v6, %v1380_v5 }
  0x87   :  { %v638_v31 = vand.u32 255, %v509_v7  ;;  %v670_v33 = vand.u32 255, %v541_v10  ;;  %v1351_v35 = vsel %vm3071_vm3, %v892_v13, 0.0  ;;  %v1421_v36 = vsel %vm3075_vm4, %v764_v11, 0.0 }
  0x88   :  { %4673 = vst [vmem:[#allocation12_spill] sm:$0xff] %v3255_v29  ;;  %4674 = vst [vmem:[#allocation13_spill] sm:$0xff] %v3257_v30  ;;  %v891_v39 = vcvt.s32.f32 %v827_v14  ;;  %v637_v40 = vand.u32 255, %v508_v15  ;;  %v763_v44 = vcvt.s32.f32 %v699_v20  ;;  %v669_v45 = vand.u32 255, %v540_v21 }
  0x89   :  { %v511_v54 = vadd.s32 136, %v3053_v25  ;;  %v543_v55 = vadd.s32 392, %v3053_v25  ;;  %v1383_v57 = vsel %vm3071_vm3, %v924_v24, 0.0  ;;  %v1453_v58 = vsel %vm3075_vm4, %v796_v23, 0.0 }
  0x8a   :  { %v795_v61 = vcvt.s32.f32 %v731_v26  ;;  %v923_v62 = vcvt.s32.f32 %v859_v28  ;;  %v702_v63 = vshra.s32 %v638_v31, 4  ;;  %v830_v2 = vand.u32 15, %v638_v31 }
  0x8b   :  { %v734_v3 = vshra.s32 %v670_v33, 4  ;;  %v640_v4 = vand.u32 255, %v511_v54  ;;  %v1350_v5 = vsel %vm3071_vm3, %v891_v39, 0.0  ;;  %v862_v6 = vand.u32 15, %v670_v33 }
  0x8c   :  { %v701_v7 = vshra.s32 %v637_v40, 4  ;;  %v829_v10 = vand.u32 15, %v637_v40  ;;  %v1420_v11 = vsel %vm3075_vm4, %v763_v44, 0.0  ;;  %v733_v13 = vshra.s32 %v669_v45, 4 }
  0x8d   :  { %v861_v14 = vand.u32 15, %v669_v45  ;;  %v672_v15 = vand.u32 255, %v543_v55  ;;  %v1382_v20 = vsel %vm3071_vm3, %v923_v62, 0.0  ;;  %v704_v21 = vshra.s32 %v640_v4, 4 }
  0x8e   :  { %v832_v23 = vand.u32 15, %v640_v4  ;;  %v510_v24 = vadd.s32 128, %v3053_v25  ;;  %v766_v26 = vcvt.s32.f32 %v702_v63  ;;  %v894_v28 = vcvt.s32.f32 %v830_v2 }
  0x8f   :  { %v798_v31 = vcvt.s32.f32 %v734_v3  ;;  %v542_v33 = vadd.s32 384, %v3053_v25  ;;  %v926_v39 = vcvt.s32.f32 %v862_v6  ;;  %v765_v40 = vcvt.s32.f32 %v701_v7 }
  0x90   :  { %v893_v54 = vcvt.s32.f32 %v829_v10  ;;  %v639_v12 = vand.u32 255, %v510_v24  ;;  %v797_v44 = vcvt.s32.f32 %v733_v13  ;;  %v925_v9 = vcvt.s32.f32 %v861_v14 }
  0x91   :  { %v736_v45 = vshra.s32 %v672_v15, 4  ;;  %v864_v55 = vand.u32 15, %v672_v15  ;;  %v4675_v62 = vrot.slane %v3081_v53, %v3063_v34  ;;  %v1452_v63 = vsel %vm3075_vm4, %v795_v61, 0.0 }
  0x92   :  { %v768_v2 = vcvt.s32.f32 %v704_v21  ;;  %v896_v3 = vcvt.s32.f32 %v832_v23  ;;  %v671_v6 = vand.u32 255, %v542_v33  ;;  %v1353_v7 = vsel %vm3071_vm3, %v894_v28, 0.0 }
  0x93   :  { %vm3280_vm6 = vcmp.eq.s32.totalorder %v4675_v62, 1  ;;  %v1423_v10 = vsel %vm3075_vm4, %v766_v26, 0.0  ;;  %v703_v13 = vshra.s32 %v639_v12, 4  ;;  %v831_v14 = vand.u32 15, %v639_v12 }
  0x94   :  { %v1385_v53 = vsel %vm3071_vm3, %v926_v39, 0.0  ;;  %v1455_v15 = vsel %vm3075_vm4, %v798_v31, 0.0  ;;  %v1352_v61 = vsel %vm3071_vm3, %v893_v54, 0.0  ;;  %v1422_v21 = vsel %vm3075_vm4, %v765_v40, 0.0 }
  0x95   :  { %v1384_v23 = vsel %vm3071_vm3, %v925_v9, 0.0  ;;  %v1454_v24 = vsel %vm3075_vm4, %v797_v44, 0.0  ;;  %v800_v26 = vcvt.s32.f32 %v736_v45  ;;  %v928_v12 = vcvt.s32.f32 %v864_v55  ;;  %v3313_v9 = vld [vmem:[%s4647_s2] ss:$0 sm:$0xff] }
  0x96   :  { %v1355_v28 = vsel %vm3071_vm3, %v896_v3, 0.0  ;;  %v1425_v31 = vsel %vm3075_vm4, %v768_v2, 0.0  ;;  %v735_v33 = vshra.s32 %v671_v6, 4  ;;  %v863_v39 = vand.u32 15, %v671_v6 }
  0x97   :  { %v3306_v54 = vadd.f32 %v1421_v36, %v1351_v35  ;;  %v3308_v62 = vadd.f32 %v1453_v58, %v1383_v57  ;;  %v767_v40 = vcvt.s32.f32 %v703_v13  ;;  %v895_v30 = vcvt.s32.f32 %v831_v14 }
  0x98   :  { %v3315_v44 = vadd.f32 %v1420_v11, %v1350_v5  ;;  %v3317_v45 = vadd.f32 %v1452_v63, %v1382_v20  ;;  %v3319_v55 = vadd.f32 %v1423_v10, %v1353_v7  ;;  %v513_v2 = vadd.s32 152, %v3053_v25 }
  0x99   :  { %4678 = vst [vmem:[#allocation14_spill] sm:$0xff] %v3306_v54  ;;  %4679 = vst [vmem:[#allocation15_spill] sm:$0xff] %v3308_v62  ;;  %v3322_v3 = vadd.f32 %v1455_v15, %v1385_v53  ;;  %v3324_v35 = vadd.f32 %v1422_v21, %v1352_v61  ;;  %v3326_v36 = vadd.f32 %v1454_v24, %v1384_v23  ;;  %v1387_v5 = vsel %vm3071_vm3, %v928_v12, 0.0 }
  0x9a   :  { %4680 = vst [vmem:[#allocation16_spill] sm:$0xff] %v3315_v44  ;;  %4681 = vst [vmem:[#allocation17_spill] sm:$0xff] %v3317_v45  ;;  %v3328_v57 = vadd.f32 %v1425_v31, %v1355_v28  ;;  %v1457_v11 = vsel %vm3075_vm4, %v800_v26, 0.0  ;;  %v799_v20 = vcvt.s32.f32 %v735_v33  ;;  %v927_v63 = vcvt.s32.f32 %v863_v39 }
  0x9b   :  { %4682 = vst [vmem:[#allocation18_spill] sm:$0xff] %v3319_v55  ;;  %4683 = vst [vmem:[#allocation19_spill] sm:$0xff] %v3322_v3  ;;  %v1354_v53 = vsel %vm3071_vm3, %v895_v30, 0.0  ;;  %v1424_v15 = vsel %vm3075_vm4, %v767_v40, 0.0  ;;  %v642_v23 = vand.u32 255, %v513_v2  ;;  %v545_v24 = vadd.s32 408, %v3053_v25 }
  0x9c   :  { %4684 = vst [vmem:[#allocation20_spill] sm:$0xff] %v3324_v35  ;;  %4685 = vst [vmem:[#allocation21_spill] sm:$0xff] %v3326_v36  ;;  %v3347_v30 = vadd.f32 %v1457_v11, %v1387_v5  ;;  %v3349_v39 = vadd.f32 %v1424_v15, %v1354_v53  ;;  %v1386_v40 = vsel %vm3071_vm3, %v927_v63, 0.0 }
  0x9d   :  { %4686 = vst [vmem:[#allocation22_spill] sm:$0xff] %v3328_v57  ;;  %v834_v53 = vand.u32 15, %v642_v23  ;;  %v674_v15 = vand.u32 255, %v545_v24 }
  0x9e   :  { %4687 = vst [vmem:[#allocation23_spill] sm:$0xff] %v3347_v30  ;;  %4688 = vst [vmem:[#allocation24_spill] sm:$0xff] %v3349_v39 }
  0xf7   :  { %v2251_v58 = vpop.f32.mrb[0].mxu0  ;;  %v2299_v6 = vpop.f32.mrb[0].mxu1 }
  0xf8   :  { %v179_v7 = vadd.f32 %v2251_v58, %v3313_v9  ;;  %v339_v10 = vadd.f32 %v2299_v6, %v3313_v9  ;;  %v173_v13 = vpop.f32.mrb[1].mxu0  ;;  %v333_v14 = vpop.f32.mrb[1].mxu1 }
  0xf9   :  { %v174_v61 = vadd.f32 %v3313_v9, %v173_v13  ;;  %v334_v21 = vadd.f32 %v3313_v9, %v333_v14 }
  0xfa   :  { %v2073_v26 = vmul.f32 -1.442695, %v179_v7  ;;  %v1607_v12 = vsel %vm3280_vm6, %v179_v7, 0.0  ;;  %v2105_v28 = vmul.f32 -1.442695, %v339_v10  ;;  %v1639_v31 = vsel %vm3280_vm6, %v339_v10, 0.0 }
  0xfb   :  { %v1672_v33 = vmul.f32 1.442695, %v1607_v12  ;;  %v2072_v2 = vmul.f32 -1.442695, %v174_v61  ;;  %v1606_v58 = vsel %vm3280_vm6, %v174_v61, 0.0  ;;  %v2254_v6 = vpop.f32.mrb[2].mxu0 }
  0xfc   :  { %2394 = vpow2.f32 %v2073_v26  ;;  %v2302_v13 = vpop.f32.mrb[2].mxu1  ;;  %v1456_v7 = vsel %vm3075_vm4, %v799_v20, 0.0  ;;  %v1736_v14 = vmul.f32 1.442695, %v1639_v31  ;;  %v189_v10 = vadd.f32 %v2254_v6, %v3313_v9  ;;  %v183_v5 = vpop.f32.mrb[3].mxu0 }
  0xfd   :  { %v343_v11 = vpop.f32.mrb[3].mxu1  ;;  %2396 = vpow2.f32 %v2105_v28  ;;  %v2104_v12 = vmul.f32 -1.442695, %v334_v21  ;;  %v1638_v63 = vsel %vm3280_vm6, %v334_v21, 0.0  ;;  %v349_v26 = vadd.f32 %v2302_v13, %v3313_v9 }
  0xfe   :  { %2398 = vpow2.f32 %v1672_v33  ;;  %v1670_v61 = vmul.f32 1.442695, %v1606_v58  ;;  %v3361_v57 = vadd.f32 %v1456_v7, %v1386_v40  ;;  %v3363_v20 = vshra.s32 %v642_v23, 4 }
  0xff   :  { %v2257_v39 = vpop.f32.mrb[4].mxu0  ;;  %v2305_v30 = vpop.f32.mrb[4].mxu1  ;;  %2400 = vpow2.f32 %v2072_v2  ;;  %v2075_v31 = vmul.f32 -1.442695, %v189_v10  ;;  %v1609_v24 = vsel %vm3280_vm6, %v189_v10, 0.0  ;;  %v184_v28 = vadd.f32 %v3313_v9, %v183_v5 }
 0x100   :  { %4689 = vst [vmem:[#allocation25_spill] sm:$0xff] %v3361_v57  ;;  %4690 = vst [vmem:[#allocation26_spill] sm:$0xff] %v3363_v20  ;;  %v193_v6 = vpop.f32.mrb[5].mxu0  ;;  %2402 = vpow2.f32 %v1736_v14  ;;  %v1734_v21 = vmul.f32 1.442695, %v1638_v63  ;;  %v344_v13 = vadd.f32 %v3313_v9, %v343_v11  ;;  %v353_v33 = vpop.f32.mrb[5].mxu1  ;;  %v898_v7 = vcvt.s32.f32 %v834_v53 }
 0x101   :  { %v3369_v58 = vshra.s32 %v674_v15, 4  ;;  %2404 = vpow2.f32 %v2104_v12  ;;  %v2107_v40 = vmul.f32 -1.442695, %v349_v26  ;;  %v3371_v23 = vand.u32 15, %v674_v15 }
 0x102   :  { %2406 = vpow2.f32 %v1670_v61  ;;  %v1676_v2 = vmul.f32 1.442695, %v1609_v24  ;;  %v1641_v10 = vsel %vm3280_vm6, %v349_v26, 0.0  ;;  %v3376_v14 = vadd.s32 144, %v3053_v25 }
 0x103   :  { %4691 = vst [vmem:[#allocation27_spill] sm:$0xff] %v3369_v58  ;;  %4692 = vst [vmem:[#allocation28_spill] sm:$0xff] %v3371_v23  ;;  %v2260_v57 = vpop.f32.mrb[6].mxu0  ;;  %v2308_v5 = vpop.f32.mrb[6].mxu1  ;;  %2408 = vpow2.f32 %v2075_v31  ;;  %v2074_v11 = vmul.f32 -1.442695, %v184_v28  ;;  %v199_v61 = vadd.f32 %v2257_v39, %v3313_v9  ;;  %v359_v35 = vadd.f32 %v2305_v30, %v3313_v9 }
 0x104   :  { %4693 = vst [vmem:[#allocation29_spill] sm:$0xff] %v3376_v14  ;;  %v1608_v63 = vsel %vm3280_vm6, %v184_v28, 0.0  ;;  %v3380_v12 = vpop.f32.mrb[7].mxu0  ;;  %v3382_v53 = vpop.f32.mrb[7].mxu1  ;;  %2410 = vpow2.f32 %v1734_v21  ;;  %v1640_v26 = vsel %vm3280_vm6, %v344_v13, 0.0  ;;  %v3392_v28 = vsel %vm3071_vm3, %v898_v7, 0.0 }
 0x105   :  { %2412 = vpow2.f32 %v2107_v40  ;;  %v1740_v31 = vmul.f32 1.442695, %v1641_v10  ;;  %4694 = vst [vmem:[#allocation30_spill] sm:$0xff] %v3392_v28  ;;  %v1674_v15 = vmul.f32 1.442695, %v1608_v63  ;;  %v194_v21 = vadd.f32 %v3313_v9, %v193_v6 }
 0x106   :  { %v2395_v36 = vpop.eup %2394  ;;  %2414 = vpow2.f32 %v1676_v2  ;;  %v2106_v24 = vmul.f32 -1.442695, %v344_v13  ;;  %v1738_v40 = vmul.f32 1.442695, %v1640_v26  ;;  %v1611_v6 = vsel %vm3280_vm6, %v199_v61, 0.0 }
 0x107   :  { %v1141_v3 = vadd.f32 1.0, %v2395_v36  ;;  %v3395_v55 = vpop.f32.mrb[8].mxu0  ;;  %v3397_v25 = vpop.f32.mrb[8].mxu1  ;;  %2416 = vpow2.f32 %v2074_v11  ;;  %v354_v2 = vadd.f32 %v3313_v9, %v353_v33  ;;  %v3410_v13 = vld [vmem:[%s4648_s4] ss:$0 sm:$0xff]  ;;  %v1643_v26 = vsel %vm3280_vm6, %v359_v35, 0.0 }
 0x108   :  { %v2397_v39 = vpop.eup %2396  ;;  %v3399_v10 = vpop.f32.mrb[9].mxu0  ;;  %v2077_v11 = vmul.f32 -1.442695, %v199_v61  ;;  %v209_v7 = vadd.f32 %v2260_v57, %v3313_v9  ;;  %v2109_v58 = vmul.f32 -1.442695, %v359_v35  ;;  %v364_v19 = vadd.f32 %v3313_v9, %v3382_v53 }
 0x109   :  { %v3401_v30 = vpop.f32.mrb[9].mxu1  ;;  %v2399_v45 = vpop.eup %2398  ;;  %2418 = vrcp.f32 %v1141_v3  ;;  %v1173_v36 = vadd.f32 1.0, %v2397_v39  ;;  %v4695_v39 = vrot.slane %v3088_v60, %v3063_v34  ;;  %v1680_v57 = vmul.f32 1.442695, %v1611_v6 }
 0x10a   :  { %v2401_v63 = vpop.eup %2400  ;;  %2420 = vpow2.f32 %v1740_v31  ;;  %v1610_v31 = vsel %vm3280_vm6, %v194_v21, 0.0  ;;  %v3428_v62 = vmul.f32 -1.442695, %v194_v21  ;;  %v369_v34 = vadd.f32 %v2308_v5, %v3313_v9 }
 0x10b   :  { %v2403_v3 = vpop.eup %2402  ;;  %vm3418_vm7 = vcmp.eq.s32.totalorder %v4695_v39, 1  ;;  %2422 = vrcp.f32 %v1173_v36  ;;  %v1140_v33 = vadd.f32 1.0, %v2401_v63  ;;  %v3424_v61 = vpop.f32.mrb[10].mxu0  ;;  %v1805_v35 = vmul.f32 %v2399_v45, %v3410_v13 }
 0x10c   :  { %v3426_v47 = vpop.f32.mrb[10].mxu1  ;;  %v2405_v23 = vpop.eup %2404  ;;  %2424 = vpow2.f32 %v2106_v24  ;;  %v3436_v14 = vmul.f32 1.442695, %v1643_v26  ;;  %v3438_v54 = vmul.f32 1.442695, %v1610_v31  ;;  %v1642_v5 = vsel %vm3280_vm6, %v354_v2, 0.0 }
 0x10d   :  { %v3431_v60 = vpop.f32.mrb[11].mxu0  ;;  %v3433_v39 = vpop.f32.mrb[11].mxu1  ;;  %2426 = vrcp.f32 %v1140_v33  ;;  %v1172_v63 = vadd.f32 1.0, %v2405_v23  ;;  %v3440_v24 = vmul.f32 -1.442695, %v354_v2  ;;  %v1613_v45 = vsel %vm3280_vm6, %v209_v7, 0.0 }
 0x10e   :  { %v2407_v36 = vpop.eup %2406  ;;  %2428 = vpow2.f32 %v1674_v15  ;;  %v3444_v48 = vmul.f32 -1.442695, %v209_v7  ;;  %v1837_v33 = vmul.f32 %v2403_v3, %v3410_v13  ;;  %v1645_v31 = vsel %vm3280_vm6, %v369_v34, 0.0 }
 0x10f   :  { %v2409_v28 = vpop.eup %2408  ;;  %2430 = vrcp.f32 %v1172_v63  ;;  %v3448_v23 = vpop.f32.mrb[12].mxu0  ;;  %v204_v2 = vadd.f32 %v3313_v9, %v3380_v12  ;;  %v3461_v29 = vmul.f32 1.442695, %v1642_v5  ;;  %v3466_v17 = vmul.f32 1.442695, %v1613_v45 }
 0x110   :  { %v2411_v21 = vpop.eup %2410  ;;  %v1143_v6 = vadd.f32 1.0, %v2409_v28  ;;  %v3450_v26 = vpop.f32.mrb[12].mxu1  ;;  %2432 = vpow2.f32 %v2077_v11  ;;  %v1804_v11 = vmul.f32 %v2407_v36, %v3410_v13  ;;  %v3468_v38 = vmul.f32 -1.442695, %v369_v34 }
 0x111   :  { %v2413_v15 = vpop.eup %2412  ;;  %v3457_v28 = vpop.f32.mrb[13].mxu0  ;;  %v3471_v37 = vmul.f32 %v2411_v21, %v3410_v13  ;;  %v1612_v34 = vsel %vm3280_vm6, %v204_v2, 0.0 }
 0x112   :  { %v3459_v63 = vpop.f32.mrb[13].mxu1  ;;  %v2415_v20 = vpop.eup %2414  ;;  %2434 = vrcp.f32 %v1143_v6  ;;  %v1175_v7 = vadd.f32 1.0, %v2413_v15  ;;  %v3473_v15 = vmul.f32 1.442695, %v1645_v31 }
 0x113   :  { %v2417_v3 = vpop.eup %2416  ;;  %2436 = vpow2.f32 %v1738_v40  ;;  %v3475_v5 = vpop.f32.mrb[14].mxu0  ;;  %v3480_v40 = vmul.f32 -1.442695, %v204_v2  ;;  %v3489_v31 = vmul.f32 %v2415_v20, %v3410_v13 }
 0x114   :  { %v2419_v12 = vpop.eup %2418  ;;  %2438 = vrcp.f32 %v1175_v7  ;;  %v1142_v6 = vadd.f32 1.0, %v2417_v3  ;;  %v3477_v32 = vpop.f32.mrb[14].mxu1  ;;  %v3491_v3 = vmul.f32 -1.442695, %v364_v19 }
 0x115   :  { %4698 = vst [vmem:[#allocation31_spill] sm:$0xff] %v3477_v32  ;;  %v2421_v53 = vpop.eup %2420  ;;  %v1537_v36 = vadd.f32 %v2419_v12, %v3096_v8  ;;  %2440 = vpow2.f32 %v2109_v58  ;;  %v3484_v45 = vpop.f32.mrb[15].mxu0  ;;  %v1644_v8 = vsel %vm3280_vm6, %v364_v19, 0.0  ;;  %v3503_v32 = vmul.f32 1.442695, %v1612_v34 }
 0x116   :  { %4699 = vst [vmem:[#allocation32_spill] sm:$0xff] %v3484_v45  ;;  %v3486_v21 = vpop.f32.mrb[15].mxu1  ;;  %v2423_v7 = vpop.eup %2422  ;;  %2442 = vrcp.f32 %v1142_v6  ;;  %v1839_v34 = vmul.f32 %v2421_v53, %v3410_v13 }
 0x117   :  { %4700 = vst [vmem:[#allocation33_spill] sm:$0xff] %v3486_v21  ;;  %v2425_v58 = vpop.eup %2424  ;;  %v1876_v56 = vsel %vm3418_vm7, %v1537_v36, %v2419_v12  ;;  %v1569_v2 = vadd.f32 %v2423_v7, %v3102_v16  ;;  %2444 = vpow2.f32 %v1680_v57  ;;  %v219_v21 = vadd.f32 %v3395_v55, %v3313_v9  ;;  %v3505_v19 = vpop.f32.mrb[16].mxu0 }
 0x118   :  { %v2427_v45 = vpop.eup %2426  ;;  %v1940_v20 = vsel %vm3280_vm6, %v1805_v35, %v1876_v56  ;;  %v1174_v6 = vadd.f32 1.0, %v2425_v58  ;;  %2446 = vpow2.f32 %v3428_v62  ;;  %v3507_v51 = vpop.f32.mrb[16].mxu1  ;;  %v3518_v62 = vmul.f32 1.442695, %v1644_v8 }
 0x119   :  { %v3509_v12 = vpop.eup %2428  ;;  %2004 = vst [vmem:[%s4649_s5 + $0x8] sm:$0xff] %v1940_v20  ;;  %v1908_v16 = vsel %vm3418_vm7, %v1569_v2, %v2423_v7  ;;  %v1536_v56 = vadd.f32 %v2427_v45, %v3123_v42  ;;  %2448 = vpow2.f32 %v3436_v14  ;;  %v3520_v55 = vpop.f32.mrb[17].mxu0  ;;  %v379_v7 = vadd.f32 %v3397_v25, %v3313_v9 }
 0x11a   :  { %v3522_v57 = vpop.f32.mrb[17].mxu1  ;;  %v2431_v35 = vpop.eup %2430  ;;  %v1972_v36 = vsel %vm3280_vm6, %v1837_v33, %v1908_v16  ;;  %2450 = vrcp.f32 %v1174_v6  ;;  %v1615_v33 = vsel %vm3280_vm6, %v219_v21, 0.0  ;;  %v214_v2 = vadd.f32 %v3313_v9, %v3399_v10 }
 0x11b   :  { %v2433_v58 = vpop.eup %2432  ;;  %2036 = vst [vmem:[%s4649_s5 + $0x108] sm:$0xff] %v1972_v36  ;;  %v1875_v42 = vsel %vm3418_vm7, %v1536_v56, %v2427_v45  ;;  %v1568_v14 = vadd.f32 %v2431_v35, %v3125_v46  ;;  %2452 = vpow2.f32 %v3440_v24  ;;  %v3543_v20 = vpop.f32.mrb[18].mxu0  ;;  %v3563_v36 = vmul.f32 1.442695, %v1615_v33 }
 0x11c   :  { %v2435_v53 = vpop.eup %2434  ;;  %v1939_v8 = vsel %vm3280_vm6, %v1804_v11, %v1875_v42  ;;  %v1145_v25 = vadd.f32 1.0, %v2433_v58  ;;  %2454 = vpow2.f32 %v3438_v54  ;;  %v3545_v45 = vpop.f32.mrb[18].mxu1  ;;  %v3554_v54 = vmul.f32 -1.442695, %v219_v21 }
 0x11d   :  { %v2437_v46 = vpop.eup %2436  ;;  %2003 = vst [vmem:[%s4649_s5] sm:$0xff] %v1939_v8  ;;  %v1907_v24 = vsel %vm3418_vm7, %v1568_v14, %v2431_v35  ;;  %v1539_v11 = vadd.f32 %v2435_v53, %v3127_v49  ;;  %2456 = vpow2.f32 %v3444_v48  ;;  %v3556_v6 = vpop.f32.mrb[19].mxu0  ;;  %v3565_v58 = vmul.f32 -1.442695, %v379_v7 }
 0x11e   :  { %v3558_v10 = vpop.f32.mrb[19].mxu1  ;;  %v2439_v16 = vpop.eup %2438  ;;  %v1971_v56 = vsel %vm3280_vm6, %v3471_v37, %v1907_v24  ;;  %2458 = vrcp.f32 %v1145_v25  ;;  %v1647_v37 = vsel %vm3280_vm6, %v379_v7, 0.0  ;;  %v1614_v33 = vsel %vm3280_vm6, %v214_v2, 0.0 }
 0x11f   :  { %v2441_v35 = vpop.eup %2440  ;;  %2035 = vst [vmem:[%s4649_s5 + $0x100] sm:$0xff] %v1971_v56  ;;  %v1878_v48 = vsel %vm3418_vm7, %v1539_v11, %v2435_v53  ;;  %v1571_v49 = vadd.f32 %v2439_v16, %v3129_v52  ;;  %2460 = vpow2.f32 %v3461_v29  ;;  %v3582_v8 = vpop.f32.mrb[20].mxu0  ;;  %v1806_v56 = vmul.f32 %v3509_v12, %v3410_v13 }
 0x120   :  { %v2443_v21 = vpop.eup %2442  ;;  %v1942_v42 = vsel %vm3280_vm6, %v3489_v31, %v1878_v48  ;;  %v1177_v14 = vadd.f32 1.0, %v2441_v35  ;;  %2462 = vpow2.f32 %v3468_v38  ;;  %v3584_v53 = vpop.f32.mrb[20].mxu1  ;;  %v374_v38 = vadd.f32 %v3313_v9, %v3401_v30 }
 0x121   :  { %v2445_v52 = vpop.eup %2444  ;;  %2006 = vst [vmem:[%s4649_s5 + $0x18] sm:$0xff] %v1942_v42  ;;  %v1910_v29 = vsel %vm3418_vm7, %v1571_v49, %v2439_v16  ;;  %v1538_v31 = vadd.f32 %v2443_v21, %v3147_v18  ;;  %2464 = vpow2.f32 %v3466_v17  ;;  %v3595_v7 = vpop.f32.mrb[21].mxu0  ;;  %v3603_v16 = vmul.f32 -1.442695, %v214_v2 }
 0x122   :  { %v3597_v25 = vpop.f32.mrb[21].mxu1  ;;  %v2447_v24 = vpop.eup %2446  ;;  %v1974_v11 = vsel %vm3280_vm6, %v1839_v34, %v1910_v29  ;;  %2466 = vrcp.f32 %v1177_v14  ;;  %v229_v34 = vadd.f32 %v3424_v61, %v3313_v9  ;;  %v3616_v2 = vmul.f32 1.442695, %v1647_v37 }
 0x123   :  { %v2449_v18 = vpop.eup %2448  ;;  %2038 = vst [vmem:[%s4649_s5 + $0x118] sm:$0xff] %v1974_v11  ;;  %v1877_v17 = vsel %vm3418_vm7, %v1538_v31, %v2443_v21  ;;  %v1144_v30 = vadd.f32 1.0, %v2447_v24  ;;  %2468 = vpow2.f32 %v3480_v40  ;;  %v3618_v48 = vmul.f32 1.442695, %v1614_v33  ;;  %v3620_v49 = vpop.f32.mrb[22].mxu0 }
 0x124   :  { %v2451_v35 = vpop.eup %2450  ;;  %v1941_v12 = vsel %vm3280_vm6, %v1806_v56, %v1877_v17  ;;  %2470 = vpow2.f32 %v3473_v15  ;;  %v3622_v42 = vpop.f32.mrb[22].mxu1  ;;  %v1838_v40 = vmul.f32 %v2437_v46, %v3410_v13  ;;  %v3629_v14 = vmul.f32 -1.442695, %v374_v38 }
 0x125   :  { %v2453_v21 = vpop.eup %2452  ;;  %2005 = vst [vmem:[%s4649_s5 + $0x10] sm:$0xff] %v1941_v12  ;;  %v1570_v61 = vadd.f32 %v2451_v35, %v3150_v22  ;;  %2472 = vrcp.f32 %v1144_v30  ;;  %v3631_v15 = vpop.f32.mrb[23].mxu0  ;;  %v1646_v31 = vsel %vm3280_vm6, %v374_v38, 0.0  ;;  %v389_v24 = vadd.f32 %v3426_v47, %v3313_v9 }
 0x126   :  { %v3633_v37 = vpop.f32.mrb[23].mxu1  ;;  %v2455_v33 = vpop.eup %2454  ;;  %v1176_v29 = vadd.f32 1.0, %v2453_v21  ;;  %2474 = vpow2.f32 %v3491_v3  ;;  %v1809_v11 = vmul.f32 %v2445_v52, %v3410_v13  ;;  %v1617_v56 = vsel %vm3280_vm6, %v229_v34, 0.0 }
 0x127   :  { %v2457_v22 = vpop.eup %2456  ;;  %v1909_v46 = vsel %vm3418_vm7, %v1570_v61, %v2451_v35  ;;  %2476 = vpow2.f32 %v3503_v32  ;;  %v224_v47 = vadd.f32 %v3313_v9, %v3431_v60  ;;  %v3650_v30 = vpop.f32.mrb[24].mxu0  ;;  %v3659_v52 = vmul.f32 1.442695, %v1646_v31 }
 0x128   :  { %v2459_v17 = vpop.eup %2458  ;;  %v1973_v3 = vsel %vm3280_vm6, %v1838_v40, %v1909_v46  ;;  %2478 = vrcp.f32 %v1176_v29  ;;  %v1147_v38 = vadd.f32 1.0, %v2457_v22  ;;  %v3652_v12 = vpop.f32.mrb[24].mxu1  ;;  %v3661_v21 = vmul.f32 -1.442695, %v229_v34 }
 0x129   :  { %v2461_v35 = vpop.eup %2460  ;;  %2037 = vst [vmem:[%s4649_s5 + $0x110] sm:$0xff] %v1973_v3  ;;  %v1541_v32 = vadd.f32 %v2459_v17, %v3152_v27  ;;  %2480 = vpow2.f32 %v3554_v54  ;;  %v3663_v61 = vpop.f32.mrb[25].mxu0  ;;  %v1841_v29 = vmul.f32 %v2449_v18, %v3410_v13  ;;  %v3668_v22 = vmul.f32 1.442695, %v1617_v56 }
 0x12a   :  { %v3665_v60 = vpop.f32.mrb[25].mxu1  ;;  %v2463_v40 = vpop.eup %2462  ;;  %2482 = vrcp.f32 %v1147_v38  ;;  %v1649_v46 = vsel %vm3280_vm6, %v389_v24, 0.0  ;;  %v384_v34 = vadd.f32 %v3313_v9, %v3433_v39  ;;  %v1808_v56 = vmul.f32 %v2455_v33, %v3410_v13 }
 0x12b   :  { %4701 = vst [vmem:[#allocation34_spill] sm:$0xff] %v3665_v60  ;;  %v2465_v27 = vpop.eup %2464  ;;  %v1880_v54 = vsel %vm3418_vm7, %v1541_v32, %v2459_v17  ;;  %v1179_v31 = vadd.f32 1.0, %v2463_v40  ;;  %2484 = vpow2.f32 %v3518_v62  ;;  %v1616_v38 = vsel %vm3280_vm6, %v224_v47, 0.0 }
 0x12c   :  { %v2467_v3 = vpop.eup %2466  ;;  %v1944_v18 = vsel %vm3280_vm6, %v1809_v11, %v1880_v54  ;;  %2486 = vpow2.f32 %v3565_v58  ;;  %v2115_v39 = vmul.f32 -1.442695, %v389_v24  ;;  %v3687_v17 = vmul.f32 -1.442695, %v224_v47 }
 0x12d   :  { %v2469_v60 = vpop.eup %2468  ;;  %2008 = vst [vmem:[%s4649_s5 + $0x28] sm:$0xff] %v1944_v18  ;;  %v1573_v62 = vadd.f32 %v2467_v3, %v3169_v59  ;;  %2488 = vrcp.f32 %v1179_v31  ;;  %v1840_v11 = vmul.f32 %v2461_v35, %v3410_v13  ;;  %v3691_v58 = vmul.f32 1.442695, %v1649_v46  ;;  %v3707_v46 = vpop.f32.mrb[26].mxu1 }
 0x12e   :  { %v2471_v32 = vpop.eup %2470  ;;  %v1146_v33 = vadd.f32 1.0, %v2469_v60  ;;  %2490 = vpow2.f32 %v3563_v36  ;;  %v3696_v18 = vmul.f32 1.442695, %v1616_v38  ;;  %v1648_v59 = vsel %vm3280_vm6, %v384_v34, 0.0  ;;  %v3705_v60 = vpop.f32.mrb[26].mxu0 }
 0x12f   :  { %v2473_v40 = vpop.eup %2472  ;;  %v1912_v54 = vsel %vm3418_vm7, %v1573_v62, %v2467_v3  ;;  %2492 = vpow2.f32 %v3603_v16  ;;  %v239_v36 = vadd.f32 %v3448_v23, %v3313_v9  ;;  %v1811_v31 = vmul.f32 %v2465_v27, %v3410_v13 }
 0x130   :  { %v2475_v24 = vpop.eup %2474  ;;  %v1976_v47 = vsel %vm3280_vm6, %v1841_v29, %v1912_v54  ;;  %v1540_v35 = vadd.f32 %v2473_v40, %v3171_v0  ;;  %2494 = vrcp.f32 %v1146_v33  ;;  %v399_v0 = vadd.f32 %v3450_v26, %v3313_v9 }
 0x131   :  { %v2477_v16 = vpop.eup %2476  ;;  %2040 = vst [vmem:[%s4649_s5 + $0x128] sm:$0xff] %v1976_v47  ;;  %v1178_v3 = vadd.f32 1.0, %v2475_v24  ;;  %2496 = vpow2.f32 %v3616_v2  ;;  %v3719_v38 = vmul.f32 -1.442695, %v384_v34  ;;  %v3721_v62 = vmul.f32 1.442695, %v1648_v59 }
 0x132   :  { %v2479_v29 = vpop.eup %2478  ;;  %v1879_v23 = vsel %vm3418_vm7, %v1540_v35, %v2473_v40  ;;  %2498 = vpow2.f32 %v3629_v14  ;;  %v1843_v2 = vmul.f32 %v2471_v32, %v3410_v13  ;;  %v3731_v14 = vmul.f32 -1.442695, %v239_v36 }
 0x133   :  { %v2481_v33 = vpop.eup %2480  ;;  %v1943_v27 = vsel %vm3280_vm6, %v1808_v56, %v1879_v23  ;;  %v1572_v54 = vadd.f32 %v2479_v29, %v3173_v1  ;;  %2500 = vrcp.f32 %v1178_v3  ;;  %v1619_v34 = vsel %vm3280_vm6, %v239_v36, 0.0 }
 0x134   :  { %v2483_v26 = vpop.eup %2482  ;;  %2007 = vst [vmem:[%s4649_s5 + $0x20] sm:$0xff] %v1943_v27  ;;  %v1149_v40 = vadd.f32 1.0, %v2481_v33  ;;  %2502 = vpow2.f32 %v3618_v48  ;;  %v234_v32 = vadd.f32 %v3313_v9, %v3457_v28  ;;  %v3743_v47 = vmul.f32 -1.442695, %v399_v0 }
 0x135   :  { %v2485_v59 = vpop.eup %2484  ;;  %v1911_v1 = vsel %vm3418_vm7, %v1572_v54, %v2479_v29  ;;  %v1543_v56 = vadd.f32 %v2483_v26, %v3199_v41  ;;  %2504 = vpow2.f32 %v3661_v21  ;;  %v1651_v35 = vsel %vm3280_vm6, %v399_v0, 0.0 }
 0x136   :  { %v2487_v24 = vpop.eup %2486  ;;  %v1975_v48 = vsel %vm3280_vm6, %v1840_v11, %v1911_v1  ;;  %2506 = vrcp.f32 %v1149_v40  ;;  %v3753_v28 = vmul.f32 1.442695, %v1619_v34  ;;  %v3755_v11 = vpop.f32.mrb[27].mxu0  ;;  %v394_v23 = vadd.f32 %v3313_v9, %v3459_v63 }
 0x137   :  { %v2489_v36 = vpop.eup %2488  ;;  %2039 = vst [vmem:[%s4649_s5 + $0x120] sm:$0xff] %v1975_v48  ;;  %v1882_v41 = vsel %vm3418_vm7, %v1543_v56, %v2483_v26  ;;  %v1181_v21 = vadd.f32 1.0, %v2487_v24  ;;  %2508 = vpow2.f32 %v3659_v52  ;;  %v1810_v52 = vmul.f32 %v2477_v16, %v3410_v13  ;;  %v3775_v26 = vpop.f32.mrb[27].mxu1 }
 0x138   :  { %v2491_v3 = vpop.eup %2490  ;;  %v1946_v29 = vsel %vm3280_vm6, %v1811_v31, %v1882_v41  ;;  %v1575_v0 = vadd.f32 %v2489_v36, %v3201_v43  ;;  %2510 = vpow2.f32 %v2115_v39  ;;  %v3766_v27 = vmul.f32 1.442695, %v1651_v35  ;;  %v4703_v41 = vld [vmem:[#allocation31_spill] sm:$0xff] }
 0x139   :  { %v2493_v33 = vpop.eup %2492  ;;  %2010 = vst [vmem:[%s4649_s5 + $0x38] sm:$0xff] %v1946_v29  ;;  %2512 = vrcp.f32 %v1181_v21  ;;  %v1618_v54 = vsel %vm3280_vm6, %v234_v32, 0.0  ;;  %v249_v63 = vadd.f32 %v3475_v5, %v3313_v9  ;;  %v1842_v1 = vmul.f32 %v2485_v59, %v3410_v13 }
 0x13a   :  { %v2495_v31 = vpop.eup %2494  ;;  %v1914_v43 = vsel %vm3418_vm7, %v1575_v0, %v2489_v36  ;;  %v1148_v39 = vadd.f32 1.0, %v2493_v33  ;;  %2514 = vpow2.f32 %v3668_v22  ;;  %v2084_v22 = vmul.f32 -1.442695, %v234_v32  ;;  %v4702_v36 = vld [vmem:[#allocation5_spill] sm:$0xff] }
 0x13b   :  { %v2497_v40 = vpop.eup %2496  ;;  %v1978_v16 = vsel %vm3280_vm6, %v1843_v2, %v1914_v43  ;;  %v1542_v34 = vadd.f32 %v2495_v31, %v3203_v50  ;;  %2516 = vpow2.f32 %v3687_v17  ;;  %v3785_v5 = vmul.f32 1.442695, %v1618_v54 }
 0x13c   :  { %v2499_v56 = vpop.eup %2498  ;;  %2042 = vst [vmem:[%s4649_s5 + $0x138] sm:$0xff] %v1978_v16  ;;  %2518 = vrcp.f32 %v1148_v39  ;;  %v1650_v24 = vsel %vm3280_vm6, %v394_v23, 0.0  ;;  %v3792_v17 = vmul.f32 -1.442695, %v394_v23  ;;  %v409_v21 = vadd.f32 %v4703_v41, %v3313_v9  ;;  %v4705_v16 = vld [vmem:[#allocation32_spill] sm:$0xff] }
 0x13d   :  { %v2501_v48 = vpop.eup %2500  ;;  %v1881_v50 = vsel %vm3418_vm7, %v1542_v34, %v2495_v31  ;;  %v1180_v2 = vadd.f32 1.0, %v2499_v56  ;;  %2520 = vpow2.f32 %v3691_v58  ;;  %v1813_v58 = vmul.f32 %v2491_v3, %v3410_v13  ;;  %v4704_v3 = vld [vmem:[#allocation6_spill] sm:$0xff] }
 0x13e   :  { %v2503_v59 = vpop.eup %2502  ;;  %v1945_v35 = vsel %vm3280_vm6, %v1810_v52, %v1881_v50  ;;  %v1574_v32 = vadd.f32 %v2501_v48, %v4702_v36  ;;  %2522 = vpow2.f32 %v3719_v38  ;;  %v3804_v0 = vmul.f32 1.442695, %v1650_v24 }
 0x13f   :  { %v2505_v29 = vpop.eup %2504  ;;  %2009 = vst [vmem:[%s4649_s5 + $0x30] sm:$0xff] %v1945_v35  ;;  %2524 = vrcp.f32 %v1180_v2  ;;  %v1621_v23 = vsel %vm3280_vm6, %v249_v63, 0.0  ;;  %v3811_v54 = vmul.f32 -1.442695, %v249_v63  ;;  %v244_v34 = vadd.f32 %v3313_v9, %v4705_v16 }
 0x140   :  { %v2507_v33 = vpop.eup %2506  ;;  %v1913_v38 = vsel %vm3418_vm7, %v1574_v32, %v2501_v48  ;;  %v1151_v52 = vadd.f32 1.0, %v2505_v29  ;;  %2526 = vpow2.f32 %v3696_v18  ;;  %v1845_v18 = vmul.f32 %v2497_v40, %v3410_v13  ;;  %v4706_v40 = vld [vmem:[#allocation7_spill] sm:$0xff]  ;;  %v4707_v32 = vld [vmem:[#allocation33_spill] sm:$0xff]  ;;  %v3838_v29 = vpop.f32.mrb[28].mxu0 }
 0x141   :  { %v2509_v31 = vpop.eup %2508  ;;  %v1977_v43 = vsel %vm3280_vm6, %v1842_v1, %v1913_v38  ;;  %v1545_v39 = vadd.f32 %v2507_v33, %v4704_v3  ;;  %2528 = vpow2.f32 %v3731_v14  ;;  %v3823_v63 = vmul.f32 1.442695, %v1621_v23 }
 0x142   :  { %v2511_v56 = vpop.eup %2510  ;;  %2041 = vst [vmem:[%s4649_s5 + $0x130] sm:$0xff] %v1977_v43  ;;  %2530 = vrcp.f32 %v1151_v52  ;;  %v3825_v24 = vmul.f32 -1.442695, %v409_v21  ;;  %v1653_v50 = vsel %vm3280_vm6, %v409_v21, 0.0  ;;  %v404_v41 = vadd.f32 %v3313_v9, %v4707_v32 }
 0x143   :  { %v2513_v1 = vpop.eup %2512  ;;  %v1884_v48 = vsel %vm3418_vm7, %v1545_v39, %v2507_v33  ;;  %v1183_v14 = vadd.f32 1.0, %v2511_v56  ;;  %2532 = vpow2.f32 %v3721_v62  ;;  %v1812_v62 = vmul.f32 %v2503_v59, %v3410_v13  ;;  %v4708_v59 = vld [vmem:[#allocation8_spill] sm:$0xff] }
 0x144   :  { %v2515_v2 = vpop.eup %2514  ;;  %v1948_v35 = vsel %vm3280_vm6, %v1813_v58, %v1884_v48  ;;  %v1577_v36 = vadd.f32 %v2513_v1, %v4706_v40  ;;  %2534 = vpow2.f32 %v3743_v47  ;;  %v3844_v21 = vmul.f32 -1.442695, %v244_v34 }
 0x145   :  { %v2517_v23 = vpop.eup %2516  ;;  %2012 = vst [vmem:[%s4649_s5 + $0x48] sm:$0xff] %v1948_v35  ;;  %2536 = vrcp.f32 %v1183_v14  ;;  %v1620_v58 = vsel %vm3280_vm6, %v244_v34, 0.0  ;;  %v3851_v52 = vmul.f32 1.442695, %v1653_v50  ;;  %v259_v16 = vadd.f32 %v3505_v19, %v3313_v9  ;;  %v3858_v34 = vpop.f32.mrb[28].mxu1 }
 0x146   :  { %v2519_v33 = vpop.eup %2518  ;;  %v1916_v47 = vsel %vm3418_vm7, %v1577_v36, %v2513_v1  ;;  %v1150_v38 = vadd.f32 1.0, %v2517_v23  ;;  %2538 = vpow2.f32 %v3753_v28  ;;  %v1844_v28 = vmul.f32 %v2509_v31, %v3410_v13  ;;  %v4709_v31 = vld [vmem:[#allocation9_spill] sm:$0xff] }
 0x147   :  { %v2521_v43 = vpop.eup %2520  ;;  %v1980_v3 = vsel %vm3280_vm6, %v1845_v18, %v1916_v47  ;;  %v1544_v39 = vadd.f32 %v2519_v33, %v4708_v59  ;;  %2540 = vpow2.f32 %v2084_v22  ;;  %v3864_v1 = vmul.f32 1.442695, %v1620_v58  ;;  %v3898_v59 = vpop.f32.mrb[29].mxu0 }
 0x148   :  { %v2523_v56 = vpop.eup %2522  ;;  %2044 = vst [vmem:[%s4649_s5 + $0x148] sm:$0xff] %v1980_v3  ;;  %2542 = vrcp.f32 %v1150_v38  ;;  %v3866_v48 = vmul.f32 -1.442695, %v404_v41  ;;  %v1652_v19 = vsel %vm3280_vm6, %v404_v41, 0.0  ;;  %v419_v36 = vadd.f32 %v3507_v51, %v3313_v9 }
 0x149   :  { %v2525_v18 = vpop.eup %2524  ;;  %v1883_v22 = vsel %vm3418_vm7, %v1544_v39, %v2519_v33  ;;  %v1182_v14 = vadd.f32 1.0, %v2523_v56  ;;  %2544 = vpow2.f32 %v3766_v27  ;;  %v1815_v27 = vmul.f32 %v2515_v2, %v3410_v13  ;;  %v4710_v2 = vld [vmem:[#allocation10_spill] sm:$0xff] }
 0x14a   :  { %v2527_v50 = vpop.eup %2526  ;;  %v1947_v35 = vsel %vm3280_vm6, %v1812_v62, %v1883_v22  ;;  %v1576_v40 = vadd.f32 %v2525_v18, %v4709_v31  ;;  %2546 = vpow2.f32 %v3792_v17  ;;  %v3883_v41 = vmul.f32 -1.442695, %v259_v16 }
 0x14b   :  { %v2529_v32 = vpop.eup %2528  ;;  %2011 = vst [vmem:[%s4649_s5 + $0x40] sm:$0xff] %v1947_v35  ;;  %2548 = vrcp.f32 %v1182_v14  ;;  %v1623_v23 = vsel %vm3280_vm6, %v259_v16, 0.0  ;;  %v3890_v51 = vmul.f32 1.442695, %v1652_v19  ;;  %v254_v3 = vadd.f32 %v3313_v9, %v3520_v55  ;;  %v3920_v19 = vld [vmem:[%s4647_s2] ss:$0 sm:$0xff] }
 0x14c   :  { %v2531_v62 = vpop.eup %2530  ;;  %v1915_v17 = vsel %vm3418_vm7, %v1576_v40, %v2525_v18  ;;  %v1153_v58 = vadd.f32 1.0, %v2529_v32  ;;  %2550 = vpow2.f32 %v3785_v5  ;;  %v1847_v5 = vmul.f32 %v2521_v43, %v3410_v13  ;;  %v4711_v43 = vld [vmem:[#allocation11_spill] sm:$0xff] }
 0x14d   :  { %v2533_v33 = vpop.eup %2532  ;;  %v1979_v47 = vsel %vm3280_vm6, %v1844_v28, %v1915_v17  ;;  %v1547_v38 = vadd.f32 %v2531_v62, %v4710_v2  ;;  %2552 = vpow2.f32 %v3811_v54  ;;  %v3904_v16 = vmul.f32 1.442695, %v1623_v23  ;;  %v4712_v17 = vld [vmem:[#allocation12_spill] sm:$0xff] }
 0x14e   :  { %v2535_v39 = vpop.eup %2534  ;;  %2043 = vst [vmem:[%s4649_s5 + $0x140] sm:$0xff] %v1979_v47  ;;  %2554 = vrcp.f32 %v1153_v58  ;;  %v3906_v56 = vmul.f32 -1.442695, %v419_v36  ;;  %v1655_v9 = vsel %vm3280_vm6, %v419_v36, 0.0  ;;  %v414_v35 = vadd.f32 %v3920_v19, %v3522_v57  ;;  %v3932_v36 = vpop.f32.mrb[29].mxu1 }
 0x14f   :  { %v2537_v28 = vpop.eup %2536  ;;  %v1886_v54 = vsel %vm3418_vm7, %v1547_v38, %v2531_v62  ;;  %v1185_v18 = vadd.f32 1.0, %v2535_v39  ;;  %2556 = vpow2.f32 %v3804_v0  ;;  %v1814_v31 = vmul.f32 %v2527_v50, %v3410_v13 }
 0x150   :  { %v2539_v55 = vpop.eup %2538  ;;  %v1950_v22 = vsel %vm3280_vm6, %v1815_v27, %v1886_v54  ;;  %v1579_v14 = vadd.f32 %v2537_v28, %v4711_v43  ;;  %2558 = vpow2.f32 %v3825_v24  ;;  %v3928_v40 = vmul.f32 -1.442695, %v254_v3  ;;  %v4714_v43 = vld [vmem:[#allocation26_spill] sm:$0xff] }
 0x151   :  { %v2541_v0 = vpop.eup %2540  ;;  %2014 = vst [vmem:[%s4649_s5 + $0x58] sm:$0xff] %v1950_v22  ;;  %2560 = vrcp.f32 %v1185_v18  ;;  %v1622_v24 = vsel %vm3280_vm6, %v254_v3, 0.0  ;;  %v3937_v23 = vmul.f32 1.442695, %v1655_v9  ;;  %v269_v47 = vadd.f32 %v3920_v19, %v3543_v20 }
 0x152   :  { %v2543_v32 = vpop.eup %2542  ;;  %v1918_v27 = vsel %vm3418_vm7, %v1579_v14, %v2537_v28  ;;  %v1152_v57 = vadd.f32 1.0, %v2541_v0  ;;  %2562 = vpow2.f32 %v3823_v63  ;;  %v1846_v63 = vmul.f32 %v2533_v33, %v3410_v13  ;;  %v4713_v33 = vld [vmem:[#allocation13_spill] sm:$0xff] }
 0x153   :  { %v2545_v62 = vpop.eup %2544  ;;  %v1982_v50 = vsel %vm3280_vm6, %v1847_v5, %v1918_v27  ;;  %v1546_v58 = vadd.f32 %v2543_v32, %v4712_v17  ;;  %2564 = vpow2.f32 %v3844_v21  ;;  %v3949_v38 = vmul.f32 1.442695, %v1622_v24 }
 0x154   :  { %v2547_v2 = vpop.eup %2546  ;;  %2046 = vst [vmem:[%s4649_s5 + $0x158] sm:$0xff] %v1982_v50  ;;  %2566 = vrcp.f32 %v1152_v57  ;;  %v3951_v3 = vmul.f32 -1.442695, %v414_v35  ;;  %v1654_v20 = vsel %vm3280_vm6, %v414_v35, 0.0  ;;  %v1817_v9 = vmul.f32 %v2539_v55, %v3410_v13  ;;  %v4717_v50 = vld [vmem:[#allocation14_spill] sm:$0xff] }
 0x155   :  { %v2549_v39 = vpop.eup %2548  ;;  %v1885_v5 = vsel %vm3418_vm7, %v1546_v58, %v2543_v32  ;;  %v1184_v21 = vadd.f32 1.0, %v2547_v2  ;;  %2568 = vpow2.f32 %v3851_v52  ;;  %v3966_v52 = vmul.f32 -1.442695, %v269_v47 }
 0x156   :  { %v2551_v28 = vpop.eup %2550  ;;  %v1949_v54 = vsel %vm3280_vm6, %v1814_v31, %v1885_v5  ;;  %v1578_v18 = vadd.f32 %v2549_v39, %v4713_v33  ;;  %2570 = vpow2.f32 %v3866_v48  ;;  %v4715_v14 = vcvt.s32.f32 %v4714_v43 }
 0x157   :  { %v2553_v22 = vpop.eup %2552  ;;  %2013 = vst [vmem:[%s4649_s5 + $0x50] sm:$0xff] %v1949_v54  ;;  %2572 = vrcp.f32 %v1184_v21  ;;  %v1625_v31 = vsel %vm3280_vm6, %v269_v47, 0.0  ;;  %v3977_v32 = vmul.f32 1.442695, %v1654_v20  ;;  %v429_v58 = vadd.f32 %v3920_v19, %v3545_v45  ;;  %v3985_v47 = vpop.f32.mrb[30].mxu0  ;;  %v4719_v20 = vld [vmem:[#allocation29_spill] sm:$0xff] }
 0x158   :  { %v1427_v0 = vsel %vm3075_vm4, %v4715_v14, 0.0  ;;  %v2555_v24 = vpop.eup %2554  ;;  %v1917_v48 = vsel %vm3418_vm7, %v1578_v18, %v2549_v39  ;;  %v1155_v55 = vadd.f32 1.0, %v2553_v22  ;;  %2574 = vpow2.f32 %v3864_v1  ;;  %v4718_v39 = vld [vmem:[#allocation30_spill] sm:$0xff]  ;;  %v4005_v14 = vpop.f32.mrb[30].mxu1 }
 0x159   :  { %v2557_v27 = vpop.eup %2556  ;;  %v1981_v57 = vsel %vm3280_vm6, %v1846_v63, %v1917_v48  ;;  %v1549_v17 = vadd.f32 %v2555_v24, %v4717_v50  ;;  %2576 = vpow2.f32 %v3883_v41  ;;  %v1849_v1 = vmul.f32 %v2545_v62, %v3410_v13  ;;  %v4720_v62 = vld [vmem:[#allocation15_spill] sm:$0xff] }
 0x15a   :  { %v2559_v2 = vpop.eup %2558  ;;  %2045 = vst [vmem:[%s4649_s5 + $0x150] sm:$0xff] %v1981_v57  ;;  %2578 = vrcp.f32 %v1155_v55  ;;  %v3992_v5 = vadd.f32 %v1427_v0, %v4718_v39  ;;  %v3994_v63 = vmul.f32 1.442695, %v1625_v31  ;;  %v641_v54 = vand.u32 255, %v4719_v20 }
 0x15b   :  { %v2561_v21 = vpop.eup %2560  ;;  %v1888_v41 = vsel %vm3418_vm7, %v1549_v17, %v2555_v24  ;;  %v1187_v45 = vadd.f32 1.0, %v2559_v2  ;;  %2580 = vpow2.f32 %v3890_v51  ;;  %v1816_v43 = vmul.f32 %v2551_v28, %v3410_v13  ;;  %v4721_v51 = vld [vmem:[#allocation28_spill] sm:$0xff] }
 0x15c   :  { %v2563_v33 = vpop.eup %2562  ;;  %v1952_v18 = vsel %vm3280_vm6, %v1817_v9, %v1888_v41  ;;  %v1581_v22 = vadd.f32 %v2561_v21, %v4720_v62  ;;  %2582 = vpow2.f32 %v3906_v56  ;;  %v4722_v31 = vcvt.s32.f32 %v4721_v51  ;;  %v4724_v9 = vld [vmem:[#allocation27_spill] sm:$0xff] }
 0x15d   :  { %v2565_v0 = vpop.eup %2564  ;;  %2016 = vst [vmem:[%s4649_s5 + $0x68] sm:$0xff] %v1952_v18  ;;  %2584 = vrcp.f32 %v1187_v45  ;;  %v4725_v55 = vcvt.s32.f32 %v4724_v9  ;;  %v1657_v56 = vsel %vm3280_vm6, %v429_v58, 0.0  ;;  %v264_v2 = vadd.f32 %v3920_v19, %v3556_v6  ;;  %v4726_v45 = vld [vmem:[#allocation16_spill] sm:$0xff]  ;;  %v4727_v9 = vld [vmem:[#allocation17_spill] sm:$0xff] }
 0x15e   :  { %v4014_v48 = vsel %vm3071_vm3, %v4722_v31, 0.0  ;;  %v2567_v57 = vpop.eup %2566  ;;  %v1920_v50 = vsel %vm3418_vm7, %v1581_v22, %v2561_v21  ;;  %v1154_v17 = vadd.f32 1.0, %v2565_v0  ;;  %2586 = vpow2.f32 %v3904_v16 }
 0x15f   :  { %v4020_v28 = vsel %vm3075_vm4, %v4725_v55, 0.0  ;;  %v2569_v39 = vpop.eup %2568  ;;  %v1984_v41 = vsel %vm3280_vm6, %v1849_v1, %v1920_v50  ;;  %v1548_v20 = vadd.f32 %v2567_v57, %v4726_v45  ;;  %2588 = vpow2.f32 %v3928_v40  ;;  %v4729_v45 = vld [vmem:[#allocation18_spill] sm:$0xff] }
 0x160   :  { %v705_v18 = vshra.s32 %v641_v54, 4  ;;  %v2571_v62 = vpop.eup %2570  ;;  %2048 = vst [vmem:[%s4649_s5 + $0x168] sm:$0xff] %v1984_v41  ;;  %v1848_v21 = vmul.f32 %v2557_v27, %v3410_v13  ;;  %2590 = vrcp.f32 %v1154_v17  ;;  %v2123_v16 = vmul.f32 -1.442695, %v429_v58 }
 0x161   :  { %v4037_v22 = vmul.f32 1.442695, %v1657_v56  ;;  %v2573_v6 = vpop.eup %2572  ;;  %v1887_v1 = vsel %vm3418_vm7, %v1548_v20, %v2567_v57  ;;  %v1819_v0 = vmul.f32 %v2563_v33, %v3410_v13  ;;  %v1186_v51 = vadd.f32 1.0, %v2571_v62  ;;  %v4052_v33 = vpop.f32.mrb[31].mxu0 }
 0x162   :  { %2592 = vpow2.f32 %v3937_v23  ;;  %v2575_v40 = vpop.eup %2574  ;;  %v1951_v31 = vsel %vm3280_vm6, %v1816_v43, %v1887_v1  ;;  %v1580_v55 = vadd.f32 %v2573_v6, %v4727_v9  ;;  %v833_v27 = vand.u32 15, %v641_v54 }
 0x163   :  { %2594 = vpow2.f32 %v3951_v3  ;;  %v2577_v58 = vpop.eup %2576  ;;  %2015 = vst [vmem:[%s4649_s5 + $0x60] sm:$0xff] %v1951_v31  ;;  %v769_v56 = vcvt.s32.f32 %v705_v18  ;;  %v2090_v13 = vmul.f32 -1.442695, %v264_v2  ;;  %v1624_v23 = vsel %vm3280_vm6, %v264_v2, 0.0  ;;  %v4728_v3 = vld [vmem:[#allocation2_spill] sm:$0xff]  ;;  %v4080_v31 = vpop.f32.mrb[31].mxu1 }
 0x164   :  { %2596 = vrcp.f32 %v1186_v51  ;;  %v2579_v57 = vpop.eup %2578  ;;  %v1919_v43 = vsel %vm3418_vm7, %v1580_v55, %v2573_v6  ;;  %v1157_v50 = vadd.f32 1.0, %v2577_v58  ;;  %v544_v54 = vadd.s32 400, %v4728_v3 }
 0x165   :  { %2598 = vpow2.f32 %v3949_v38  ;;  %v2581_v17 = vpop.eup %2580  ;;  %v1983_v41 = vsel %vm3280_vm6, %v1848_v21, %v1919_v43  ;;  %v1551_v20 = vadd.f32 %v2579_v57, %v4729_v45  ;;  %v4064_v2 = vadd.f32 %v3920_v19, %v3558_v10  ;;  %v4072_v38 = vld [vmem:[%s4648_s4] ss:$0 sm:$0xff] }
 0x166   :  { %2600 = vpow2.f32 %v3966_v52  ;;  %v2583_v18 = vpop.eup %2582  ;;  %2047 = vst [vmem:[%s4649_s5 + $0x160] sm:$0xff] %v1983_v41  ;;  %v1851_v62 = vmul.f32 %v4072_v38, %v2569_v39  ;;  %v897_v21 = vcvt.s32.f32 %v833_v27  ;;  %v1706_v6 = vmul.f32 1.442695, %v1624_v23  ;;  %v4730_v39 = vld [vmem:[#allocation19_spill] sm:$0xff]  ;;  %v4731_v41 = vld [vmem:[#allocation20_spill] sm:$0xff] }
 0x167   :  { %2602 = vrcp.f32 %v1157_v50  ;;  %v2585_v52 = vpop.eup %2584  ;;  %v1890_v10 = vsel %vm3418_vm7, %v1551_v20, %v2579_v57  ;;  %v1189_v1 = vadd.f32 1.0, %v2583_v18  ;;  %v1426_v51 = vsel %vm3075_vm4, %v769_v56, 0.0 }
 0x168   :  { %2604 = vpow2.f32 %v3977_v32  ;;  %v2587_v9 = vpop.eup %2586  ;;  %v1954_v55 = vsel %vm3280_vm6, %v1819_v0, %v1890_v10  ;;  %v1583_v58 = vadd.f32 %v2585_v52, %v4730_v39  ;;  %v673_v27 = vand.u32 255, %v544_v54  ;;  %v4732_v39 = vld [vmem:[#allocation21_spill] sm:$0xff] }
 0x169   :  { %2606 = vpow2.f32 %v2123_v16  ;;  %v2589_v23 = vpop.eup %2588  ;;  %2018 = vst [vmem:[%s4649_s5 + $0x78] sm:$0xff] %v1954_v55  ;;  %v1818_v32 = vmul.f32 %v4072_v38, %v2575_v40  ;;  %v2122_v56 = vmul.f32 -1.442695, %v4064_v2  ;;  %v4092_v57 = vadd.f32 %v3920_v19, %v3582_v8 }
 0x16a   :  { %2608 = vrcp.f32 %v1189_v1  ;;  %v2591_v43 = vpop.eup %2590  ;;  %v1922_v0 = vsel %vm3418_vm7, %v1583_v58, %v2585_v52  ;;  %v1156_v16 = vadd.f32 1.0, %v2589_v23  ;;  %v515_v50 = vadd.s32 168, %v4728_v3 }
 0x16b   :  { %2610 = vpow2.f32 %v3994_v63  ;;  %v1986_v40 = vsel %vm3280_vm6, %v1851_v62, %v1922_v0  ;;  %v1550_v45 = vadd.f32 %v2591_v43, %v4731_v41  ;;  %v1356_v8 = vsel %vm3071_vm3, %v897_v21, 0.0  ;;  %v4733_v41 = vld [vmem:[#allocation22_spill] sm:$0xff] }
 0x16c   :  { %v2593_v54 = vpop.eup %2592  ;;  %2612 = vpow2.f32 %v2090_v13  ;;  %2050 = vst [vmem:[%s4649_s5 + $0x178] sm:$0xff] %v1986_v40  ;;  %v737_v18 = vshra.s32 %v673_v27, 4  ;;  %v865_v63 = vand.u32 15, %v673_v27  ;;  %v1656_v52 = vsel %vm3280_vm6, %v4064_v2, 0.0 }
 0x16d   :  { %v2595_v20 = vpop.eup %2594  ;;  %2614 = vrcp.f32 %v1156_v16  ;;  %v1889_v62 = vsel %vm3418_vm7, %v1550_v45, %v2591_v43  ;;  %v2093_v21 = vmul.f32 -1.442695, %v4092_v57  ;;  %v644_v27 = vand.u32 255, %v515_v50 }
 0x16e   :  { %v2597_v10 = vpop.eup %2596  ;;  %v1188_v13 = vadd.f32 1.0, %v2595_v20  ;;  %2616 = vpow2.f32 %v4037_v22  ;;  %v1953_v55 = vsel %vm3280_vm6, %v1818_v32, %v1889_v62  ;;  %v1850_v2 = vmul.f32 %v4072_v38, %v2581_v17 }
 0x16f   :  { %v2599_v1 = vpop.eup %2598  ;;  %v1582_v58 = vadd.f32 %v2597_v10, %v4732_v39  ;;  %2618 = vpow2.f32 %v2122_v56  ;;  %2017 = vst [vmem:[%s4649_s5 + $0x70] sm:$0xff] %v1953_v55  ;;  %v4122_v22 = vadd.f32 %v4020_v28, %v4014_v48  ;;  %v4124_v43 = vadd.f32 %v1426_v51, %v1356_v8 }
 0x170   :  { %v2601_v23 = vpop.eup %2600  ;;  %2620 = vrcp.f32 %v1188_v13  ;;  %v801_v16 = vcvt.s32.f32 %v737_v18  ;;  %v1770_v45 = vmul.f32 1.442695, %v1656_v52  ;;  %v1821_v48 = vmul.f32 %v4072_v38, %v2587_v9 }
 0x171   :  { %v2603_v0 = vpop.eup %2602  ;;  %v1921_v32 = vsel %vm3418_vm7, %v1582_v58, %v2597_v10  ;;  %v1159_v56 = vadd.f32 1.0, %v2601_v23  ;;  %2622 = vpow2.f32 %v1706_v6  ;;  %v929_v28 = vcvt.s32.f32 %v865_v63 }
 0x172   :  { %v2605_v50 = vpop.eup %2604  ;;  %v1985_v40 = vsel %vm3280_vm6, %v1850_v2, %v1921_v32  ;;  %v1553_v17 = vadd.f32 %v2603_v0, %v4733_v41  ;;  %2624 = vpow2.f32 %v2093_v21  ;;  %v708_v51 = vshra.s32 %v644_v27, 4  ;;  %v4734_v21 = vld [vmem:[#allocation23_spill] sm:$0xff] }
 0x173   :  { %v2607_v20 = vpop.eup %2606  ;;  %2049 = vst [vmem:[%s4649_s5 + $0x170] sm:$0xff] %v1985_v40  ;;  %2626 = vrcp.f32 %v1159_v56  ;;  %v836_v10 = vand.u32 15, %v644_v27  ;;  %v439_v52 = vadd.f32 %v3920_v19, %v3584_v53  ;;  %v1853_v9 = vmul.f32 %v4072_v38, %v2593_v54  ;;  %v4735_v40 = vld [vmem:[#allocation24_spill] sm:$0xff] }
 0x174   :  { %v2609_v6 = vpop.eup %2608  ;;  %v1892_v8 = vsel %vm3418_vm7, %v1553_v17, %v2603_v0  ;;  %v1191_v18 = vadd.f32 1.0, %v2607_v20  ;;  %v1458_v63 = vsel %vm3075_vm4, %v801_v16, 0.0  ;;  %v1627_v53 = vsel %vm3280_vm6, %v4092_v57, 0.0 }
 0x175   :  { %v2611_v62 = vpop.eup %2610  ;;  %v1956_v13 = vsel %vm3280_vm6, %v1821_v48, %v1892_v8  ;;  %v1585_v55 = vadd.f32 %v2609_v6, %v4734_v21  ;;  %v547_v58 = vadd.s32 424, %v4728_v3  ;;  %v2125_v27 = vmul.f32 -1.442695, %v439_v52 }
 0x176   :  { %v2613_v39 = vpop.eup %2612  ;;  %2020 = vst [vmem:[%s4649_s5 + $0x88] sm:$0xff] %v1956_v13  ;;  %2628 = vrcp.f32 %v1191_v18  ;;  %v1388_v0 = vsel %vm3071_vm3, %v929_v28, 0.0  ;;  %v772_v32 = vcvt.s32.f32 %v708_v51  ;;  %v900_v17 = vcvt.s32.f32 %v836_v10 }
 0x177   :  { %v2615_v23 = vpop.eup %2614  ;;  %v1924_v54 = vsel %vm3418_vm7, %v1585_v55, %v2609_v6  ;;  %v1158_v2 = vadd.f32 1.0, %v2613_v39  ;;  %2630 = vpow2.f32 %v2125_v27  ;;  %v1820_v20 = vmul.f32 %v4072_v38, %v2599_v1  ;;  %v4736_v55 = vld [vmem:[#allocation25_spill] sm:$0xff] }
 0x178   :  { %v2617_v56 = vpop.eup %2616  ;;  %v1988_v16 = vsel %vm3280_vm6, %v1853_v9, %v1924_v54  ;;  %v1552_v41 = vadd.f32 %v2615_v23, %v4735_v40  ;;  %v1852_v48 = vmul.f32 %v4072_v38, %v2605_v50  ;;  %v1712_v28 = vmul.f32 1.442695, %v1627_v53 }
 0x179   :  { %v2619_v57 = vpop.eup %2618  ;;  %2052 = vst [vmem:[%s4649_s5 + $0x188] sm:$0xff] %v1988_v16  ;;  %2632 = vrcp.f32 %v1158_v2  ;;  %v676_v18 = vand.u32 255, %v547_v58  ;;  %v1659_v10 = vsel %vm3280_vm6, %v439_v52, 0.0  ;;  %v514_v1 = vadd.s32 160, %v4728_v3 }
 0x17a   :  { %v2621_v51 = vpop.eup %2620  ;;  %v1891_v6 = vsel %vm3418_vm7, %v1552_v41, %v2615_v23  ;;  %v1190_v8 = vadd.f32 1.0, %v2619_v57  ;;  %2634 = vpow2.f32 %v1770_v45  ;;  %v1359_v39 = vsel %vm3071_vm3, %v900_v17, 0.0 }
 0x17b   :  { %v2623_v13 = vpop.eup %2622  ;;  %v1955_v21 = vsel %vm3280_vm6, %v1820_v20, %v1891_v6  ;;  %v1584_v9 = vadd.f32 %v2621_v51, %v4736_v55  ;;  %v1429_v52 = vsel %vm3075_vm4, %v772_v32, 0.0  ;;  %v274_v53 = vadd.f32 %v3920_v19, %v3595_v7 }
 0x17c   :  { %v2625_v50 = vpop.eup %2624  ;;  %2019 = vst [vmem:[%s4649_s5 + $0x80] sm:$0xff] %v1955_v21  ;;  %2636 = vrcp.f32 %v1190_v8  ;;  %v1776_v23 = vmul.f32 1.442695, %v1659_v10  ;;  %v740_v16 = vshra.s32 %v676_v18, 4  ;;  %v868_v40 = vand.u32 15, %v676_v18 }
 0x17d   :  { %v2627_v58 = vpop.eup %2626  ;;  %v1923_v45 = vsel %vm3418_vm7, %v1584_v9, %v2621_v51  ;;  %v1161_v27 = vadd.f32 1.0, %v2625_v50  ;;  %2638 = vpow2.f32 %v1712_v28  ;;  %v1823_v7 = vmul.f32 %v4072_v38, %v2611_v62 }
 0x17e   :  { %v1987_v54 = vsel %vm3280_vm6, %v1852_v48, %v1923_v45  ;;  %v1555_v2 = vadd.f32 %v2627_v58, %v3992_v5  ;;  %v1522_v32 = vadd.f32 %v1458_v63, %v1388_v0  ;;  %v643_v41 = vand.u32 255, %v514_v1 }
 0x17f   :  { %2051 = vst [vmem:[%s4649_s5 + $0x180] sm:$0xff] %v1987_v54  ;;  %2640 = vrcp.f32 %v1161_v27  ;;  %v1855_v20 = vmul.f32 %v4072_v38, %v2617_v56  ;;  %v1493_v48 = vadd.f32 %v1429_v52, %v1359_v39  ;;  %v2092_v28 = vmul.f32 -1.442695, %v274_v53 }
 0x180   :  { %v2629_v17 = vpop.eup %2628  ;;  %v1894_v57 = vsel %vm3418_vm7, %v1555_v2, %v2627_v58  ;;  %v1822_v6 = vmul.f32 %v4072_v38, %v2623_v13  ;;  %2642 = vpow2.f32 %v1776_v23  ;;  %v804_v63 = vcvt.s32.f32 %v740_v16 }
 0x181   :  { %v1958_v5 = vsel %vm3280_vm6, %v1823_v7, %v1894_v57  ;;  %v1587_v51 = vadd.f32 %v2629_v17, %v4122_v22  ;;  %v2631_v62 = vpop.eup %2630  ;;  %v932_v0 = vcvt.s32.f32 %v868_v40  ;;  %2644 = vpow2.f32 %v2092_v28 }
 0x182   :  { %2022 = vst [vmem:[%s4649_s5 + $0x98] sm:$0xff] %v1958_v5  ;;  %v434_v56 = vadd.f32 %v3920_v19, %v3597_v25  ;;  %v1193_v10 = vadd.f32 1.0, %v2631_v62  ;;  %v707_v22 = vshra.s32 %v643_v41, 4  ;;  %v546_v13 = vadd.s32 416, %v4728_v3 }
 0x183   :  { %v2633_v8 = vpop.eup %2632  ;;  %v1926_v18 = vsel %vm3418_vm7, %v1587_v51, %v2629_v17  ;;  %v289_v1 = vadd.f32 %v3920_v19, %v3620_v49  ;;  %v835_v25 = vand.u32 15, %v643_v41  ;;  %v1626_v39 = vsel %vm3280_vm6, %v274_v53, 0.0 }
 0x184   :  { %v1990_v21 = vsel %vm3280_vm6, %v1855_v20, %v1926_v18  ;;  %v1554_v55 = vadd.f32 %v2633_v8, %v4124_v43  ;;  %v2124_v9 = vmul.f32 -1.442695, %v434_v56  ;;  %v2635_v50 = vpop.eup %2634  ;;  %2646 = vrcp.f32 %v1193_v10 }
 0x185   :  { %2054 = vst [vmem:[%s4649_s5 + $0x198] sm:$0xff] %v1990_v21  ;;  %v517_v52 = vadd.s32 184, %v4728_v3  ;;  %v1391_v45 = vsel %vm3071_vm3, %v932_v0, 0.0  ;;  %v1461_v49 = vsel %vm3075_vm4, %v804_v63, 0.0  ;;  %v675_v2 = vand.u32 255, %v546_v13 }
 0x186   :  { %v2637_v58 = vpop.eup %2636  ;;  %v1893_v43 = vsel %vm3418_vm7, %v1554_v55, %v2633_v8  ;;  %2648 = vpow2.f32 %v2124_v9  ;;  %v1658_v53 = vsel %vm3280_vm6, %v434_v56, 0.0  ;;  %v1854_v16 = vmul.f32 %v4072_v38, %v2635_v50 }
 0x187   :  { %v2639_v27 = vpop.eup %2638  ;;  %v1957_v23 = vsel %vm3280_vm6, %v1822_v6, %v1893_v43  ;;  %v1586_v54 = vadd.f32 %v2637_v58, %v1522_v32  ;;  %v1710_v40 = vmul.f32 1.442695, %v1626_v39  ;;  %v646_v7 = vand.u32 255, %v517_v52 }
 0x188   :  { %2021 = vst [vmem:[%s4649_s5 + $0x90] sm:$0xff] %v1957_v23  ;;  %v2095_v41 = vmul.f32 -1.442695, %v289_v1  ;;  %v1525_v20 = vadd.f32 %v1461_v49, %v1391_v45  ;;  %v771_v28 = vcvt.s32.f32 %v707_v22  ;;  %v899_v32 = vcvt.s32.f32 %v835_v25 }
 0x189   :  { %v2641_v17 = vpop.eup %2640  ;;  %v1925_v57 = vsel %vm3418_vm7, %v1586_v54, %v2637_v58  ;;  %v1825_v6 = vmul.f32 %v4072_v38, %v2639_v27  ;;  %v1774_v62 = vmul.f32 1.442695, %v1658_v53  ;;  %v739_v0 = vshra.s32 %v675_v2, 4 }
 0x18a   :  { %v1989_v5 = vsel %vm3280_vm6, %v1854_v16, %v1925_v57  ;;  %v1557_v51 = vadd.f32 %v2641_v17, %v1493_v48  ;;  %v2643_v63 = vpop.eup %2642  ;;  %2650 = vpow2.f32 %v2095_v41  ;;  %v1629_v56 = vsel %vm3280_vm6, %v289_v1, 0.0 }
 0x18b   :  { %2053 = vst [vmem:[%s4649_s5 + $0x190] sm:$0xff] %v1989_v5  ;;  %v449_v8 = vadd.f32 %v3920_v19, %v3622_v42  ;;  %v2645_v18 = vpop.eup %2644  ;;  %2652 = vpow2.f32 %v1710_v40  ;;  %v867_v10 = vand.u32 15, %v675_v2  ;;  %v710_v22 = vshra.s32 %v646_v7, 4 }
 0x18c   :  { %v1896_v48 = vsel %vm3418_vm7, %v1557_v51, %v2641_v17  ;;  %v1160_v21 = vadd.f32 1.0, %v2645_v18  ;;  %v838_v55 = vand.u32 15, %v646_v7  ;;  %v549_v9 = vadd.s32 440, %v4728_v3 }
 0x18d   :  { %v1960_v13 = vsel %vm3280_vm6, %v1825_v6, %v1896_v48  ;;  %v1358_v42 = vsel %vm3071_vm3, %v899_v32, 0.0  ;;  %2654 = vpow2.f32 %v1774_v62  ;;  %v1716_v1 = vmul.f32 1.442695, %v1629_v56 }
 0x18e   :  { %2024 = vst [vmem:[%s4649_s5 + $0xa8] sm:$0xff] %v1960_v13  ;;  %v2127_v50 = vmul.f32 -1.442695, %v449_v8  ;;  %v2647_v25 = vpop.eup %2646  ;;  %2656 = vrcp.f32 %v1160_v21  ;;  %v1428_v39 = vsel %vm3075_vm4, %v771_v28, 0.0  ;;  %v803_v52 = vcvt.s32.f32 %v739_v0 }
 0x18f   :  { %v678_v58 = vand.u32 255, %v549_v9  ;;  %v1589_v45 = vadd.f32 %v2647_v25, %v1525_v20  ;;  %v931_v49 = vcvt.s32.f32 %v867_v10  ;;  %v284_v27 = vadd.f32 %v3920_v19, %v3631_v15 }
 0x190   :  { %v2649_v43 = vpop.eup %2648  ;;  %2658 = vpow2.f32 %v2127_v50  ;;  %v1857_v23 = vmul.f32 %v4072_v38, %v2643_v63  ;;  %v774_v2 = vcvt.s32.f32 %v710_v22  ;;  %v902_v53 = vcvt.s32.f32 %v838_v55 }
 0x191   :  { %v1192_v54 = vadd.f32 1.0, %v2649_v43  ;;  %v1928_v16 = vsel %vm3418_vm7, %v1589_v45, %v2647_v25  ;;  %2660 = vpow2.f32 %v1716_v1  ;;  %v516_v40 = vadd.s32 176, %v4728_v3 }
 0x192   :  { %v2094_v7 = vmul.f32 -1.442695, %v284_v27  ;;  %v1992_v41 = vsel %vm3280_vm6, %v1857_v23, %v1928_v16  ;;  %v742_v17 = vshra.s32 %v678_v58, 4  ;;  %v1661_v15 = vsel %vm3280_vm6, %v449_v8, 0.0 }
 0x193   :  { %2662 = vrcp.f32 %v1192_v54  ;;  %2056 = vst [vmem:[%s4649_s5 + $0x1a8] sm:$0xff] %v1992_v41  ;;  %v1492_v57 = vadd.f32 %v1428_v39, %v1358_v42  ;;  %v1390_v20 = vsel %vm3071_vm3, %v931_v49, 0.0  ;;  %v1460_v28 = vsel %vm3075_vm4, %v803_v52, 0.0 }
 0x194   :  { %2664 = vpow2.f32 %v2094_v7  ;;  %v2651_v32 = vpop.eup %2650  ;;  %v1361_v5 = vsel %vm3071_vm3, %v902_v53, 0.0  ;;  %v870_v51 = vand.u32 15, %v678_v58  ;;  %v1628_v6 = vsel %vm3280_vm6, %v284_v27, 0.0 }
 0x195   :  { %v444_v62 = vadd.f32 %v3920_v19, %v3633_v37  ;;  %v2653_v63 = vpop.eup %2652  ;;  %v1163_v0 = vadd.f32 1.0, %v2651_v32  ;;  %v1431_v56 = vsel %vm3075_vm4, %v774_v2, 0.0  ;;  %v1780_v8 = vmul.f32 1.442695, %v1661_v15 }
 0x196   :  { %v645_v18 = vand.u32 255, %v516_v40  ;;  %v806_v48 = vcvt.s32.f32 %v742_v17  ;;  %v548_v10 = vadd.s32 432, %v4728_v3  ;;  %v1524_v21 = vadd.f32 %v1460_v28, %v1390_v20 }
 0x197   :  { %v2126_v22 = vmul.f32 -1.442695, %v444_v62  ;;  %v2655_v13 = vpop.eup %2654  ;;  %2666 = vrcp.f32 %v1163_v0  ;;  %v1714_v55 = vmul.f32 1.442695, %v1628_v6  ;;  %v299_v9 = vadd.f32 %v3920_v19, %v3650_v30 }
 0x198   :  { %v2657_v42 = vpop.eup %2656  ;;  %v1824_v37 = vmul.f32 %v4072_v38, %v2653_v63  ;;  %v1495_v1 = vadd.f32 %v1431_v56, %v1361_v5  ;;  %v934_v50 = vcvt.s32.f32 %v870_v51  ;;  %v709_v52 = vshra.s32 %v645_v18, 4 }
 0x199   :  { %2668 = vpow2.f32 %v2126_v22  ;;  %v1556_v39 = vadd.f32 %v2657_v42, %v1492_v57  ;;  %v837_v58 = vand.u32 15, %v645_v18  ;;  %v1856_v43 = vmul.f32 %v4072_v38, %v2655_v13 }
 0x19a   :  { %v2659_v25 = vpop.eup %2658  ;;  %2670 = vpow2.f32 %v1780_v8  ;;  %v1463_v49 = vsel %vm3075_vm4, %v806_v48, 0.0  ;;  %v677_v27 = vand.u32 255, %v548_v10  ;;  %v519_v54 = vadd.s32 200, %v4728_v3 }
 0x19b   :  { %v1195_v45 = vadd.f32 1.0, %v2659_v25  ;;  %v2661_v23 = vpop.eup %2660  ;;  %v1895_v30 = vsel %vm3418_vm7, %v1556_v39, %v2657_v42  ;;  %2672 = vpow2.f32 %v1714_v55  ;;  %v2097_v2 = vmul.f32 -1.442695, %v299_v9 }
 0x19c   :  { %v1959_v16 = vsel %vm3280_vm6, %v1824_v37, %v1895_v30  ;;  %v1393_v40 = vsel %vm3071_vm3, %v934_v50, 0.0  ;;  %v1660_v7 = vsel %vm3280_vm6, %v444_v62, 0.0  ;;  %v773_v15 = vcvt.s32.f32 %v709_v52 }
 0x19d   :  { %v2663_v53 = vpop.eup %2662  ;;  %2674 = vrcp.f32 %v1195_v45  ;;  %2023 = vst [vmem:[%s4649_s5 + $0xa0] sm:$0xff] %v1959_v16  ;;  %v901_v57 = vcvt.s32.f32 %v837_v58  ;;  %v741_v28 = vshra.s32 %v677_v27, 4  ;;  %v869_v32 = vand.u32 15, %v677_v27 }
 0x19e   :  { %v2665_v41 = vpop.eup %2664  ;;  %v1588_v17 = vadd.f32 %v2663_v53, %v1524_v21  ;;  %2676 = vpow2.f32 %v2097_v2  ;;  %v459_v5 = vadd.f32 %v3920_v19, %v3652_v12  ;;  %v1778_v6 = vmul.f32 1.442695, %v1660_v7 }
 0x19f   :  { %v1162_v20 = vadd.f32 1.0, %v2665_v41  ;;  %v648_v62 = vand.u32 255, %v519_v54  ;;  %v1631_v63 = vsel %vm3280_vm6, %v299_v9, 0.0  ;;  %v551_v56 = vadd.s32 456, %v4728_v3 }
 0x1a0   :  { %v1927_v51 = vsel %vm3418_vm7, %v1588_v17, %v2663_v53  ;;  %v2129_v8 = vmul.f32 -1.442695, %v459_v5  ;;  %v1827_v12 = vmul.f32 %v4072_v38, %v2661_v23  ;;  %v1527_v48 = vadd.f32 %v1463_v49, %v1393_v40 }
 0x1a1   :  { %v1991_v0 = vsel %vm3280_vm6, %v1856_v43, %v1927_v51  ;;  %2678 = vrcp.f32 %v1162_v20  ;;  %v2667_v18 = vpop.eup %2666  ;;  %v1360_v10 = vsel %vm3071_vm3, %v901_v57, 0.0  ;;  %v1430_v22 = vsel %vm3075_vm4, %v773_v15, 0.0 }
 0x1a2   :  { %2055 = vst [vmem:[%s4649_s5 + $0x1a0] sm:$0xff] %v1991_v0  ;;  %v1559_v21 = vadd.f32 %v2667_v18, %v1495_v1  ;;  %v805_v55 = vcvt.s32.f32 %v741_v28  ;;  %v680_v9 = vand.u32 255, %v551_v56  ;;  %2680 = vpow2.f32 %v2129_v8 }
 0x1a3   :  { %v2669_v13 = vpop.eup %2668  ;;  %v933_v37 = vcvt.s32.f32 %v869_v32  ;;  %2682 = vpow2.f32 %v1778_v6  ;;  %v1720_v25 = vmul.f32 1.442695, %v1631_v63  ;;  %v712_v52 = vshra.s32 %v648_v62, 4 }
 0x1a4   :  { %v2671_v42 = vpop.eup %2670  ;;  %v1194_v50 = vadd.f32 1.0, %v2669_v13  ;;  %v1898_v39 = vsel %vm3418_vm7, %v1559_v21, %v2667_v18  ;;  %v840_v58 = vand.u32 15, %v648_v62  ;;  %v1663_v43 = vsel %vm3280_vm6, %v459_v5, 0.0  ;;  %v4737_v62 = vld [vmem:[#allocation34_spill] sm:$0xff] }
 0x1a5   :  { %v2673_v45 = vpop.eup %2672  ;;  %v1962_v1 = vsel %vm3280_vm6, %v1827_v12, %v1898_v39  ;;  %v872_v49 = vand.u32 15, %v680_v9  ;;  %v294_v27 = vadd.f32 %v3920_v19, %v3663_v61  ;;  %v1859_v30 = vmul.f32 %v4072_v38, %v2671_v42 }
 0x1a6   :  { %2684 = vrcp.f32 %v1194_v50  ;;  %2026 = vst [vmem:[%s4649_s5 + $0xb8] sm:$0xff] %v1962_v1  ;;  %v1494_v54 = vadd.f32 %v1430_v22, %v1360_v10  ;;  %v518_v2 = vadd.s32 192, %v4728_v3  ;;  %v744_v40 = vshra.s32 %v680_v9, 4 }
 0x1a7   :  { %v2675_v23 = vpop.eup %2674  ;;  %2686 = vpow2.f32 %v1720_v25  ;;  %v2096_v7 = vmul.f32 -1.442695, %v294_v27  ;;  %v1392_v41 = vsel %vm3071_vm3, %v933_v37, 0.0  ;;  %v1462_v61 = vsel %vm3075_vm4, %v805_v55, 0.0 }
 0x1a8   :  { %v2677_v53 = vpop.eup %2676  ;;  %v1591_v16 = vadd.f32 %v2675_v23, %v1527_v48  ;;  %v1784_v15 = vmul.f32 1.442695, %v1663_v43  ;;  %v776_v20 = vcvt.s32.f32 %v712_v52  ;;  %v904_v28 = vcvt.s32.f32 %v840_v58 }
 0x1a9   :  { %v1165_v17 = vadd.f32 1.0, %v2677_v53  ;;  %v936_v32 = vcvt.s32.f32 %v872_v49  ;;  %v647_v6 = vand.u32 255, %v518_v2  ;;  %v454_v63 = vadd.f32 %v3920_v19, %v4737_v62 }
 0x1aa   :  { %v1930_v57 = vsel %vm3418_vm7, %v1591_v16, %v2675_v23  ;;  %v1526_v56 = vadd.f32 %v1462_v61, %v1392_v41  ;;  %v808_v8 = vcvt.s32.f32 %v744_v40  ;;  %v1826_v12 = vmul.f32 %v4072_v38, %v2673_v45 }
 0x1ab   :  { %v2679_v5 = vpop.eup %2678  ;;  %v1994_v51 = vsel %vm3280_vm6, %v1859_v30, %v1930_v57  ;;  %2688 = vrcp.f32 %v1165_v17  ;;  %v1630_v48 = vsel %vm3280_vm6, %v294_v27, 0.0  ;;  %v2128_v10 = vmul.f32 -1.442695, %v454_v63 }
 0x1ac   :  { %2058 = vst [vmem:[%s4649_s5 + $0x1b8] sm:$0xff] %v1994_v51  ;;  %v1558_v0 = vadd.f32 %v2679_v5, %v1494_v54  ;;  %2690 = vpow2.f32 %v2096_v7  ;;  %v2681_v18 = vpop.eup %2680  ;;  %v1363_v21 = vsel %vm3071_vm3, %v904_v28, 0.0  ;;  %v550_v9 = vadd.s32 448, %v4728_v3 }
 0x1ad   :  { %2692 = vpow2.f32 %v1784_v15  ;;  %v2683_v22 = vpop.eup %2682  ;;  %v1197_v55 = vadd.f32 1.0, %v2681_v18  ;;  %v1433_v37 = vsel %vm3075_vm4, %v776_v20, 0.0  ;;  %v1395_v50 = vsel %vm3071_vm3, %v936_v32, 0.0 }
 0x1ae   :  { %v1897_v13 = vsel %vm3418_vm7, %v1558_v0, %v2679_v5  ;;  %v839_v25 = vand.u32 15, %v647_v6  ;;  %v1465_v52 = vsel %vm3075_vm4, %v808_v8, 0.0  ;;  %v1718_v58 = vmul.f32 1.442695, %v1630_v48 }
 0x1af   :  { %v1961_v42 = vsel %vm3280_vm6, %v1826_v12, %v1897_v13  ;;  %2694 = vrcp.f32 %v1197_v55  ;;  %v309_v43 = vadd.f32 %v3920_v19, %v3705_v60  ;;  %v711_v1 = vshra.s32 %v647_v6, 4 }
 0x1b0   :  { %v2685_v39 = vpop.eup %2684  ;;  %2025 = vst [vmem:[%s4649_s5 + $0xb0] sm:$0xff] %v1961_v42  ;;  %2696 = vpow2.f32 %v2128_v10  ;;  %v1662_v49 = vsel %vm3280_vm6, %v454_v63, 0.0  ;;  %v1858_v23 = vmul.f32 %v4072_v38, %v2683_v22  ;;  %v1497_v30 = vadd.f32 %v1433_v37, %v1363_v21 }
 0x1b1   :  { %v1590_v45 = vadd.f32 %v2685_v39, %v1526_v56  ;;  %v2687_v27 = vpop.eup %2686  ;;  %v679_v54 = vand.u32 255, %v550_v9  ;;  %v2099_v2 = vmul.f32 -1.442695, %v309_v43  ;;  %v903_v16 = vcvt.s32.f32 %v839_v25 }
 0x1b2   :  { %v521_v40 = vadd.s32 216, %v4728_v3  ;;  %v1529_v7 = vadd.f32 %v1465_v52, %v1395_v50  ;;  %2698 = vpow2.f32 %v1718_v58  ;;  %v1782_v41 = vmul.f32 1.442695, %v1662_v49 }
 0x1b3   :  { %v1929_v53 = vsel %vm3418_vm7, %v1590_v45, %v2685_v39  ;;  %v1829_v17 = vmul.f32 %v4072_v38, %v2687_v27  ;;  %v775_v15 = vcvt.s32.f32 %v711_v1  ;;  %2700 = vpow2.f32 %v2099_v2 }
 0x1b4   :  { %v1993_v60 = vsel %vm3280_vm6, %v1858_v23, %v1929_v53  ;;  %v469_v57 = vadd.f32 %v3920_v19, %v3707_v46  ;;  %v743_v32 = vshra.s32 %v679_v54, 4  ;;  %v871_v5 = vand.u32 15, %v679_v54  ;;  %v4386_v19 = vld [vmem:[%s4647_s2] ss:$0 sm:$0xff] }
 0x1b5   :  { %v2689_v61 = vpop.eup %2688  ;;  %2057 = vst [vmem:[%s4649_s5 + $0x1b0] sm:$0xff] %v1993_v60  ;;  %v553_v51 = vadd.s32 472, %v4728_v3  ;;  %v1362_v63 = vsel %vm3071_vm3, %v903_v16, 0.0  ;;  %v650_v0 = vand.u32 255, %v521_v40  ;;  %2702 = vpow2.f32 %v1782_v41 }
 0x1b6   :  { %v2691_v20 = vpop.eup %2690  ;;  %v1561_v28 = vadd.f32 %v2689_v61, %v1497_v30  ;;  %v2131_v56 = vmul.f32 -1.442695, %v469_v57  ;;  %v1633_v46 = vsel %vm3280_vm6, %v309_v43, 0.0  ;;  %v4390_v18 = vadd.f32 %v4386_v19, %v3755_v11 }
 0x1b7   :  { %v2693_v6 = vpop.eup %2692  ;;  %v1164_v62 = vadd.f32 1.0, %v2691_v20  ;;  %v1432_v48 = vsel %vm3075_vm4, %v775_v15, 0.0  ;;  %v682_v10 = vand.u32 255, %v553_v51  ;;  %v807_v21 = vcvt.s32.f32 %v743_v32 }
 0x1b8   :  { %v1900_v8 = vsel %vm3418_vm7, %v1561_v28, %v2689_v61  ;;  %v1861_v13 = vmul.f32 %v4072_v38, %v2693_v6  ;;  %v935_v55 = vcvt.s32.f32 %v871_v5  ;;  %v714_v42 = vshra.s32 %v650_v0, 4 }
 0x1b9   :  { %v1964_v12 = vsel %vm3280_vm6, %v1829_v17, %v1900_v8  ;;  %2704 = vrcp.f32 %v1164_v62  ;;  %v2695_v22 = vpop.eup %2694  ;;  %v842_v37 = vand.u32 15, %v650_v0  ;;  %v1724_v50 = vmul.f32 1.442695, %v1633_v46 }
 0x1ba   :  { %2028 = vst [vmem:[%s4649_s5 + $0xc8] sm:$0xff] %v1964_v12  ;;  %2706 = vpow2.f32 %v2131_v56  ;;  %v2697_v11 = vpop.eup %2696  ;;  %v1593_v9 = vadd.f32 %v2695_v22, %v1529_v7  ;;  %v1665_v39 = vsel %vm3280_vm6, %v469_v57, 0.0  ;;  %v520_v52 = vadd.s32 208, %v4728_v3 }
 0x1bb   :  { %v1196_v25 = vadd.f32 1.0, %v2697_v11  ;;  %v2098_v58 = vmul.f32 -1.442695, %v4390_v18  ;;  %v1496_v45 = vadd.f32 %v1432_v48, %v1362_v63  ;;  %v746_v1 = vshra.s32 %v682_v10, 4 }
 0x1bc   :  { %v1932_v43 = vsel %vm3418_vm7, %v1593_v9, %v2695_v22  ;;  %v874_v49 = vand.u32 15, %v682_v10  ;;  %v2699_v27 = vpop.eup %2698  ;;  %v1394_v30 = vsel %vm3071_vm3, %v935_v55, 0.0  ;;  %v1464_v54 = vsel %vm3075_vm4, %v807_v21, 0.0 }
 0x1bd   :  { %v1996_v23 = vsel %vm3280_vm6, %v1861_v13, %v1932_v43  ;;  %2708 = vrcp.f32 %v1196_v25  ;;  %v2701_v2 = vpop.eup %2700  ;;  %v778_v53 = vcvt.s32.f32 %v714_v42  ;;  %v906_v16 = vcvt.s32.f32 %v842_v37 }
 0x1be   :  { %2060 = vst [vmem:[%s4649_s5 + $0x1c8] sm:$0xff] %v1996_v23  ;;  %2710 = vpow2.f32 %v1724_v50  ;;  %v1788_v40 = vmul.f32 1.442695, %v1665_v39  ;;  %v1167_v60 = vadd.f32 1.0, %v2701_v2  ;;  %v649_v7 = vand.u32 255, %v520_v52 }
 0x1bf   :  { %2712 = vpow2.f32 %v2098_v58  ;;  %v464_v41 = vadd.f32 %v4386_v19, %v3775_v26  ;;  %v810_v61 = vcvt.s32.f32 %v746_v1  ;;  %v938_v17 = vcvt.s32.f32 %v874_v49  ;;  %v2703_v15 = vpop.eup %2702 }
 0x1c0   :  { %2714 = vrcp.f32 %v1167_v60  ;;  %v552_v57 = vadd.s32 464, %v4728_v3  ;;  %v4420_v28 = vadd.f32 %v4386_v19, %v3838_v29  ;;  %v1828_v5 = vmul.f32 %v4072_v38, %v2699_v27 }
 0x1c1   :  { %v2130_v20 = vmul.f32 -1.442695, %v464_v41  ;;  %v1528_v51 = vadd.f32 %v1464_v54, %v1394_v30  ;;  %v1365_v6 = vsel %vm3071_vm3, %v906_v16, 0.0  ;;  %v1435_v26 = vsel %vm3075_vm4, %v778_v53, 0.0 }
 0x1c2   :  { %2716 = vpow2.f32 %v1788_v40  ;;  %v841_v0 = vand.u32 15, %v649_v7  ;;  %v1632_v56 = vsel %vm3280_vm6, %v4390_v18, 0.0  ;;  %v1397_v8 = vsel %vm3071_vm3, %v938_v17, 0.0 }
 0x1c3   :  { %v2705_v32 = vpop.eup %2704  ;;  %v713_v46 = vshra.s32 %v649_v7, 4  ;;  %2718 = vpow2.f32 %v2130_v20  ;;  %v1467_v48 = vsel %vm3075_vm4, %v810_v61, 0.0  ;;  %v681_v10 = vand.u32 255, %v552_v57 }
 0x1c4   :  { %v2707_v62 = vpop.eup %2706  ;;  %v1560_v63 = vadd.f32 %v2705_v32, %v1496_v45  ;;  %v2101_v22 = vmul.f32 -1.442695, %v4420_v28  ;;  %v1722_v18 = vmul.f32 1.442695, %v1632_v56  ;;  %v523_v21 = vadd.s32 232, %v4728_v3 }
 0x1c5   :  { %v1199_v29 = vadd.f32 1.0, %v2707_v62  ;;  %v1860_v11 = vmul.f32 %v4072_v38, %v2703_v15  ;;  %v1499_v9 = vadd.f32 %v1435_v26, %v1365_v6  ;;  %v905_v42 = vcvt.s32.f32 %v841_v0 }
 0x1c6   :  { %v1899_v12 = vsel %vm3418_vm7, %v1560_v63, %v2705_v32  ;;  %v1531_v25 = vadd.f32 %v1467_v48, %v1397_v8  ;;  %v777_v39 = vcvt.s32.f32 %v713_v46  ;;  %v1664_v52 = vsel %vm3280_vm6, %v464_v41, 0.0 }
 0x1c7   :  { %v1963_v13 = vsel %vm3280_vm6, %v1828_v5, %v1899_v12  ;;  %2720 = vrcp.f32 %v1199_v29  ;;  %v2709_v55 = vpop.eup %2708  ;;  %v745_v43 = vshra.s32 %v681_v10, 4  ;;  %v873_v45 = vand.u32 15, %v681_v10  ;;  %v4480_v29 = vld [vmem:[%s4648_s4] ss:$0 sm:$0xff] }
 0x1c8   :  { %2027 = vst [vmem:[%s4649_s5 + $0xc0] sm:$0xff] %v1963_v13  ;;  %v2711_v37 = vpop.eup %2710  ;;  %v1592_v50 = vadd.f32 %v2709_v55, %v1528_v51  ;;  %2722 = vpow2.f32 %v2101_v22  ;;  %v479_v1 = vadd.f32 %v4386_v19, %v3858_v34  ;;  %v652_v23 = vand.u32 255, %v523_v21 }
 0x1c9   :  { %v2713_v58 = vpop.eup %2712  ;;  %2724 = vpow2.f32 %v1722_v18  ;;  %v1831_v2 = vmul.f32 %v4072_v38, %v2711_v37  ;;  %v1364_v53 = vsel %vm3071_vm3, %v905_v42, 0.0  ;;  %v555_v16 = vadd.s32 488, %v4728_v3 }
 0x1ca   :  { %v1931_v49 = vsel %vm3418_vm7, %v1592_v50, %v2709_v55  ;;  %v1166_v27 = vadd.f32 1.0, %v2713_v58  ;;  %v2715_v30 = vpop.eup %2714  ;;  %v1786_v40 = vmul.f32 1.442695, %v1664_v52  ;;  %v2133_v60 = vmul.f32 -1.442695, %v479_v1 }
 0x1cb   :  { %v1995_v54 = vsel %vm3280_vm6, %v1860_v11, %v1931_v49  ;;  %v1563_v34 = vadd.f32 %v2715_v30, %v1499_v9  ;;  %v1434_v41 = vsel %vm3075_vm4, %v777_v39, 0.0  ;;  %v809_v61 = vcvt.s32.f32 %v745_v43 }
 0x1cc   :  { %2059 = vst [vmem:[%s4649_s5 + $0x1c0] sm:$0xff] %v1995_v54  ;;  %2726 = vrcp.f32 %v1166_v27  ;;  %v2717_v7 = vpop.eup %2716  ;;  %v937_v17 = vcvt.s32.f32 %v873_v45  ;;  %v4463_v38 = vadd.f32 %v4386_v19, %v3898_v59  ;;  %v844_v20 = vand.u32 15, %v652_v23 }
 0x1cd   :  { %v2719_v15 = vpop.eup %2718  ;;  %v1902_v57 = vsel %vm3418_vm7, %v1563_v34, %v2715_v30  ;;  %v1635_v32 = vsel %vm3280_vm6, %v4420_v28, 0.0  ;;  %2728 = vpow2.f32 %v2133_v60  ;;  %v716_v6 = vshra.s32 %v652_v23, 4 }
 0x1ce   :  { %v1966_v5 = vsel %vm3280_vm6, %v1831_v2, %v1902_v57  ;;  %v1198_v51 = vadd.f32 1.0, %v2719_v15  ;;  %v684_v26 = vand.u32 255, %v555_v16  ;;  %v1498_v59 = vadd.f32 %v1434_v41, %v1364_v53 }
 0x1cf   :  { %2030 = vst [vmem:[%s4649_s5 + $0xd8] sm:$0xff] %v1966_v5  ;;  %2730 = vpow2.f32 %v1786_v40  ;;  %v2100_v63 = vmul.f32 -1.442695, %v4463_v38  ;;  %v1728_v56 = vmul.f32 1.442695, %v1635_v32  ;;  %v522_v28 = vadd.s32 224, %v4728_v3 }
 0x1d0   :  { %2732 = vrcp.f32 %v1198_v51  ;;  %v1863_v8 = vmul.f32 %v4480_v29, %v2717_v7  ;;  %v1396_v46 = vsel %vm3071_vm3, %v937_v17, 0.0  ;;  %v908_v12 = vcvt.s32.f32 %v844_v20 }
 0x1d1   :  { %v2721_v62 = vpop.eup %2720  ;;  %v1667_v48 = vsel %vm3280_vm6, %v479_v1, 0.0  ;;  %v1466_v13 = vsel %vm3075_vm4, %v809_v61, 0.0  ;;  %v780_v18 = vcvt.s32.f32 %v716_v6  ;;  %v876_v21 = vand.u32 15, %v684_v26 }
 0x1d2   :  { %v1595_v0 = vadd.f32 %v2721_v62, %v1531_v25  ;;  %v2723_v10 = vpop.eup %2722  ;;  %v748_v42 = vshra.s32 %v684_v26, 4  ;;  %2734 = vpow2.f32 %v2100_v63  ;;  %v1792_v37 = vmul.f32 1.442695, %v1667_v48 }
 0x1d3   :  { %v2725_v55 = vpop.eup %2724  ;;  %v1169_v9 = vadd.f32 1.0, %v2723_v10  ;;  %2736 = vpow2.f32 %v1728_v56  ;;  %v651_v50 = vand.u32 255, %v522_v28  ;;  %v474_v25 = vadd.f32 %v4386_v19, %v3932_v36 }
 0x1d4   :  { %v1934_v22 = vsel %vm3418_vm7, %v1595_v0, %v2721_v62  ;;  %v1530_v52 = vadd.f32 %v1466_v13, %v1396_v46  ;;  %v1367_v58 = vsel %vm3071_vm3, %v908_v12, 0.0  ;;  %v4502_v43 = vadd.f32 %v4386_v19, %v3985_v47 }
 0x1d5   :  { %v1998_v11 = vsel %vm3280_vm6, %v1863_v8, %v1934_v22  ;;  %2738 = vrcp.f32 %v1169_v9  ;;  %v1437_v1 = vsel %vm3075_vm4, %v780_v18, 0.0  ;;  %v940_v49 = vcvt.s32.f32 %v876_v21 }
 0x1d6   :  { %2062 = vst [vmem:[%s4649_s5 + $0x1d8] sm:$0xff] %v1998_v11  ;;  %v2727_v39 = vpop.eup %2726  ;;  %v2132_v27 = vmul.f32 -1.442695, %v474_v25  ;;  %v1830_v30 = vmul.f32 %v4480_v29, %v2725_v55  ;;  %v812_v36 = vcvt.s32.f32 %v748_v42  ;;  %v1634_v54 = vsel %vm3280_vm6, %v4463_v38, 0.0 }
 0x1d7   :  { %v1562_v45 = vadd.f32 %v2727_v39, %v1498_v59  ;;  %v2729_v23 = vpop.eup %2728  ;;  %v554_v2 = vadd.s32 480, %v4728_v3  ;;  %2740 = vpow2.f32 %v1792_v37  ;;  %v715_v16 = vshra.s32 %v651_v50, 4 }
 0x1d8   :  { %v1201_v53 = vadd.f32 1.0, %v2729_v23  ;;  %v843_v60 = vand.u32 15, %v651_v50  ;;  %2742 = vpow2.f32 %v2132_v27  ;;  %v2103_v7 = vmul.f32 -1.442695, %v4502_v43 }
 0x1d9   :  { %v1901_v47 = vsel %vm3418_vm7, %v1562_v45, %v2727_v39  ;;  %v2731_v34 = vpop.eup %2730  ;;  %v1399_v61 = vsel %vm3071_vm3, %v940_v49, 0.0  ;;  %v1726_v17 = vmul.f32 1.442695, %v1634_v54  ;;  %v1469_v15 = vsel %vm3075_vm4, %v812_v36, 0.0 }
 0x1da   :  { %v1965_v40 = vsel %vm3280_vm6, %v1830_v30, %v1901_v47  ;;  %v2733_v41 = vpop.eup %2732  ;;  %2744 = vrcp.f32 %v1201_v53  ;;  %v683_v57 = vand.u32 255, %v554_v2  ;;  %v525_v20 = vadd.s32 248, %v4728_v3 }
 0x1db   :  { %2029 = vst [vmem:[%s4649_s5 + $0xd0] sm:$0xff] %v1965_v40  ;;  %v1594_v38 = vadd.f32 %v2733_v41, %v1530_v52  ;;  %v1862_v32 = vmul.f32 %v4480_v29, %v2731_v34  ;;  %v1501_v5 = vadd.f32 %v1437_v1, %v1367_v58  ;;  %v779_v51 = vcvt.s32.f32 %v715_v16 }
 0x1dc   :  { %v2735_v6 = vpop.eup %2734  ;;  %v907_v62 = vcvt.s32.f32 %v843_v60  ;;  %v1666_v59 = vsel %vm3280_vm6, %v474_v25, 0.0  ;;  %2746 = vpow2.f32 %v2103_v7  ;;  %v1533_v56 = vadd.f32 %v1469_v15, %v1399_v61 }
 0x1dd   :  { %v1933_v26 = vsel %vm3418_vm7, %v1594_v38, %v2733_v41  ;;  %v2737_v63 = vpop.eup %2736  ;;  %v1168_v28 = vadd.f32 1.0, %v2735_v6  ;;  %2748 = vpow2.f32 %v1726_v17  ;;  %v747_v46 = vshra.s32 %v683_v57, 4 }
 0x1de   :  { %v1997_v0 = vsel %vm3280_vm6, %v1862_v32, %v1933_v26  ;;  %v654_v12 = vand.u32 255, %v525_v20  ;;  %v489_v48 = vadd.f32 %v4386_v19, %v4005_v14  ;;  %v4538_v10 = vadd.f32 %v4386_v19, %v4052_v33 }
 0x1df   :  { %v2739_v8 = vpop.eup %2738  ;;  %2061 = vst [vmem:[%s4649_s5 + $0x1d0] sm:$0xff] %v1997_v0  ;;  %2750 = vrcp.f32 %v1168_v28  ;;  %v875_v13 = vand.u32 15, %v683_v57  ;;  %v1790_v18 = vmul.f32 1.442695, %v1666_v59  ;;  %v1833_v21 = vmul.f32 %v4480_v29, %v2737_v63 }
 0x1e0   :  { %v1565_v22 = vadd.f32 %v2739_v8, %v1501_v5  ;;  %v1366_v55 = vsel %vm3071_vm3, %v907_v62, 0.0  ;;  %v1436_v11 = vsel %vm3075_vm4, %v779_v51, 0.0  ;;  %v2135_v9 = vmul.f32 -1.442695, %v489_v48 }
 0x1e1   :  { %v2741_v42 = vpop.eup %2740  ;;  %v1637_v33 = vsel %vm3280_vm6, %v4502_v43, 0.0  ;;  %v557_v37 = vadd.s32 504, %v4728_v3  ;;  %v2102_v50 = vmul.f32 -1.442695, %v4538_v10  ;;  %v811_v52 = vcvt.s32.f32 %v747_v46 }
 0x1e2   :  { %v1904_v14 = vsel %vm3418_vm7, %v1565_v22, %v2739_v8  ;;  %v2743_v25 = vpop.eup %2742  ;;  %v718_v58 = vshra.s32 %v654_v12, 4  ;;  %2752 = vpow2.f32 %v2135_v9  ;;  %v939_v1 = vcvt.s32.f32 %v875_v13 }
 0x1e3   :  { %v1968_v39 = vsel %vm3280_vm6, %v1833_v21, %v1904_v14  ;;  %v1200_v49 = vadd.f32 1.0, %v2743_v25  ;;  %2754 = vpow2.f32 %v1790_v18  ;;  %v846_v43 = vand.u32 15, %v654_v12 }
 0x1e4   :  { %v2745_v45 = vpop.eup %2744  ;;  %2032 = vst [vmem:[%s4649_s5 + $0xe8] sm:$0xff] %v1968_v39  ;;  %v1732_v23 = vmul.f32 1.442695, %v1637_v33  ;;  %2756 = vpow2.f32 %v2102_v50  ;;  %v484_v30 = vadd.f32 %v4386_v19, %v4080_v31  ;;  %v1865_v36 = vmul.f32 %v4480_v29, %v2741_v42 }
 0x1e5   :  { %v1597_v27 = vadd.f32 %v2745_v45, %v1533_v56  ;;  %2758 = vrcp.f32 %v1200_v49  ;;  %v686_v54 = vand.u32 255, %v557_v37  ;;  %v524_v2 = vadd.s32 240, %v4728_v3 }
 0x1e6   :  { %v2747_v47 = vpop.eup %2746  ;;  %v1500_v16 = vadd.f32 %v1436_v11, %v1366_v55  ;;  %v782_v34 = vcvt.s32.f32 %v718_v58  ;;  %v1398_v7 = vsel %vm3071_vm3, %v939_v1, 0.0  ;;  %v1669_v19 = vsel %vm3280_vm6, %v489_v48, 0.0 }
 0x1e7   :  { %v1936_v53 = vsel %vm3418_vm7, %v1597_v27, %v2745_v45  ;;  %v2749_v40 = vpop.eup %2748  ;;  %v1171_v31 = vadd.f32 1.0, %v2747_v47  ;;  %v1468_v41 = vsel %vm3075_vm4, %v811_v52, 0.0  ;;  %v910_v61 = vcvt.s32.f32 %v846_v43 }
 0x1e8   :  { %v2000_v60 = vsel %vm3280_vm6, %v1865_v36, %v1936_v53  ;;  %2760 = vpow2.f32 %v1732_v23  ;;  %v2134_v17 = vmul.f32 -1.442695, %v484_v30  ;;  %v750_v15 = vshra.s32 %v686_v54, 4 }
 0x1e9   :  { %2064 = vst [vmem:[%s4649_s5 + $0x1e8] sm:$0xff] %v2000_v60  ;;  %v2751_v38 = vpop.eup %2750  ;;  %2762 = vrcp.f32 %v1171_v31  ;;  %v653_v57 = vand.u32 255, %v524_v2  ;;  %v1636_v20 = vsel %vm3280_vm6, %v4538_v10, 0.0  ;;  %v878_v5 = vand.u32 15, %v686_v54 }
 0x1ea   :  { %v1564_v32 = vadd.f32 %v2751_v38, %v1500_v16  ;;  %v1796_v51 = vmul.f32 1.442695, %v1669_v19  ;;  %2764 = vpow2.f32 %v2134_v17  ;;  %v1832_v6 = vmul.f32 %v4480_v29, %v2749_v40 }
 0x1eb   :  { %v1532_v26 = vadd.f32 %v1468_v41, %v1398_v7  ;;  %v556_v62 = vadd.s32 496, %v4728_v3  ;;  %v1369_v0 = vsel %vm3071_vm3, %v910_v61, 0.0  ;;  %v1439_v56 = vsel %vm3075_vm4, %v782_v34, 0.0 }
 0x1ec   :  { %v2753_v59 = vpop.eup %2752  ;;  %v1903_v63 = vsel %vm3418_vm7, %v1564_v32, %v2751_v38  ;;  %v1730_v28 = vmul.f32 1.442695, %v1636_v20  ;;  %v717_v48 = vshra.s32 %v653_v57, 4  ;;  %v845_v10 = vand.u32 15, %v653_v57 }
 0x1ed   :  { %v2755_v8 = vpop.eup %2754  ;;  %v1967_v46 = vsel %vm3280_vm6, %v1832_v6, %v1903_v63  ;;  %v1203_v12 = vadd.f32 1.0, %v2753_v59  ;;  %v814_v3 = vcvt.s32.f32 %v750_v15  ;;  %v942_v13 = vcvt.s32.f32 %v878_v5 }
 0x1ee   :  { %v2757_v22 = vpop.eup %2756  ;;  %2031 = vst [vmem:[%s4649_s5 + $0xe0] sm:$0xff] %v1967_v46  ;;  %2766 = vpow2.f32 %v1796_v51  ;;  %v685_v55 = vand.u32 255, %v556_v62  ;;  %v1668_v11 = vsel %vm3280_vm6, %v484_v30, 0.0  ;;  %v1503_v42 = vadd.f32 %v1439_v56, %v1369_v0 }
 0x1ef   :  { %v2759_v18 = vpop.eup %2758  ;;  %2768 = vrcp.f32 %v1203_v12  ;;  %v1170_v21 = vadd.f32 1.0, %v2757_v22  ;;  %v1864_v14 = vmul.f32 %v4480_v29, %v2755_v8  ;;  %v781_v33 = vcvt.s32.f32 %v717_v48 }
 0x1f0   :  { %v1596_v9 = vadd.f32 %v2759_v18, %v1532_v26  ;;  %2770 = vpow2.f32 %v1730_v28  ;;  %v909_v37 = vcvt.s32.f32 %v845_v10  ;;  %v1401_v39 = vsel %vm3071_vm3, %v942_v13, 0.0 }
 0x1f1   :  { %2772 = vrcp.f32 %v1170_v21  ;;  %v1794_v52 = vmul.f32 1.442695, %v1668_v11  ;;  %v1471_v1 = vsel %vm3075_vm4, %v814_v3, 0.0  ;;  %v749_v49 = vshra.s32 %v685_v55, 4 }
 0x1f2   :  { %v2761_v50 = vpop.eup %2760  ;;  %v1935_v25 = vsel %vm3418_vm7, %v1596_v9, %v2759_v18  ;;  %v877_v43 = vand.u32 15, %v685_v55  ;;  %v1368_v36 = vsel %vm3071_vm3, %v909_v37, 0.0  ;;  %v1438_v54 = vsel %vm3075_vm4, %v781_v33, 0.0 }
 0x1f3   :  { %v2763_v58 = vpop.eup %2762  ;;  %v1999_v45 = vsel %vm3280_vm6, %v1864_v14, %v1935_v25  ;;  %v1835_v30 = vmul.f32 %v4480_v29, %v2761_v50  ;;  %v1535_v53 = vadd.f32 %v1471_v1, %v1401_v39  ;;  %2774 = vpow2.f32 %v1794_v52 }
 0x1f4   :  { %v2765_v27 = vpop.eup %2764  ;;  %2063 = vst [vmem:[%s4649_s5 + $0x1e0] sm:$0xff] %v1999_v45  ;;  %v1567_v23 = vadd.f32 %v2763_v58, %v1503_v42  ;;  %v813_v34 = vcvt.s32.f32 %v749_v49  ;;  %v941_v40 = vcvt.s32.f32 %v877_v43  ;;  %v1502_v7 = vadd.f32 %v1438_v54, %v1368_v36 }
 0x1f5   :  { %v1202_v2 = vadd.f32 1.0, %v2765_v27 }
 0x1f6   :  { %v1906_v47 = vsel %vm3418_vm7, %v1567_v23, %v2763_v58  ;;  %v1400_v38 = vsel %vm3071_vm3, %v941_v40, 0.0  ;;  %v1470_v15 = vsel %vm3075_vm4, %v813_v34, 0.0 }
 0x1f7   :  { %v1970_v16 = vsel %vm3280_vm6, %v1835_v30, %v1906_v47  ;;  %2776 = vrcp.f32 %v1202_v2  ;;  %v1534_v51 = vadd.f32 %v1470_v15, %v1400_v38 }
 0x1f8   :  { %v2767_v60 = vpop.eup %2766  ;;  %2034 = vst [vmem:[%s4649_s5 + $0xf8] sm:$0xff] %v1970_v16 }
 0x1f9   :  { %v2769_v31 = vpop.eup %2768  ;;  %v1867_v17 = vmul.f32 %v4480_v29, %v2767_v60 }
 0x1fa   :  { %v2771_v19 = vpop.eup %2770  ;;  %v1599_v41 = vadd.f32 %v2769_v31, %v1535_v53 }
 0x1fb   :  { %v2773_v61 = vpop.eup %2772  ;;  %v1834_v5 = vmul.f32 %v4480_v29, %v2771_v19 }
 0x1fc   :  { %v1938_v57 = vsel %vm3418_vm7, %v1599_v41, %v2769_v31  ;;  %v1566_v20 = vadd.f32 %v2773_v61, %v1502_v7 }
 0x1fd   :  { %v2002_v32 = vsel %vm3280_vm6, %v1867_v17, %v1938_v57  ;;  %v2775_v6 = vpop.eup %2774 }
 0x1fe   :  { %2066 = vst [vmem:[%s4649_s5 + $0x1f8] sm:$0xff] %v2002_v32  ;;  %v1905_v24 = vsel %vm3418_vm7, %v1566_v20, %v2773_v61  ;;  %v1866_v59 = vmul.f32 %v4480_v29, %v2775_v6 }
 0x1ff   :  { %v1969_v35 = vsel %vm3280_vm6, %v1834_v5, %v1905_v24 }
 0x200   :  { %2033 = vst [vmem:[%s4649_s5 + $0xf0] sm:$0xff] %v1969_v35 }
 0x201   :  { %v2777_v26 = vpop.eup %2776 }
 0x202   :  { %v1598_v62 = vadd.f32 %v2777_v26, %v1534_v51 }
 0x204   :  { %v1937_v63 = vsel %vm3418_vm7, %v1598_v62, %v2777_v26 }
 0x205   :  { %v2001_v0 = vsel %vm3280_vm6, %v1866_v59, %v1937_v63 }
 0x206   :  { %2065 = vst [vmem:[%s4649_s5 + $0x1f0] sm:$0xff] %v2001_v0 }

</bundles_post_ra>
